<compile_context>
chip_gen: v5e
topology: v5e:2x2
jax: 0.10.0
libtpu: 0.0.40
codegen_flags: <defaults>
</compile_context>

<pallas_src>
import jax
import jax.numpy as jnp
from jax.experimental import pallas as pl
from jax.experimental.pallas import tpu as pltpu

_LANES = 128
_TARGET_BLOCK_BYTES = 4 * 1024 * 1024    # ~4 MiB per block (was 2 MiB)
_VMEM_LIMIT_BYTES = 32 * 1024 * 1024     # covers in+out double buffering on all gens
_SMALL_BYTES = 1 << 20                   # below this, fused XLA beats pallas launch cost


def _sublane_multiple(dtype) -> int:
    # f32 -> 8, bf16 -> 16, int8/fp8 -> 32
    itemsize = jnp.dtype(dtype).itemsize
    return max(8, 32 // itemsize)


def _broadcast_sub_kernel(c_ref, x_ref, o_ref):
    # c_ref: (1,) float32 scalar in SMEM (runtime value -> no recompile per constant).
    c = c_ref[0]
    o_ref[...] = (c - x_ref[...].astype(jnp.float32)).astype(o_ref.dtype)


def broadcast_sub(x: jax.Array, sub_a_constant: float) -> jax.Array:
    """Computes sub_a_constant - x, matching torch.subtract(torch.tensor(const), x)."""
    dtype = x.dtype
    n_elem = x.size
    itemsize = jnp.dtype(dtype).itemsize
    n_bytes = n_elem * itemsize

    # Small tensors: pallas_call launch/pipeline-prologue cost (us-scale) dwarfs an
    # elementwise op this size.  Ragged flat lengths (not a multiple of 128 lanes):
    # pad + slice copies would add full extra HBM passes to a bandwidth-bound op, so
    # both cases take the single-pass fused XLA path.
    # TODO(synk): handle the <128-element ragged tail with an in-kernel masked store so
    # very large ragged tensors also use the Pallas path instead of the XLA fallback.
    if n_bytes < _SMALL_BYTES or (n_elem % _LANES) != 0:
        return jnp.asarray(sub_a_constant, dtype=dtype) - x

    orig_shape = x.shape
    rows = n_elem // _LANES
    x2d = x.reshape(rows, _LANES)  # pure collapse reshape: no copy

    # Row-tile giving ~4 MiB blocks, aligned to the dtype's sublane tile.
    sub = _sublane_multiple(dtype)
    target_rows = max(sub, _TARGET_BLOCK_BYTES // (_LANES * itemsize))
    if target_rows >= rows:
        tm = rows  # full-array block (exempt from the (8,128) divisibility rule)
    else:
        tm = max(sub, (target_rows // sub) * sub)

    grid = (pl.cdiv(rows, tm),)
    c_arr = jnp.full((1,), sub_a_constant, dtype=jnp.float32)

    out2d = pl.pallas_call(
        _broadcast_sub_kernel,
        out_shape=jax.ShapeDtypeStruct((rows, _LANES), dtype),
        grid=grid,
        in_specs=[
            pl.BlockSpec(memory_space=pltpu.MemorySpace.SMEM),  # scalar constant
            pl.BlockSpec((tm, _LANES), lambda i: (i, 0)),       # streaming input tile
        ],
        out_specs=pl.BlockSpec((tm, _LANES), lambda i: (i, 0)),
        compiler_params=pltpu.CompilerParams(
            # "parallel" lets Mosaic shard the row-tile axis across TensorCores on
            # multi-TC parts (v7x megacore); on single-TC chips it is a plain loop.
            dimension_semantics=("parallel",),
            vmem_limit_bytes=_VMEM_LIMIT_BYTES,
        ),
        cost_estimate=pl.CostEstimate(
            flops=n_elem, transcendentals=0, bytes_accessed=2 * n_bytes
        ),
        # input_output_aliases={1: 0} could be enabled if the caller donates x
        # (halves peak HBM footprint; bandwidth / wall time unchanged).
    )(c_arr, x2d)

    return out2d.reshape(orig_shape)


def _check(x, const):
    out = jax.block_until_ready(broadcast_sub(x, const))
    ref = jnp.asarray(const, dtype=x.dtype) - x
    assert out.shape == x.shape and out.dtype == x.dtype
    assert jnp.allclose(out, ref, atol=1e-6, rtol=1e-6)


if __name__ == "__main__":
    key = jax.random.PRNGKey(0)
    sub_a_constant = 1.0  # module stores a scalar constant

    k0, k1, k2 = jax.random.split(key, 3)

    # Primary small NCHW input from the module's forward (takes the fused-XLA fast path).
    x = jax.random.normal(k0, (2, 4, 16, 16), dtype=jnp.float32)
    _check(x, sub_a_constant)

    # Larger lane-aligned input: exercises the Pallas streaming kernel with a
    # multi-block grid and a partial trailing row block (20480 rows, tm=8192).
    x_big = jax.random.normal(k1, (2, 8, 512, 320), dtype=jnp.float32)
    _check(x_big, sub_a_constant)

    # Ragged flat length (not a multiple of 128): single-pass XLA fallback path.
    x_ragged = jax.random.normal(k2, (2, 3, 17, 19), dtype=jnp.float32)
    _check(x_ragged, sub_a_constant)

    print("KERNEL_OK")
</pallas_src>

<mosaic_0001>
module attributes {stable_mosaic.version = 11 : i64} {
  func.func @_broadcast_sub_kernel(%arg0: i32, %arg1: memref<1xf32, #tpu.memory_space<smem>>, %arg2: memref<8192x128xf32, #tpu.memory_space<vmem>>, %arg3: memref<8192x128xf32, #tpu.memory_space<vmem>>) attributes {dimension_semantics = [#tpu.dimension_semantics<parallel>], iteration_bounds = array<i64: 3>, scalar_prefetch = 0 : i64, scratch_operands = 0 : i64, tpu.core_type = #tpu.core_type<tc>, window_params = [{transform_indices = @transform_0, window_bounds = array<i64: 1>}, {transform_indices = @transform_1, window_bounds = array<i64: 8192, 128>}, {transform_indices = @transform_2, window_bounds = array<i64: 8192, 128>}]} {
    %c0 = arith.constant 0 : index
    %0 = memref.load %arg1[%c0] : memref<1xf32, #tpu.memory_space<smem>>
    %c0_0 = arith.constant 0 : index
    %c0_1 = arith.constant 0 : index
    %1 = vector.load %arg2[%c0_0, %c0_1] : memref<8192x128xf32, #tpu.memory_space<vmem>>, vector<8192x128xf32>
    %2 = vector.broadcast %0 : f32 to vector<8192x128xf32>
    %3 = arith.subf %2, %1 : vector<8192x128xf32>
    %c0_2 = arith.constant 0 : index
    %c0_3 = arith.constant 0 : index
    %4 = vector.load %arg3[%c0_2, %c0_3] : memref<8192x128xf32, #tpu.memory_space<vmem>>, vector<8192x128xf32>
    tpu.vector_store %arg3[%c0_2, %c0_3], %3 {strides = array<i32>} : memref<8192x128xf32, #tpu.memory_space<vmem>>, vector<8192x128xf32>,
    return
  }
  func.func @transform_0(%arg0: i32) -> i32 {
    %c0_i32 = arith.constant 0 : i32
    %c0_i32_0 = arith.constant 0 : i32
    return %c0_i32 : i32
  }
  func.func @transform_1(%arg0: i32) -> (i32, i32) {
    %c0_i32 = arith.constant 0 : i32
    %c0_i32_0 = arith.constant 0 : i32
    return %arg0, %c0_i32 : i32, i32
  }
  func.func @transform_2(%arg0: i32) -> (i32, i32) {
    %c0_i32 = arith.constant 0 : i32
    %c0_i32_0 = arith.constant 0 : i32
    return %arg0, %c0_i32 : i32, i32
  }
}

</mosaic_0001>

<bundles_post_ra>
// kernel: tpu_custom_call.1
= control target key start
LH: loop header
LB: loop body
LE: loop exit
PB: predicated region body
PF: predicated region fallthrough
CT: control target
= control target key end

     0   :  { %s6810_s0 = inlined_call_operand.<no memory space> [shape: f32[1], index: 0, kind: input, shape index: {}]   ;;  %s6811_s1 = inlined_call_operand.hbm [shape: f32[20480,128], index: 1, kind: input, shape index: {}]   ;;  %s6812_s2 = inlined_call_operand.hbm [shape: f32[20480,128], index: 2, kind: output, shape index: {}]  }
   0x1   :  { %7 = sst [smem:[#allocation2]] %s6810_s0 }
   0x2   :  { %8 = vsyncpa [#allocation4], 0 }
   0x3   :  { %10 = vsyncpa [#allocation4 + $0x1], 0 }
   0x4   :  { %11 = vsyncpa [#allocation5], 0 }
   0x5   :  { %13 = vsyncpa [#allocation5 + $0x1], 0  ;;  %s3561_s11 = smov 0   ;;  %s3563_s12 = smov 0  }
   0x6   :  { %s3565_s13 = smov 0   ;;  %s3567_s14 = smov 0  }
   0x7 LB: > { %s3582_s0 = sadd.s32 4294967295, %s3535_s14   ;;  %s3352_s15 = sadd.s32 4294967294, %s3535_s14   ;;  %s3535_s14 = sphi %s3567_s14, %s6821_s14   ;;  %s3531_s13 = sphi %s3565_s13, %s6820_s13   ;;  %s3527_s12 = sphi %s3563_s12, %s6819_s12   ;;  %s3523_s11 = sphi %s3561_s11, %s6818_s11  }
   0x8   : > { %s3586_s16 = sadd.s32 1, %s3535_s14   ;;  %s47_s17 = sadd.s32 1, %s3531_s13 }
   0x9   : > { %s44_s18 = ssub.s32 %s3535_s14, %s3586_s16  ;;  %p54_p0 = scmp.ne.s32.totalorder %s3531_s13, %s3527_s12 }
   0xa   : > { %p45_p1 = scmp.eq.s32.totalorder %s44_s18, 0  ;;  %p55_p2 = scmp.eq.s32.totalorder %s3535_s14, 0 }
   0xb   : > { %p60_p3 = scmp.ne.s32.totalorder %s3527_s12, %s3523_s11  ;;  %p61_p4 = scmp.eq.s32.totalorder %s3582_s0, 0 }
   0xc   : > { %s3598_s19 = scalar_select %p45_p1, %s3531_s13, %s47_s17  }
   0xd   : > { %p56_p5 = por %p55_p2, %p54_p0  ;;  %p3600_p6 = por %p61_p4, %p60_p3 }
   0xe   : > { %p84_p7 = scmp.eq.s32.totalorder %s3582_s0, 2  ;;  %p90_p8 = scmp.eq.s32.totalorder %s3352_s15, 2 }
   0xf   : > { %p3354_p11 = scmp.ge.s32.totalorder %s3535_s14, 3 }
  0x10   : > { %p3605_p9 = por %p84_p7, %p54_p0  ;;  %p3609_p10 = por %p90_p8, %p60_p3 }
  0x11   : > { %109 = sbr.rel (%p3354_p11) target bundleno = 58 (0x3a), region = 20 }
  0x16   : > { %112 = sbr.rel (!%p56_p5) target bundleno = 58 (0x3a), region = 24  ;;  %s113_s23 = sand.u32 (%p56_p5), 1, %s3531_s13  }
  0x17   : > { %s3356_s24 = sshll.u32 (%p56_p5), %s3535_s14, 10  ;;  %s3355_s25 = sshll.u32 (%p56_p5), %s113_s23, 13 }
  0x18   : > { %s119_s26 = ssub.s32 (%p56_p5), 2560, %s3356_s24  ;;  %s3619_s30 = scalar_lea.sflag (%p56_p5), [#allocation4], %s113_s23 }
  0x19   : > { %p120_p12 = scmp.lt.s32.totalorder (%p56_p5), %s119_s26, 1024  ;;  %s117_s3 = scalar_lea.vmem (%p56_p5), [#allocation3], %s3355_s25 }
  0x1b   : > { %s6823_s26 = smov (!%p120_p12, %s119_s26), 1024 }
  0x1c   : > { %s3357_s27 = sshll.u32 %s6823_s26, 3 }
  0x1d   : > { %s123_s28 = ssub.s32 8192, %s3357_s27 }
  0x1e   : > { %s124_s29 = sshll.u32 %s123_s28, 4 }
  0x1f   : > { %125 = vsyncadd %s3619_s30, %s124_s29  ;;  %p3622_p13 = scmp.ne.s32.totalorder %s3357_s27, 0  ;;  %s3374_s5 = sshll.u32 %s3535_s14, 13 }
  0x20   : > { %s128_s8 = scalar_lea.hbm %s6811_s1, %s3374_s5  ;;  %s3630_s9 = sshll.u32 %s117_s3, 4  ;;  %s133_s9 = int_to_ptr.vmem [resolvable:$true] %s3630_s9 }
  0x21   : > { %s130_s10 = sshll.u32 %s128_s8, 4  ;;  %s3361_s15 = sshll.u32 %s6823_s26, 7  ;;  %s3633_s10 = int_to_ptr.hbm [resolvable:$true] %s130_s10 }
  0x22   : > { %s3419_s17 = sshra.s32 %s3633_s10, 4  ;;  %s3421_s18 = sshrl.u32 %s3361_s15, 4  ;;  %s3420_s17 = int_to_ptr.hbm [resolvable:$true] %s3419_s17 }
  0x23   : > { %s3426_s23 = scalar_lea.hbm %s3420_s17, %s3421_s18  ;;  %s3430_s27 = scalar_lea.hbm %s6811_s1, 20480 }
  0x24   : > { %p3427_p0 = scmp.ne.s32.totalorder %s3420_s17, %s3426_s23  ;;  %p3431_p3 = scmp.lt.s32.totalorder %s3420_s17, %s6811_s1 }
  0x25   : > { %p3432_p4 = scmp.lt.s32.totalorder %s3430_s27, %s3426_s23 }
  0x26   : > { %p3428_p1 = pnand %p3427_p0, %p3622_p13 }
  0x27   : > { %p3433_p5 = por %p3432_p4, %p3431_p3 }
  0x28   : > { %p3429_p2 = pneg %p3428_p1 }
  0x2a   : > { %p3434_p7 = pnand %p3433_p5, %p3429_p2 }
  0x2c   : > { %3437 = shalt.err (!%p3434_p7)
}
  0x2d   : > { %s3438_s3 = sshra.s32 %s133_s9, 4  ;;  %s3537_s6 = smov [#allocation3]   ;;  %s3439_s3 = int_to_ptr.vmem [resolvable:$true] %s3438_s3 }
  0x2e   : > { %s3445_s5 = scalar_lea.vmem %s3439_s3, %s3421_s18  ;;  %s3449_s7 = scalar_lea.vmem %s3537_s6, 16384 }
  0x2f   : > { %p3446_p8 = scmp.ne.s32.totalorder %s3439_s3, %s3445_s5  ;;  %p3451_p0 = scmp.lt.s32.totalorder %s3449_s7, %s3445_s5 }
  0x31   : > { %p3447_p11 = pnand %p3446_p8, %p3622_p13 }
  0x33   : > { %p3448_p12 = pneg %p3447_p11 }
  0x35   : > { %p3453_p1 = pnand %p3451_p0, %p3448_p12 }
  0x37   : > { %3456 = shalt.err (!%p3453_p1)
}
  0x38   : > { %s3538_s8 = smov 128   ;;  %s3539_s17 = smov 8  }
  0x39   : > { %138 = dma.hbm_to_vmem [thread:$0]  (%p3622_p13), %s3633_s10, %s3361_s15, %s133_s9, %s3619_s30, %s3538_s8, %s3538_s8, %s3539_s17  }
  0x3a PF: > { %p3362_p2 = scmp.ge.s32.totalorder %s3535_s14, 1  ;;  %p140_p3 = scmp.lt.s32.totalorder %s3535_s14, 4 }
  0x3c   : > { %p141_p4 = pnand %p3362_p2, %p140_p3 }
  0x3d   : > { %s3662_s18 = sand.u32 (!%p141_p4), 1, %s3527_s12  }
  0x3e   : > { %144 = sbr.rel (%p141_p4) target bundleno = 1132 (0x46c), region = 28  ;;  %s3363_s23 = sshll.u32 (!%p141_p4), %s3662_s18, 13 }
  0x3f   : > { %s147_s24 = scalar_lea.sflag (!%p141_p4), [#allocation4], %s3662_s18  ;;  %s3666_s4 = scalar_lea.vmem (!%p141_p4), [#allocation3], %s3363_s23 }
  0x43   : > { %3514 = dma.done.wait (%p3600_p6), %s147_s24, 131072  }
  0x44   : > { %3516 = vsyncadd (%p3600_p6), %s147_s24, 4294836224  ;;  %s182_s26 = sld [smem:[#allocation2]]  ;;  %v183_v0 = vld [vmem:[%s3666_s4] sm:$0xff]  ;;  %v184_v2 = vld [vmem:[%s3666_s4 + $0x8] sm:$0xff]  ;;  %s3685_s20 = scalar_lea.vmem [#allocation6], %s3363_s23 }
  0x45   : > { %v185_v3 = vld [vmem:[%s3666_s4 + $0x10] sm:$0xff]  ;;  %v186_v7 = vld [vmem:[%s3666_s4 + $0x18] sm:$0xff]  ;;  %v187_v8 = vld [vmem:[%s3666_s4 + $0x20] sm:$0xff]  ;;  %s3257_s30 = scalar_lea.sflag [#allocation5], %s3662_s18  ;;  %s3366_s9 = sshll.u32 (%p3605_p9), %s3582_s0, 10 }
  0x46   : > { %v188_v9 = vld [vmem:[%s3666_s4 + $0x28] sm:$0xff]  ;;  %v189_v11 = vld [vmem:[%s3666_s4 + $0x30] sm:$0xff]  ;;  %v190_v13 = vld [vmem:[%s3666_s4 + $0x38] sm:$0xff]  ;;  %s3265_s10 = ssub.s32 (%p3605_p9), 2560, %s3366_s9 }
  0x47   : > { %v191_v15 = vld [vmem:[%s3666_s4 + $0x40] sm:$0xff]  ;;  %v192_v17 = vld [vmem:[%s3666_s4 + $0x48] sm:$0xff]  ;;  %v193_v19 = vld [vmem:[%s3666_s4 + $0x50] sm:$0xff]  ;;  %p3266_p6 = scmp.lt.s32.totalorder (%p3605_p9), %s3265_s10, 1024 }
  0x48   : > { %v194_v21 = vld [vmem:[%s3666_s4 + $0x58] sm:$0xff]  ;;  %v195_v23 = vld [vmem:[%s3666_s4 + $0x60] sm:$0xff]  ;;  %v196_v25 = vld [vmem:[%s3666_s4 + $0x68] sm:$0xff] }
  0x49   : > { %v197_v27 = vld [vmem:[%s3666_s4 + $0x70] sm:$0xff]  ;;  %v198_v29 = vld [vmem:[%s3666_s4 + $0x78] sm:$0xff]  ;;  %v199_v31 = vld [vmem:[%s3666_s4 + $0x80] sm:$0xff] }
  0x4a   : > { %v3673_v1 = vstv %s182_s26  ;;  %v200_v33 = vld [vmem:[%s3666_s4 + $0x88] sm:$0xff]  ;;  %v201_v35 = vld [vmem:[%s3666_s4 + $0x90] sm:$0xff]  ;;  %v202_v37 = vld [vmem:[%s3666_s4 + $0x98] sm:$0xff] }
  0x4b   : > { %v1208_v4 = vsub.f32 %v3673_v1, %v183_v0  ;;  %v1209_v5 = vsub.f32 %v3673_v1, %v184_v2  ;;  %v1210_v6 = vsub.f32 %v3673_v1, %v185_v3  ;;  %v1211_v10 = vsub.f32 %v3673_v1, %v186_v7  ;;  %v203_v39 = vld [vmem:[%s3666_s4 + $0xa0] sm:$0xff]  ;;  %v204_v41 = vld [vmem:[%s3666_s4 + $0xa8] sm:$0xff]  ;;  %v205_v43 = vld [vmem:[%s3666_s4 + $0xb0] sm:$0xff] }
  0x4c   : > { %v1212_v12 = vsub.f32 %v3673_v1, %v187_v8  ;;  %v1213_v14 = vsub.f32 %v3673_v1, %v188_v9  ;;  %v1214_v16 = vsub.f32 %v3673_v1, %v189_v11  ;;  %v1215_v18 = vsub.f32 %v3673_v1, %v190_v13  ;;  %v206_v45 = vld [vmem:[%s3666_s4 + $0xb8] sm:$0xff]  ;;  %v207_v47 = vld [vmem:[%s3666_s4 + $0xc0] sm:$0xff]  ;;  %v208_v49 = vld [vmem:[%s3666_s4 + $0xc8] sm:$0xff] }
  0x4d   : > { %2232 = vst [vmem:[%s3685_s20] sm:$0xff] %v1208_v4  ;;  %v1216_v20 = vsub.f32 %v3673_v1, %v191_v15  ;;  %v1217_v22 = vsub.f32 %v3673_v1, %v192_v17  ;;  %v1218_v24 = vsub.f32 %v3673_v1, %v193_v19  ;;  %v1219_v26 = vsub.f32 %v3673_v1, %v194_v21  ;;  %v209_v51 = vld [vmem:[%s3666_s4 + $0xd0] sm:$0xff]  ;;  %v210_v53 = vld [vmem:[%s3666_s4 + $0xd8] sm:$0xff]  ;;  %v211_v55 = vld [vmem:[%s3666_s4 + $0xe0] sm:$0xff] }
  0x4e   : > { %2233 = vst [vmem:[%s3685_s20 + $0x8] sm:$0xff] %v1209_v5  ;;  %v1220_v28 = vsub.f32 %v3673_v1, %v195_v23  ;;  %v1221_v30 = vsub.f32 %v3673_v1, %v196_v25  ;;  %v1222_v32 = vsub.f32 %v3673_v1, %v197_v27  ;;  %v1223_v34 = vsub.f32 %v3673_v1, %v198_v29  ;;  %v212_v57 = vld [vmem:[%s3666_s4 + $0xe8] sm:$0xff]  ;;  %v213_v59 = vld [vmem:[%s3666_s4 + $0xf0] sm:$0xff]  ;;  %v214_v61 = vld [vmem:[%s3666_s4 + $0xf8] sm:$0xff] }
  0x4f   : > { %2234 = vst [vmem:[%s3685_s20 + $0x10] sm:$0xff] %v1210_v6  ;;  %v1224_v36 = vsub.f32 %v3673_v1, %v199_v31  ;;  %v1225_v38 = vsub.f32 %v3673_v1, %v200_v33  ;;  %v1226_v40 = vsub.f32 %v3673_v1, %v201_v35  ;;  %v1227_v42 = vsub.f32 %v3673_v1, %v202_v37  ;;  %v215_v63 = vld [vmem:[%s3666_s4 + $0x100] sm:$0xff]  ;;  %v216_v2 = vld [vmem:[%s3666_s4 + $0x108] sm:$0xff]  ;;  %v217_v4 = vld [vmem:[%s3666_s4 + $0x110] sm:$0xff] }
  0x50   : > { %2235 = vst [vmem:[%s3685_s20 + $0x18] sm:$0xff] %v1211_v10  ;;  %v1228_v44 = vsub.f32 %v3673_v1, %v203_v39  ;;  %v1229_v46 = vsub.f32 %v3673_v1, %v204_v41  ;;  %v1230_v48 = vsub.f32 %v3673_v1, %v205_v43  ;;  %v1231_v50 = vsub.f32 %v3673_v1, %v206_v45  ;;  %v218_v6 = vld [vmem:[%s3666_s4 + $0x118] sm:$0xff]  ;;  %v219_v8 = vld [vmem:[%s3666_s4 + $0x120] sm:$0xff]  ;;  %v220_v10 = vld [vmem:[%s3666_s4 + $0x128] sm:$0xff] }
  0x51   : > { %2236 = vst [vmem:[%s3685_s20 + $0x20] sm:$0xff] %v1212_v12  ;;  %v1232_v52 = vsub.f32 %v3673_v1, %v207_v47  ;;  %v1233_v54 = vsub.f32 %v3673_v1, %v208_v49  ;;  %v1234_v56 = vsub.f32 %v3673_v1, %v209_v51  ;;  %v1235_v58 = vsub.f32 %v3673_v1, %v210_v53  ;;  %v221_v12 = vld [vmem:[%s3666_s4 + $0x130] sm:$0xff] }
  0x52   : > { %2237 = vst [vmem:[%s3685_s20 + $0x28] sm:$0xff] %v1213_v14  ;;  %v1236_v60 = vsub.f32 %v3673_v1, %v211_v55  ;;  %v1237_v62 = vsub.f32 %v3673_v1, %v212_v57  ;;  %v1238_v0 = vsub.f32 %v3673_v1, %v213_v59  ;;  %v1239_v3 = vsub.f32 %v3673_v1, %v214_v61  ;;  %v222_v14 = vld [vmem:[%s3666_s4 + $0x138] sm:$0xff] }
  0x53   : > { %2238 = vst [vmem:[%s3685_s20 + $0x30] sm:$0xff] %v1214_v16  ;;  %v1240_v5 = vsub.f32 %v3673_v1, %v215_v63  ;;  %v1241_v7 = vsub.f32 %v3673_v1, %v216_v2  ;;  %v1242_v9 = vsub.f32 %v3673_v1, %v217_v4  ;;  %v1243_v11 = vsub.f32 %v3673_v1, %v218_v6  ;;  %v223_v16 = vld [vmem:[%s3666_s4 + $0x140] sm:$0xff] }
  0x54   : > { %2239 = vst [vmem:[%s3685_s20 + $0x38] sm:$0xff] %v1215_v18  ;;  %v1244_v13 = vsub.f32 %v3673_v1, %v219_v8  ;;  %v1245_v15 = vsub.f32 %v3673_v1, %v220_v10  ;;  %v1246_v17 = vsub.f32 %v3673_v1, %v221_v12  ;;  %v224_v18 = vld [vmem:[%s3666_s4 + $0x148] sm:$0xff]  ;;  %v1247_v19 = vsub.f32 %v3673_v1, %v222_v14 }
  0x55   : > { %2240 = vst [vmem:[%s3685_s20 + $0x40] sm:$0xff] %v1216_v20  ;;  %v225_v20 = vld [vmem:[%s3666_s4 + $0x150] sm:$0xff]  ;;  %v1248_v21 = vsub.f32 %v3673_v1, %v223_v16  ;;  %v1249_v23 = vsub.f32 %v3673_v1, %v224_v18 }
  0x56   : > { %2241 = vst [vmem:[%s3685_s20 + $0x48] sm:$0xff] %v1217_v22  ;;  %v226_v22 = vld [vmem:[%s3666_s4 + $0x158] sm:$0xff]  ;;  %v1250_v25 = vsub.f32 %v3673_v1, %v225_v20 }
  0x57   : > { %2242 = vst [vmem:[%s3685_s20 + $0x50] sm:$0xff] %v1218_v24  ;;  %v227_v24 = vld [vmem:[%s3666_s4 + $0x160] sm:$0xff]  ;;  %v1251_v27 = vsub.f32 %v3673_v1, %v226_v22 }
  0x58   : > { %2243 = vst [vmem:[%s3685_s20 + $0x58] sm:$0xff] %v1219_v26  ;;  %v228_v26 = vld [vmem:[%s3666_s4 + $0x168] sm:$0xff]  ;;  %v1252_v29 = vsub.f32 %v3673_v1, %v227_v24 }
  0x59   : > { %2244 = vst [vmem:[%s3685_s20 + $0x60] sm:$0xff] %v1220_v28  ;;  %v229_v28 = vld [vmem:[%s3666_s4 + $0x170] sm:$0xff]  ;;  %v1253_v31 = vsub.f32 %v3673_v1, %v228_v26 }
  0x5a   : > { %2245 = vst [vmem:[%s3685_s20 + $0x68] sm:$0xff] %v1221_v30  ;;  %v230_v30 = vld [vmem:[%s3666_s4 + $0x178] sm:$0xff]  ;;  %v1254_v33 = vsub.f32 %v3673_v1, %v229_v28 }
  0x5b   : > { %2246 = vst [vmem:[%s3685_s20 + $0x70] sm:$0xff] %v1222_v32  ;;  %v231_v32 = vld [vmem:[%s3666_s4 + $0x180] sm:$0xff]  ;;  %v1255_v35 = vsub.f32 %v3673_v1, %v230_v30 }
  0x5c   : > { %2247 = vst [vmem:[%s3685_s20 + $0x78] sm:$0xff] %v1223_v34  ;;  %v232_v34 = vld [vmem:[%s3666_s4 + $0x188] sm:$0xff]  ;;  %v1256_v37 = vsub.f32 %v3673_v1, %v231_v32 }
  0x5d   : > { %2248 = vst [vmem:[%s3685_s20 + $0x80] sm:$0xff] %v1224_v36  ;;  %v233_v36 = vld [vmem:[%s3666_s4 + $0x190] sm:$0xff]  ;;  %v1257_v39 = vsub.f32 %v3673_v1, %v232_v34 }
  0x5e   : > { %2249 = vst [vmem:[%s3685_s20 + $0x88] sm:$0xff] %v1225_v38  ;;  %v234_v38 = vld [vmem:[%s3666_s4 + $0x198] sm:$0xff]  ;;  %v1258_v41 = vsub.f32 %v3673_v1, %v233_v36 }
  0x5f   : > { %2250 = vst [vmem:[%s3685_s20 + $0x90] sm:$0xff] %v1226_v40  ;;  %v235_v40 = vld [vmem:[%s3666_s4 + $0x1a0] sm:$0xff]  ;;  %v1259_v43 = vsub.f32 %v3673_v1, %v234_v38 }
  0x60   : > { %2251 = vst [vmem:[%s3685_s20 + $0x98] sm:$0xff] %v1227_v42  ;;  %v236_v42 = vld [vmem:[%s3666_s4 + $0x1a8] sm:$0xff]  ;;  %v1260_v45 = vsub.f32 %v3673_v1, %v235_v40 }
  0x61   : > { %2252 = vst [vmem:[%s3685_s20 + $0xa0] sm:$0xff] %v1228_v44  ;;  %v237_v44 = vld [vmem:[%s3666_s4 + $0x1b0] sm:$0xff]  ;;  %v1261_v47 = vsub.f32 %v3673_v1, %v236_v42 }
  0x62   : > { %2253 = vst [vmem:[%s3685_s20 + $0xa8] sm:$0xff] %v1229_v46  ;;  %v238_v46 = vld [vmem:[%s3666_s4 + $0x1b8] sm:$0xff]  ;;  %v1262_v49 = vsub.f32 %v3673_v1, %v237_v44 }
  0x63   : > { %2254 = vst [vmem:[%s3685_s20 + $0xb0] sm:$0xff] %v1230_v48  ;;  %v239_v48 = vld [vmem:[%s3666_s4 + $0x1c0] sm:$0xff]  ;;  %v1263_v51 = vsub.f32 %v3673_v1, %v238_v46 }
  0x64   : > { %2255 = vst [vmem:[%s3685_s20 + $0xb8] sm:$0xff] %v1231_v50  ;;  %v240_v50 = vld [vmem:[%s3666_s4 + $0x1c8] sm:$0xff]  ;;  %v1264_v53 = vsub.f32 %v3673_v1, %v239_v48 }
  0x65   : > { %2256 = vst [vmem:[%s3685_s20 + $0xc0] sm:$0xff] %v1232_v52  ;;  %v241_v52 = vld [vmem:[%s3666_s4 + $0x1d0] sm:$0xff]  ;;  %v1265_v55 = vsub.f32 %v3673_v1, %v240_v50 }
  0x66   : > { %2257 = vst [vmem:[%s3685_s20 + $0xc8] sm:$0xff] %v1233_v54  ;;  %v242_v54 = vld [vmem:[%s3666_s4 + $0x1d8] sm:$0xff]  ;;  %v1266_v57 = vsub.f32 %v3673_v1, %v241_v52 }
  0x67   : > { %2258 = vst [vmem:[%s3685_s20 + $0xd0] sm:$0xff] %v1234_v56  ;;  %v243_v56 = vld [vmem:[%s3666_s4 + $0x1e0] sm:$0xff]  ;;  %v1267_v59 = vsub.f32 %v3673_v1, %v242_v54 }
  0x68   : > { %2259 = vst [vmem:[%s3685_s20 + $0xd8] sm:$0xff] %v1235_v58  ;;  %v244_v58 = vld [vmem:[%s3666_s4 + $0x1e8] sm:$0xff]  ;;  %v1268_v61 = vsub.f32 %v3673_v1, %v243_v56 }
  0x69   : > { %2260 = vst [vmem:[%s3685_s20 + $0xe0] sm:$0xff] %v1236_v60  ;;  %v245_v60 = vld [vmem:[%s3666_s4 + $0x1f0] sm:$0xff]  ;;  %v1269_v63 = vsub.f32 %v3673_v1, %v244_v58 }
  0x6a   : > { %2261 = vst [vmem:[%s3685_s20 + $0xe8] sm:$0xff] %v1237_v62  ;;  %v246_v62 = vld [vmem:[%s3666_s4 + $0x1f8] sm:$0xff]  ;;  %v1270_v2 = vsub.f32 %v3673_v1, %v245_v60 }
  0x6b   : > { %2262 = vst [vmem:[%s3685_s20 + $0xf0] sm:$0xff] %v1238_v0  ;;  %v247_v0 = vld [vmem:[%s3666_s4 + $0x200] sm:$0xff]  ;;  %v1271_v4 = vsub.f32 %v3673_v1, %v246_v62 }
  0x6c   : > { %2263 = vst [vmem:[%s3685_s20 + $0xf8] sm:$0xff] %v1239_v3  ;;  %v248_v3 = vld [vmem:[%s3666_s4 + $0x208] sm:$0xff]  ;;  %v1272_v6 = vsub.f32 %v3673_v1, %v247_v0 }
  0x6d   : > { %2264 = vst [vmem:[%s3685_s20 + $0x100] sm:$0xff] %v1240_v5  ;;  %v249_v5 = vld [vmem:[%s3666_s4 + $0x210] sm:$0xff]  ;;  %v1273_v8 = vsub.f32 %v3673_v1, %v248_v3 }
  0x6e   : > { %2265 = vst [vmem:[%s3685_s20 + $0x108] sm:$0xff] %v1241_v7  ;;  %v250_v7 = vld [vmem:[%s3666_s4 + $0x218] sm:$0xff]  ;;  %v1274_v10 = vsub.f32 %v3673_v1, %v249_v5 }
  0x6f   : > { %2266 = vst [vmem:[%s3685_s20 + $0x110] sm:$0xff] %v1242_v9  ;;  %v251_v9 = vld [vmem:[%s3666_s4 + $0x220] sm:$0xff]  ;;  %v1275_v12 = vsub.f32 %v3673_v1, %v250_v7 }
  0x70   : > { %2267 = vst [vmem:[%s3685_s20 + $0x118] sm:$0xff] %v1243_v11  ;;  %v252_v11 = vld [vmem:[%s3666_s4 + $0x228] sm:$0xff]  ;;  %v1276_v14 = vsub.f32 %v3673_v1, %v251_v9 }
  0x71   : > { %2268 = vst [vmem:[%s3685_s20 + $0x120] sm:$0xff] %v1244_v13  ;;  %v253_v13 = vld [vmem:[%s3666_s4 + $0x230] sm:$0xff]  ;;  %v1277_v16 = vsub.f32 %v3673_v1, %v252_v11 }
  0x72   : > { %2269 = vst [vmem:[%s3685_s20 + $0x128] sm:$0xff] %v1245_v15  ;;  %v254_v15 = vld [vmem:[%s3666_s4 + $0x238] sm:$0xff]  ;;  %v1278_v18 = vsub.f32 %v3673_v1, %v253_v13 }
  0x73   : > { %2270 = vst [vmem:[%s3685_s20 + $0x130] sm:$0xff] %v1246_v17  ;;  %v255_v17 = vld [vmem:[%s3666_s4 + $0x240] sm:$0xff]  ;;  %v1279_v20 = vsub.f32 %v3673_v1, %v254_v15 }
  0x74   : > { %2271 = vst [vmem:[%s3685_s20 + $0x138] sm:$0xff] %v1247_v19  ;;  %v256_v19 = vld [vmem:[%s3666_s4 + $0x248] sm:$0xff]  ;;  %v1280_v22 = vsub.f32 %v3673_v1, %v255_v17 }
  0x75   : > { %2272 = vst [vmem:[%s3685_s20 + $0x140] sm:$0xff] %v1248_v21  ;;  %v257_v21 = vld [vmem:[%s3666_s4 + $0x250] sm:$0xff]  ;;  %v1281_v24 = vsub.f32 %v3673_v1, %v256_v19 }
  0x76   : > { %2273 = vst [vmem:[%s3685_s20 + $0x148] sm:$0xff] %v1249_v23  ;;  %v258_v23 = vld [vmem:[%s3666_s4 + $0x258] sm:$0xff]  ;;  %v1282_v26 = vsub.f32 %v3673_v1, %v257_v21 }
  0x77   : > { %2274 = vst [vmem:[%s3685_s20 + $0x150] sm:$0xff] %v1250_v25  ;;  %v259_v25 = vld [vmem:[%s3666_s4 + $0x260] sm:$0xff]  ;;  %v1283_v28 = vsub.f32 %v3673_v1, %v258_v23 }
  0x78   : > { %2275 = vst [vmem:[%s3685_s20 + $0x158] sm:$0xff] %v1251_v27  ;;  %v260_v27 = vld [vmem:[%s3666_s4 + $0x268] sm:$0xff]  ;;  %v1284_v30 = vsub.f32 %v3673_v1, %v259_v25 }
  0x79   : > { %2276 = vst [vmem:[%s3685_s20 + $0x160] sm:$0xff] %v1252_v29  ;;  %v261_v29 = vld [vmem:[%s3666_s4 + $0x270] sm:$0xff]  ;;  %v1285_v32 = vsub.f32 %v3673_v1, %v260_v27 }
  0x7a   : > { %2277 = vst [vmem:[%s3685_s20 + $0x168] sm:$0xff] %v1253_v31  ;;  %v262_v31 = vld [vmem:[%s3666_s4 + $0x278] sm:$0xff]  ;;  %v1286_v34 = vsub.f32 %v3673_v1, %v261_v29 }
  0x7b   : > { %2278 = vst [vmem:[%s3685_s20 + $0x170] sm:$0xff] %v1254_v33  ;;  %v263_v33 = vld [vmem:[%s3666_s4 + $0x280] sm:$0xff]  ;;  %v1287_v36 = vsub.f32 %v3673_v1, %v262_v31 }
  0x7c   : > { %2279 = vst [vmem:[%s3685_s20 + $0x178] sm:$0xff] %v1255_v35  ;;  %v264_v35 = vld [vmem:[%s3666_s4 + $0x288] sm:$0xff]  ;;  %v1288_v38 = vsub.f32 %v3673_v1, %v263_v33 }
  0x7d   : > { %2280 = vst [vmem:[%s3685_s20 + $0x180] sm:$0xff] %v1256_v37  ;;  %v265_v37 = vld [vmem:[%s3666_s4 + $0x290] sm:$0xff]  ;;  %v1289_v40 = vsub.f32 %v3673_v1, %v264_v35 }
  0x7e   : > { %2281 = vst [vmem:[%s3685_s20 + $0x188] sm:$0xff] %v1257_v39  ;;  %v266_v39 = vld [vmem:[%s3666_s4 + $0x298] sm:$0xff]  ;;  %v1290_v42 = vsub.f32 %v3673_v1, %v265_v37 }
  0x7f   : > { %2282 = vst [vmem:[%s3685_s20 + $0x190] sm:$0xff] %v1258_v41  ;;  %v267_v41 = vld [vmem:[%s3666_s4 + $0x2a0] sm:$0xff]  ;;  %v1291_v44 = vsub.f32 %v3673_v1, %v266_v39 }
  0x80   : > { %2283 = vst [vmem:[%s3685_s20 + $0x198] sm:$0xff] %v1259_v43  ;;  %v268_v43 = vld [vmem:[%s3666_s4 + $0x2a8] sm:$0xff]  ;;  %v1292_v46 = vsub.f32 %v3673_v1, %v267_v41 }
  0x81   : > { %2284 = vst [vmem:[%s3685_s20 + $0x1a0] sm:$0xff] %v1260_v45  ;;  %v269_v45 = vld [vmem:[%s3666_s4 + $0x2b0] sm:$0xff]  ;;  %v1293_v48 = vsub.f32 %v3673_v1, %v268_v43 }
  0x82   : > { %2285 = vst [vmem:[%s3685_s20 + $0x1a8] sm:$0xff] %v1261_v47  ;;  %v270_v47 = vld [vmem:[%s3666_s4 + $0x2b8] sm:$0xff]  ;;  %v1294_v50 = vsub.f32 %v3673_v1, %v269_v45 }
  0x83   : > { %2286 = vst [vmem:[%s3685_s20 + $0x1b0] sm:$0xff] %v1262_v49  ;;  %v271_v49 = vld [vmem:[%s3666_s4 + $0x2c0] sm:$0xff]  ;;  %v1295_v52 = vsub.f32 %v3673_v1, %v270_v47 }
  0x84   : > { %2287 = vst [vmem:[%s3685_s20 + $0x1b8] sm:$0xff] %v1263_v51  ;;  %v272_v51 = vld [vmem:[%s3666_s4 + $0x2c8] sm:$0xff]  ;;  %v1296_v54 = vsub.f32 %v3673_v1, %v271_v49 }
  0x85   : > { %2288 = vst [vmem:[%s3685_s20 + $0x1c0] sm:$0xff] %v1264_v53  ;;  %v273_v53 = vld [vmem:[%s3666_s4 + $0x2d0] sm:$0xff]  ;;  %v1297_v56 = vsub.f32 %v3673_v1, %v272_v51 }
  0x86   : > { %2289 = vst [vmem:[%s3685_s20 + $0x1c8] sm:$0xff] %v1265_v55  ;;  %v274_v55 = vld [vmem:[%s3666_s4 + $0x2d8] sm:$0xff]  ;;  %v1298_v58 = vsub.f32 %v3673_v1, %v273_v53 }
  0x87   : > { %2290 = vst [vmem:[%s3685_s20 + $0x1d0] sm:$0xff] %v1266_v57  ;;  %v275_v57 = vld [vmem:[%s3666_s4 + $0x2e0] sm:$0xff]  ;;  %v1299_v60 = vsub.f32 %v3673_v1, %v274_v55 }
  0x88   : > { %2291 = vst [vmem:[%s3685_s20 + $0x1d8] sm:$0xff] %v1267_v59  ;;  %v276_v59 = vld [vmem:[%s3666_s4 + $0x2e8] sm:$0xff]  ;;  %v1300_v62 = vsub.f32 %v3673_v1, %v275_v57 }
  0x89   : > { %2292 = vst [vmem:[%s3685_s20 + $0x1e0] sm:$0xff] %v1268_v61  ;;  %v277_v61 = vld [vmem:[%s3666_s4 + $0x2f0] sm:$0xff]  ;;  %v1301_v0 = vsub.f32 %v3673_v1, %v276_v59 }
  0x8a   : > { %2293 = vst [vmem:[%s3685_s20 + $0x1e8] sm:$0xff] %v1269_v63  ;;  %v278_v63 = vld [vmem:[%s3666_s4 + $0x2f8] sm:$0xff]  ;;  %v1302_v3 = vsub.f32 %v3673_v1, %v277_v61 }
  0x8b   : > { %2294 = vst [vmem:[%s3685_s20 + $0x1f0] sm:$0xff] %v1270_v2  ;;  %v279_v2 = vld [vmem:[%s3666_s4 + $0x300] sm:$0xff]  ;;  %v1303_v5 = vsub.f32 %v3673_v1, %v278_v63 }
  0x8c   : > { %2295 = vst [vmem:[%s3685_s20 + $0x1f8] sm:$0xff] %v1271_v4  ;;  %v280_v4 = vld [vmem:[%s3666_s4 + $0x308] sm:$0xff]  ;;  %v1304_v7 = vsub.f32 %v3673_v1, %v279_v2 }
  0x8d   : > { %2296 = vst [vmem:[%s3685_s20 + $0x200] sm:$0xff] %v1272_v6  ;;  %v281_v6 = vld [vmem:[%s3666_s4 + $0x310] sm:$0xff]  ;;  %v1305_v9 = vsub.f32 %v3673_v1, %v280_v4 }
  0x8e   : > { %2297 = vst [vmem:[%s3685_s20 + $0x208] sm:$0xff] %v1273_v8  ;;  %v282_v8 = vld [vmem:[%s3666_s4 + $0x318] sm:$0xff]  ;;  %v1306_v11 = vsub.f32 %v3673_v1, %v281_v6 }
  0x8f   : > { %2298 = vst [vmem:[%s3685_s20 + $0x210] sm:$0xff] %v1274_v10  ;;  %v283_v10 = vld [vmem:[%s3666_s4 + $0x320] sm:$0xff]  ;;  %v1307_v13 = vsub.f32 %v3673_v1, %v282_v8 }
  0x90   : > { %2299 = vst [vmem:[%s3685_s20 + $0x218] sm:$0xff] %v1275_v12  ;;  %v284_v12 = vld [vmem:[%s3666_s4 + $0x328] sm:$0xff]  ;;  %v1308_v15 = vsub.f32 %v3673_v1, %v283_v10 }
  0x91   : > { %2300 = vst [vmem:[%s3685_s20 + $0x220] sm:$0xff] %v1276_v14  ;;  %v285_v14 = vld [vmem:[%s3666_s4 + $0x330] sm:$0xff]  ;;  %v1309_v17 = vsub.f32 %v3673_v1, %v284_v12 }
  0x92   : > { %2301 = vst [vmem:[%s3685_s20 + $0x228] sm:$0xff] %v1277_v16  ;;  %v286_v16 = vld [vmem:[%s3666_s4 + $0x338] sm:$0xff]  ;;  %v1310_v19 = vsub.f32 %v3673_v1, %v285_v14 }
  0x93   : > { %2302 = vst [vmem:[%s3685_s20 + $0x230] sm:$0xff] %v1278_v18  ;;  %v287_v18 = vld [vmem:[%s3666_s4 + $0x340] sm:$0xff]  ;;  %v1311_v21 = vsub.f32 %v3673_v1, %v286_v16 }
  0x94   : > { %2303 = vst [vmem:[%s3685_s20 + $0x238] sm:$0xff] %v1279_v20  ;;  %v288_v20 = vld [vmem:[%s3666_s4 + $0x348] sm:$0xff]  ;;  %v1312_v23 = vsub.f32 %v3673_v1, %v287_v18 }
  0x95   : > { %2304 = vst [vmem:[%s3685_s20 + $0x240] sm:$0xff] %v1280_v22  ;;  %v289_v22 = vld [vmem:[%s3666_s4 + $0x350] sm:$0xff]  ;;  %v1313_v25 = vsub.f32 %v3673_v1, %v288_v20 }
  0x96   : > { %2305 = vst [vmem:[%s3685_s20 + $0x248] sm:$0xff] %v1281_v24  ;;  %v290_v24 = vld [vmem:[%s3666_s4 + $0x358] sm:$0xff]  ;;  %v1314_v27 = vsub.f32 %v3673_v1, %v289_v22 }
  0x97   : > { %2306 = vst [vmem:[%s3685_s20 + $0x250] sm:$0xff] %v1282_v26  ;;  %v291_v26 = vld [vmem:[%s3666_s4 + $0x360] sm:$0xff]  ;;  %v1315_v29 = vsub.f32 %v3673_v1, %v290_v24 }
  0x98   : > { %2307 = vst [vmem:[%s3685_s20 + $0x258] sm:$0xff] %v1283_v28  ;;  %v292_v28 = vld [vmem:[%s3666_s4 + $0x368] sm:$0xff]  ;;  %v1316_v31 = vsub.f32 %v3673_v1, %v291_v26 }
  0x99   : > { %2308 = vst [vmem:[%s3685_s20 + $0x260] sm:$0xff] %v1284_v30  ;;  %v293_v30 = vld [vmem:[%s3666_s4 + $0x370] sm:$0xff]  ;;  %v1317_v33 = vsub.f32 %v3673_v1, %v292_v28 }
  0x9a   : > { %2309 = vst [vmem:[%s3685_s20 + $0x268] sm:$0xff] %v1285_v32  ;;  %v294_v32 = vld [vmem:[%s3666_s4 + $0x378] sm:$0xff]  ;;  %v1318_v35 = vsub.f32 %v3673_v1, %v293_v30 }
  0x9b   : > { %2310 = vst [vmem:[%s3685_s20 + $0x270] sm:$0xff] %v1286_v34  ;;  %v295_v34 = vld [vmem:[%s3666_s4 + $0x380] sm:$0xff]  ;;  %v1319_v37 = vsub.f32 %v3673_v1, %v294_v32 }
  0x9c   : > { %2311 = vst [vmem:[%s3685_s20 + $0x278] sm:$0xff] %v1287_v36  ;;  %v296_v36 = vld [vmem:[%s3666_s4 + $0x388] sm:$0xff]  ;;  %v1320_v39 = vsub.f32 %v3673_v1, %v295_v34 }
  0x9d   : > { %2312 = vst [vmem:[%s3685_s20 + $0x280] sm:$0xff] %v1288_v38  ;;  %v297_v38 = vld [vmem:[%s3666_s4 + $0x390] sm:$0xff]  ;;  %v1321_v41 = vsub.f32 %v3673_v1, %v296_v36 }
  0x9e   : > { %2313 = vst [vmem:[%s3685_s20 + $0x288] sm:$0xff] %v1289_v40  ;;  %v298_v40 = vld [vmem:[%s3666_s4 + $0x398] sm:$0xff]  ;;  %v1322_v43 = vsub.f32 %v3673_v1, %v297_v38 }
  0x9f   : > { %2314 = vst [vmem:[%s3685_s20 + $0x290] sm:$0xff] %v1290_v42  ;;  %v299_v42 = vld [vmem:[%s3666_s4 + $0x3a0] sm:$0xff]  ;;  %v1323_v45 = vsub.f32 %v3673_v1, %v298_v40 }
  0xa0   : > { %2315 = vst [vmem:[%s3685_s20 + $0x298] sm:$0xff] %v1291_v44  ;;  %v300_v44 = vld [vmem:[%s3666_s4 + $0x3a8] sm:$0xff]  ;;  %v1324_v47 = vsub.f32 %v3673_v1, %v299_v42 }
  0xa1   : > { %2316 = vst [vmem:[%s3685_s20 + $0x2a0] sm:$0xff] %v1292_v46  ;;  %v301_v46 = vld [vmem:[%s3666_s4 + $0x3b0] sm:$0xff]  ;;  %v1325_v49 = vsub.f32 %v3673_v1, %v300_v44 }
  0xa2   : > { %2317 = vst [vmem:[%s3685_s20 + $0x2a8] sm:$0xff] %v1293_v48  ;;  %v302_v48 = vld [vmem:[%s3666_s4 + $0x3b8] sm:$0xff]  ;;  %v1326_v51 = vsub.f32 %v3673_v1, %v301_v46 }
  0xa3   : > { %2318 = vst [vmem:[%s3685_s20 + $0x2b0] sm:$0xff] %v1294_v50  ;;  %v303_v50 = vld [vmem:[%s3666_s4 + $0x3c0] sm:$0xff]  ;;  %v1327_v53 = vsub.f32 %v3673_v1, %v302_v48 }
  0xa4   : > { %2319 = vst [vmem:[%s3685_s20 + $0x2b8] sm:$0xff] %v1295_v52  ;;  %v304_v52 = vld [vmem:[%s3666_s4 + $0x3c8] sm:$0xff]  ;;  %v1328_v55 = vsub.f32 %v3673_v1, %v303_v50 }
  0xa5   : > { %2320 = vst [vmem:[%s3685_s20 + $0x2c0] sm:$0xff] %v1296_v54  ;;  %v305_v54 = vld [vmem:[%s3666_s4 + $0x3d0] sm:$0xff]  ;;  %v1329_v57 = vsub.f32 %v3673_v1, %v304_v52 }
  0xa6   : > { %2321 = vst [vmem:[%s3685_s20 + $0x2c8] sm:$0xff] %v1297_v56  ;;  %v306_v56 = vld [vmem:[%s3666_s4 + $0x3d8] sm:$0xff]  ;;  %v1330_v59 = vsub.f32 %v3673_v1, %v305_v54 }
  0xa7   : > { %2322 = vst [vmem:[%s3685_s20 + $0x2d0] sm:$0xff] %v1298_v58  ;;  %v307_v58 = vld [vmem:[%s3666_s4 + $0x3e0] sm:$0xff]  ;;  %v1331_v61 = vsub.f32 %v3673_v1, %v306_v56 }
  0xa8   : > { %2323 = vst [vmem:[%s3685_s20 + $0x2d8] sm:$0xff] %v1299_v60  ;;  %v308_v60 = vld [vmem:[%s3666_s4 + $0x3e8] sm:$0xff]  ;;  %v1332_v63 = vsub.f32 %v3673_v1, %v307_v58 }
  0xa9   : > { %2324 = vst [vmem:[%s3685_s20 + $0x2e0] sm:$0xff] %v1300_v62  ;;  %v309_v62 = vld [vmem:[%s3666_s4 + $0x3f0] sm:$0xff]  ;;  %v1333_v2 = vsub.f32 %v3673_v1, %v308_v60 }
  0xaa   : > { %2325 = vst [vmem:[%s3685_s20 + $0x2e8] sm:$0xff] %v1301_v0  ;;  %v310_v0 = vld [vmem:[%s3666_s4 + $0x3f8] sm:$0xff]  ;;  %v1334_v4 = vsub.f32 %v3673_v1, %v309_v62 }
  0xab   : > { %2326 = vst [vmem:[%s3685_s20 + $0x2f0] sm:$0xff] %v1302_v3  ;;  %v311_v3 = vld [vmem:[%s3666_s4 + $0x400] sm:$0xff]  ;;  %v1335_v6 = vsub.f32 %v3673_v1, %v310_v0 }
  0xac   : > { %2327 = vst [vmem:[%s3685_s20 + $0x2f8] sm:$0xff] %v1303_v5  ;;  %v312_v5 = vld [vmem:[%s3666_s4 + $0x408] sm:$0xff]  ;;  %v1336_v8 = vsub.f32 %v3673_v1, %v311_v3 }
  0xad   : > { %2328 = vst [vmem:[%s3685_s20 + $0x300] sm:$0xff] %v1304_v7  ;;  %v313_v7 = vld [vmem:[%s3666_s4 + $0x410] sm:$0xff]  ;;  %v1337_v10 = vsub.f32 %v3673_v1, %v312_v5 }
  0xae   : > { %2329 = vst [vmem:[%s3685_s20 + $0x308] sm:$0xff] %v1305_v9  ;;  %v314_v9 = vld [vmem:[%s3666_s4 + $0x418] sm:$0xff]  ;;  %v1338_v12 = vsub.f32 %v3673_v1, %v313_v7 }
  0xaf   : > { %2330 = vst [vmem:[%s3685_s20 + $0x310] sm:$0xff] %v1306_v11  ;;  %v315_v11 = vld [vmem:[%s3666_s4 + $0x420] sm:$0xff]  ;;  %v1339_v14 = vsub.f32 %v3673_v1, %v314_v9 }
  0xb0   : > { %2331 = vst [vmem:[%s3685_s20 + $0x318] sm:$0xff] %v1307_v13  ;;  %v316_v13 = vld [vmem:[%s3666_s4 + $0x428] sm:$0xff]  ;;  %v1340_v16 = vsub.f32 %v3673_v1, %v315_v11 }
  0xb1   : > { %2332 = vst [vmem:[%s3685_s20 + $0x320] sm:$0xff] %v1308_v15  ;;  %v317_v15 = vld [vmem:[%s3666_s4 + $0x430] sm:$0xff]  ;;  %v1341_v18 = vsub.f32 %v3673_v1, %v316_v13 }
  0xb2   : > { %2333 = vst [vmem:[%s3685_s20 + $0x328] sm:$0xff] %v1309_v17  ;;  %v318_v17 = vld [vmem:[%s3666_s4 + $0x438] sm:$0xff]  ;;  %v1342_v20 = vsub.f32 %v3673_v1, %v317_v15 }
  0xb3   : > { %2334 = vst [vmem:[%s3685_s20 + $0x330] sm:$0xff] %v1310_v19  ;;  %v319_v19 = vld [vmem:[%s3666_s4 + $0x440] sm:$0xff]  ;;  %v1343_v22 = vsub.f32 %v3673_v1, %v318_v17 }
  0xb4   : > { %2335 = vst [vmem:[%s3685_s20 + $0x338] sm:$0xff] %v1311_v21  ;;  %v320_v21 = vld [vmem:[%s3666_s4 + $0x448] sm:$0xff]  ;;  %v1344_v24 = vsub.f32 %v3673_v1, %v319_v19 }
  0xb5   : > { %2336 = vst [vmem:[%s3685_s20 + $0x340] sm:$0xff] %v1312_v23  ;;  %v321_v23 = vld [vmem:[%s3666_s4 + $0x450] sm:$0xff]  ;;  %v1345_v26 = vsub.f32 %v3673_v1, %v320_v21 }
  0xb6   : > { %2337 = vst [vmem:[%s3685_s20 + $0x348] sm:$0xff] %v1313_v25  ;;  %v322_v25 = vld [vmem:[%s3666_s4 + $0x458] sm:$0xff]  ;;  %v1346_v28 = vsub.f32 %v3673_v1, %v321_v23 }
  0xb7   : > { %2338 = vst [vmem:[%s3685_s20 + $0x350] sm:$0xff] %v1314_v27  ;;  %v323_v27 = vld [vmem:[%s3666_s4 + $0x460] sm:$0xff]  ;;  %v1347_v30 = vsub.f32 %v3673_v1, %v322_v25 }
  0xb8   : > { %2339 = vst [vmem:[%s3685_s20 + $0x358] sm:$0xff] %v1315_v29  ;;  %v324_v29 = vld [vmem:[%s3666_s4 + $0x468] sm:$0xff]  ;;  %v1348_v32 = vsub.f32 %v3673_v1, %v323_v27 }
  0xb9   : > { %2340 = vst [vmem:[%s3685_s20 + $0x360] sm:$0xff] %v1316_v31  ;;  %v325_v31 = vld [vmem:[%s3666_s4 + $0x470] sm:$0xff]  ;;  %v1349_v34 = vsub.f32 %v3673_v1, %v324_v29 }
  0xba   : > { %2341 = vst [vmem:[%s3685_s20 + $0x368] sm:$0xff] %v1317_v33  ;;  %v326_v33 = vld [vmem:[%s3666_s4 + $0x478] sm:$0xff]  ;;  %v1350_v36 = vsub.f32 %v3673_v1, %v325_v31 }
  0xbb   : > { %2342 = vst [vmem:[%s3685_s20 + $0x370] sm:$0xff] %v1318_v35  ;;  %v327_v35 = vld [vmem:[%s3666_s4 + $0x480] sm:$0xff]  ;;  %v1351_v38 = vsub.f32 %v3673_v1, %v326_v33 }
  0xbc   : > { %2343 = vst [vmem:[%s3685_s20 + $0x378] sm:$0xff] %v1319_v37  ;;  %v328_v37 = vld [vmem:[%s3666_s4 + $0x488] sm:$0xff]  ;;  %v1352_v40 = vsub.f32 %v3673_v1, %v327_v35 }
  0xbd   : > { %2344 = vst [vmem:[%s3685_s20 + $0x380] sm:$0xff] %v1320_v39  ;;  %v329_v39 = vld [vmem:[%s3666_s4 + $0x490] sm:$0xff]  ;;  %v1353_v42 = vsub.f32 %v3673_v1, %v328_v37 }
  0xbe   : > { %2345 = vst [vmem:[%s3685_s20 + $0x388] sm:$0xff] %v1321_v41  ;;  %v330_v41 = vld [vmem:[%s3666_s4 + $0x498] sm:$0xff]  ;;  %v1354_v44 = vsub.f32 %v3673_v1, %v329_v39 }
  0xbf   : > { %2346 = vst [vmem:[%s3685_s20 + $0x390] sm:$0xff] %v1322_v43  ;;  %v331_v43 = vld [vmem:[%s3666_s4 + $0x4a0] sm:$0xff]  ;;  %v1355_v46 = vsub.f32 %v3673_v1, %v330_v41 }
  0xc0   : > { %2347 = vst [vmem:[%s3685_s20 + $0x398] sm:$0xff] %v1323_v45  ;;  %v332_v45 = vld [vmem:[%s3666_s4 + $0x4a8] sm:$0xff]  ;;  %v1356_v48 = vsub.f32 %v3673_v1, %v331_v43 }
  0xc1   : > { %2348 = vst [vmem:[%s3685_s20 + $0x3a0] sm:$0xff] %v1324_v47  ;;  %v333_v47 = vld [vmem:[%s3666_s4 + $0x4b0] sm:$0xff]  ;;  %v1357_v50 = vsub.f32 %v3673_v1, %v332_v45 }
  0xc2   : > { %2349 = vst [vmem:[%s3685_s20 + $0x3a8] sm:$0xff] %v1325_v49  ;;  %v334_v49 = vld [vmem:[%s3666_s4 + $0x4b8] sm:$0xff]  ;;  %v1358_v52 = vsub.f32 %v3673_v1, %v333_v47 }
  0xc3   : > { %2350 = vst [vmem:[%s3685_s20 + $0x3b0] sm:$0xff] %v1326_v51  ;;  %v335_v51 = vld [vmem:[%s3666_s4 + $0x4c0] sm:$0xff]  ;;  %v1359_v54 = vsub.f32 %v3673_v1, %v334_v49 }
  0xc4   : > { %2351 = vst [vmem:[%s3685_s20 + $0x3b8] sm:$0xff] %v1327_v53  ;;  %v336_v53 = vld [vmem:[%s3666_s4 + $0x4c8] sm:$0xff]  ;;  %v1360_v56 = vsub.f32 %v3673_v1, %v335_v51 }
  0xc5   : > { %2352 = vst [vmem:[%s3685_s20 + $0x3c0] sm:$0xff] %v1328_v55  ;;  %v337_v55 = vld [vmem:[%s3666_s4 + $0x4d0] sm:$0xff]  ;;  %v1361_v58 = vsub.f32 %v3673_v1, %v336_v53 }
  0xc6   : > { %2353 = vst [vmem:[%s3685_s20 + $0x3c8] sm:$0xff] %v1329_v57  ;;  %v338_v57 = vld [vmem:[%s3666_s4 + $0x4d8] sm:$0xff]  ;;  %v1362_v60 = vsub.f32 %v3673_v1, %v337_v55 }
  0xc7   : > { %2354 = vst [vmem:[%s3685_s20 + $0x3d0] sm:$0xff] %v1330_v59  ;;  %v339_v59 = vld [vmem:[%s3666_s4 + $0x4e0] sm:$0xff]  ;;  %v1363_v62 = vsub.f32 %v3673_v1, %v338_v57 }
  0xc8   : > { %2355 = vst [vmem:[%s3685_s20 + $0x3d8] sm:$0xff] %v1331_v61  ;;  %v340_v61 = vld [vmem:[%s3666_s4 + $0x4e8] sm:$0xff]  ;;  %v1364_v0 = vsub.f32 %v3673_v1, %v339_v59 }
  0xc9   : > { %2356 = vst [vmem:[%s3685_s20 + $0x3e0] sm:$0xff] %v1332_v63  ;;  %v341_v63 = vld [vmem:[%s3666_s4 + $0x4f0] sm:$0xff]  ;;  %v1365_v3 = vsub.f32 %v3673_v1, %v340_v61 }
  0xca   : > { %2357 = vst [vmem:[%s3685_s20 + $0x3e8] sm:$0xff] %v1333_v2  ;;  %v342_v2 = vld [vmem:[%s3666_s4 + $0x4f8] sm:$0xff]  ;;  %v1366_v5 = vsub.f32 %v3673_v1, %v341_v63 }
  0xcb   : > { %2358 = vst [vmem:[%s3685_s20 + $0x3f0] sm:$0xff] %v1334_v4  ;;  %v343_v4 = vld [vmem:[%s3666_s4 + $0x500] sm:$0xff]  ;;  %v1367_v7 = vsub.f32 %v3673_v1, %v342_v2 }
  0xcc   : > { %2359 = vst [vmem:[%s3685_s20 + $0x3f8] sm:$0xff] %v1335_v6  ;;  %v344_v6 = vld [vmem:[%s3666_s4 + $0x508] sm:$0xff]  ;;  %v1368_v9 = vsub.f32 %v3673_v1, %v343_v4 }
  0xcd   : > { %2360 = vst [vmem:[%s3685_s20 + $0x400] sm:$0xff] %v1336_v8  ;;  %v345_v8 = vld [vmem:[%s3666_s4 + $0x510] sm:$0xff]  ;;  %v1369_v11 = vsub.f32 %v3673_v1, %v344_v6 }
  0xce   : > { %2361 = vst [vmem:[%s3685_s20 + $0x408] sm:$0xff] %v1337_v10  ;;  %v346_v10 = vld [vmem:[%s3666_s4 + $0x518] sm:$0xff]  ;;  %v1370_v13 = vsub.f32 %v3673_v1, %v345_v8 }
  0xcf   : > { %2362 = vst [vmem:[%s3685_s20 + $0x410] sm:$0xff] %v1338_v12  ;;  %v347_v12 = vld [vmem:[%s3666_s4 + $0x520] sm:$0xff]  ;;  %v1371_v15 = vsub.f32 %v3673_v1, %v346_v10 }
  0xd0   : > { %2363 = vst [vmem:[%s3685_s20 + $0x418] sm:$0xff] %v1339_v14  ;;  %v348_v14 = vld [vmem:[%s3666_s4 + $0x528] sm:$0xff]  ;;  %v1372_v17 = vsub.f32 %v3673_v1, %v347_v12 }
  0xd1   : > { %2364 = vst [vmem:[%s3685_s20 + $0x420] sm:$0xff] %v1340_v16  ;;  %v349_v16 = vld [vmem:[%s3666_s4 + $0x530] sm:$0xff]  ;;  %v1373_v19 = vsub.f32 %v3673_v1, %v348_v14 }
  0xd2   : > { %2365 = vst [vmem:[%s3685_s20 + $0x428] sm:$0xff] %v1341_v18  ;;  %v350_v18 = vld [vmem:[%s3666_s4 + $0x538] sm:$0xff]  ;;  %v1374_v21 = vsub.f32 %v3673_v1, %v349_v16 }
  0xd3   : > { %2366 = vst [vmem:[%s3685_s20 + $0x430] sm:$0xff] %v1342_v20  ;;  %v351_v20 = vld [vmem:[%s3666_s4 + $0x540] sm:$0xff]  ;;  %v1375_v23 = vsub.f32 %v3673_v1, %v350_v18 }
  0xd4   : > { %2367 = vst [vmem:[%s3685_s20 + $0x438] sm:$0xff] %v1343_v22  ;;  %v352_v22 = vld [vmem:[%s3666_s4 + $0x548] sm:$0xff]  ;;  %v1376_v25 = vsub.f32 %v3673_v1, %v351_v20 }
  0xd5   : > { %2368 = vst [vmem:[%s3685_s20 + $0x440] sm:$0xff] %v1344_v24  ;;  %v353_v24 = vld [vmem:[%s3666_s4 + $0x550] sm:$0xff]  ;;  %v1377_v27 = vsub.f32 %v3673_v1, %v352_v22 }
  0xd6   : > { %2369 = vst [vmem:[%s3685_s20 + $0x448] sm:$0xff] %v1345_v26  ;;  %v354_v26 = vld [vmem:[%s3666_s4 + $0x558] sm:$0xff]  ;;  %v1378_v29 = vsub.f32 %v3673_v1, %v353_v24 }
  0xd7   : > { %2370 = vst [vmem:[%s3685_s20 + $0x450] sm:$0xff] %v1346_v28  ;;  %v355_v28 = vld [vmem:[%s3666_s4 + $0x560] sm:$0xff]  ;;  %v1379_v31 = vsub.f32 %v3673_v1, %v354_v26 }
  0xd8   : > { %2371 = vst [vmem:[%s3685_s20 + $0x458] sm:$0xff] %v1347_v30  ;;  %v356_v30 = vld [vmem:[%s3666_s4 + $0x568] sm:$0xff]  ;;  %v1380_v33 = vsub.f32 %v3673_v1, %v355_v28 }
  0xd9   : > { %2372 = vst [vmem:[%s3685_s20 + $0x460] sm:$0xff] %v1348_v32  ;;  %v357_v32 = vld [vmem:[%s3666_s4 + $0x570] sm:$0xff]  ;;  %v1381_v35 = vsub.f32 %v3673_v1, %v356_v30 }
  0xda   : > { %2373 = vst [vmem:[%s3685_s20 + $0x468] sm:$0xff] %v1349_v34  ;;  %v358_v34 = vld [vmem:[%s3666_s4 + $0x578] sm:$0xff]  ;;  %v1382_v37 = vsub.f32 %v3673_v1, %v357_v32 }
  0xdb   : > { %2374 = vst [vmem:[%s3685_s20 + $0x470] sm:$0xff] %v1350_v36  ;;  %v359_v36 = vld [vmem:[%s3666_s4 + $0x580] sm:$0xff]  ;;  %v1383_v39 = vsub.f32 %v3673_v1, %v358_v34 }
  0xdc   : > { %2375 = vst [vmem:[%s3685_s20 + $0x478] sm:$0xff] %v1351_v38  ;;  %v360_v38 = vld [vmem:[%s3666_s4 + $0x588] sm:$0xff]  ;;  %v1384_v41 = vsub.f32 %v3673_v1, %v359_v36 }
  0xdd   : > { %2376 = vst [vmem:[%s3685_s20 + $0x480] sm:$0xff] %v1352_v40  ;;  %v361_v40 = vld [vmem:[%s3666_s4 + $0x590] sm:$0xff]  ;;  %v1385_v43 = vsub.f32 %v3673_v1, %v360_v38 }
  0xde   : > { %2377 = vst [vmem:[%s3685_s20 + $0x488] sm:$0xff] %v1353_v42  ;;  %v362_v42 = vld [vmem:[%s3666_s4 + $0x598] sm:$0xff]  ;;  %v1386_v45 = vsub.f32 %v3673_v1, %v361_v40 }
  0xdf   : > { %2378 = vst [vmem:[%s3685_s20 + $0x490] sm:$0xff] %v1354_v44  ;;  %v363_v44 = vld [vmem:[%s3666_s4 + $0x5a0] sm:$0xff]  ;;  %v1387_v47 = vsub.f32 %v3673_v1, %v362_v42 }
  0xe0   : > { %2379 = vst [vmem:[%s3685_s20 + $0x498] sm:$0xff] %v1355_v46  ;;  %v364_v46 = vld [vmem:[%s3666_s4 + $0x5a8] sm:$0xff]  ;;  %v1388_v49 = vsub.f32 %v3673_v1, %v363_v44 }
  0xe1   : > { %2380 = vst [vmem:[%s3685_s20 + $0x4a0] sm:$0xff] %v1356_v48  ;;  %v365_v48 = vld [vmem:[%s3666_s4 + $0x5b0] sm:$0xff]  ;;  %v1389_v51 = vsub.f32 %v3673_v1, %v364_v46 }
  0xe2   : > { %2381 = vst [vmem:[%s3685_s20 + $0x4a8] sm:$0xff] %v1357_v50  ;;  %v366_v50 = vld [vmem:[%s3666_s4 + $0x5b8] sm:$0xff]  ;;  %v1390_v53 = vsub.f32 %v3673_v1, %v365_v48 }
  0xe3   : > { %2382 = vst [vmem:[%s3685_s20 + $0x4b0] sm:$0xff] %v1358_v52  ;;  %v367_v52 = vld [vmem:[%s3666_s4 + $0x5c0] sm:$0xff]  ;;  %v1391_v55 = vsub.f32 %v3673_v1, %v366_v50 }
  0xe4   : > { %2383 = vst [vmem:[%s3685_s20 + $0x4b8] sm:$0xff] %v1359_v54  ;;  %v368_v54 = vld [vmem:[%s3666_s4 + $0x5c8] sm:$0xff]  ;;  %v1392_v57 = vsub.f32 %v3673_v1, %v367_v52 }
  0xe5   : > { %2384 = vst [vmem:[%s3685_s20 + $0x4c0] sm:$0xff] %v1360_v56  ;;  %v369_v56 = vld [vmem:[%s3666_s4 + $0x5d0] sm:$0xff]  ;;  %v1393_v59 = vsub.f32 %v3673_v1, %v368_v54 }
  0xe6   : > { %2385 = vst [vmem:[%s3685_s20 + $0x4c8] sm:$0xff] %v1361_v58  ;;  %v370_v58 = vld [vmem:[%s3666_s4 + $0x5d8] sm:$0xff]  ;;  %v1394_v61 = vsub.f32 %v3673_v1, %v369_v56 }
  0xe7   : > { %2386 = vst [vmem:[%s3685_s20 + $0x4d0] sm:$0xff] %v1362_v60  ;;  %v371_v60 = vld [vmem:[%s3666_s4 + $0x5e0] sm:$0xff]  ;;  %v1395_v63 = vsub.f32 %v3673_v1, %v370_v58 }
  0xe8   : > { %2387 = vst [vmem:[%s3685_s20 + $0x4d8] sm:$0xff] %v1363_v62  ;;  %v372_v62 = vld [vmem:[%s3666_s4 + $0x5e8] sm:$0xff]  ;;  %v1396_v2 = vsub.f32 %v3673_v1, %v371_v60 }
  0xe9   : > { %2388 = vst [vmem:[%s3685_s20 + $0x4e0] sm:$0xff] %v1364_v0  ;;  %v373_v0 = vld [vmem:[%s3666_s4 + $0x5f0] sm:$0xff]  ;;  %v1397_v4 = vsub.f32 %v3673_v1, %v372_v62 }
  0xea   : > { %2389 = vst [vmem:[%s3685_s20 + $0x4e8] sm:$0xff] %v1365_v3  ;;  %v374_v3 = vld [vmem:[%s3666_s4 + $0x5f8] sm:$0xff]  ;;  %v1398_v6 = vsub.f32 %v3673_v1, %v373_v0 }
  0xeb   : > { %2390 = vst [vmem:[%s3685_s20 + $0x4f0] sm:$0xff] %v1366_v5  ;;  %v375_v5 = vld [vmem:[%s3666_s4 + $0x600] sm:$0xff]  ;;  %v1399_v8 = vsub.f32 %v3673_v1, %v374_v3 }
  0xec   : > { %2391 = vst [vmem:[%s3685_s20 + $0x4f8] sm:$0xff] %v1367_v7  ;;  %v376_v7 = vld [vmem:[%s3666_s4 + $0x608] sm:$0xff]  ;;  %v1400_v10 = vsub.f32 %v3673_v1, %v375_v5 }
  0xed   : > { %2392 = vst [vmem:[%s3685_s20 + $0x500] sm:$0xff] %v1368_v9  ;;  %v377_v9 = vld [vmem:[%s3666_s4 + $0x610] sm:$0xff]  ;;  %v1401_v12 = vsub.f32 %v3673_v1, %v376_v7 }
  0xee   : > { %2393 = vst [vmem:[%s3685_s20 + $0x508] sm:$0xff] %v1369_v11  ;;  %v378_v11 = vld [vmem:[%s3666_s4 + $0x618] sm:$0xff]  ;;  %v1402_v14 = vsub.f32 %v3673_v1, %v377_v9 }
  0xef   : > { %2394 = vst [vmem:[%s3685_s20 + $0x510] sm:$0xff] %v1370_v13  ;;  %v379_v13 = vld [vmem:[%s3666_s4 + $0x620] sm:$0xff]  ;;  %v1403_v16 = vsub.f32 %v3673_v1, %v378_v11 }
  0xf0   : > { %2395 = vst [vmem:[%s3685_s20 + $0x518] sm:$0xff] %v1371_v15  ;;  %v380_v15 = vld [vmem:[%s3666_s4 + $0x628] sm:$0xff]  ;;  %v1404_v18 = vsub.f32 %v3673_v1, %v379_v13 }
  0xf1   : > { %2396 = vst [vmem:[%s3685_s20 + $0x520] sm:$0xff] %v1372_v17  ;;  %v381_v17 = vld [vmem:[%s3666_s4 + $0x630] sm:$0xff]  ;;  %v1405_v20 = vsub.f32 %v3673_v1, %v380_v15 }
  0xf2   : > { %2397 = vst [vmem:[%s3685_s20 + $0x528] sm:$0xff] %v1373_v19  ;;  %v382_v19 = vld [vmem:[%s3666_s4 + $0x638] sm:$0xff]  ;;  %v1406_v22 = vsub.f32 %v3673_v1, %v381_v17 }
  0xf3   : > { %2398 = vst [vmem:[%s3685_s20 + $0x530] sm:$0xff] %v1374_v21  ;;  %v383_v21 = vld [vmem:[%s3666_s4 + $0x640] sm:$0xff]  ;;  %v1407_v24 = vsub.f32 %v3673_v1, %v382_v19 }
  0xf4   : > { %2399 = vst [vmem:[%s3685_s20 + $0x538] sm:$0xff] %v1375_v23  ;;  %v384_v23 = vld [vmem:[%s3666_s4 + $0x648] sm:$0xff]  ;;  %v1408_v26 = vsub.f32 %v3673_v1, %v383_v21 }
  0xf5   : > { %2400 = vst [vmem:[%s3685_s20 + $0x540] sm:$0xff] %v1376_v25  ;;  %v385_v25 = vld [vmem:[%s3666_s4 + $0x650] sm:$0xff]  ;;  %v1409_v28 = vsub.f32 %v3673_v1, %v384_v23 }
  0xf6   : > { %2401 = vst [vmem:[%s3685_s20 + $0x548] sm:$0xff] %v1377_v27  ;;  %v386_v27 = vld [vmem:[%s3666_s4 + $0x658] sm:$0xff]  ;;  %v1410_v30 = vsub.f32 %v3673_v1, %v385_v25 }
  0xf7   : > { %2402 = vst [vmem:[%s3685_s20 + $0x550] sm:$0xff] %v1378_v29  ;;  %v387_v29 = vld [vmem:[%s3666_s4 + $0x660] sm:$0xff]  ;;  %v1411_v32 = vsub.f32 %v3673_v1, %v386_v27 }
  0xf8   : > { %2403 = vst [vmem:[%s3685_s20 + $0x558] sm:$0xff] %v1379_v31  ;;  %v388_v31 = vld [vmem:[%s3666_s4 + $0x668] sm:$0xff]  ;;  %v1412_v34 = vsub.f32 %v3673_v1, %v387_v29 }
  0xf9   : > { %2404 = vst [vmem:[%s3685_s20 + $0x560] sm:$0xff] %v1380_v33  ;;  %v389_v33 = vld [vmem:[%s3666_s4 + $0x670] sm:$0xff]  ;;  %v1413_v36 = vsub.f32 %v3673_v1, %v388_v31 }
  0xfa   : > { %2405 = vst [vmem:[%s3685_s20 + $0x568] sm:$0xff] %v1381_v35  ;;  %v390_v35 = vld [vmem:[%s3666_s4 + $0x678] sm:$0xff]  ;;  %v1414_v38 = vsub.f32 %v3673_v1, %v389_v33 }
  0xfb   : > { %2406 = vst [vmem:[%s3685_s20 + $0x570] sm:$0xff] %v1382_v37  ;;  %v391_v37 = vld [vmem:[%s3666_s4 + $0x680] sm:$0xff]  ;;  %v1415_v40 = vsub.f32 %v3673_v1, %v390_v35 }
  0xfc   : > { %2407 = vst [vmem:[%s3685_s20 + $0x578] sm:$0xff] %v1383_v39  ;;  %v392_v39 = vld [vmem:[%s3666_s4 + $0x688] sm:$0xff]  ;;  %v1416_v42 = vsub.f32 %v3673_v1, %v391_v37 }
  0xfd   : > { %2408 = vst [vmem:[%s3685_s20 + $0x580] sm:$0xff] %v1384_v41  ;;  %v393_v41 = vld [vmem:[%s3666_s4 + $0x690] sm:$0xff]  ;;  %v1417_v44 = vsub.f32 %v3673_v1, %v392_v39 }
  0xfe   : > { %2409 = vst [vmem:[%s3685_s20 + $0x588] sm:$0xff] %v1385_v43  ;;  %v394_v43 = vld [vmem:[%s3666_s4 + $0x698] sm:$0xff]  ;;  %v1418_v46 = vsub.f32 %v3673_v1, %v393_v41 }
  0xff   : > { %2410 = vst [vmem:[%s3685_s20 + $0x590] sm:$0xff] %v1386_v45  ;;  %v395_v45 = vld [vmem:[%s3666_s4 + $0x6a0] sm:$0xff]  ;;  %v1419_v48 = vsub.f32 %v3673_v1, %v394_v43 }
 0x100   : > { %2411 = vst [vmem:[%s3685_s20 + $0x598] sm:$0xff] %v1387_v47  ;;  %v396_v47 = vld [vmem:[%s3666_s4 + $0x6a8] sm:$0xff]  ;;  %v1420_v50 = vsub.f32 %v3673_v1, %v395_v45 }
 0x101   : > { %2412 = vst [vmem:[%s3685_s20 + $0x5a0] sm:$0xff] %v1388_v49  ;;  %v397_v49 = vld [vmem:[%s3666_s4 + $0x6b0] sm:$0xff]  ;;  %v1421_v52 = vsub.f32 %v3673_v1, %v396_v47 }
 0x102   : > { %2413 = vst [vmem:[%s3685_s20 + $0x5a8] sm:$0xff] %v1389_v51  ;;  %v398_v51 = vld [vmem:[%s3666_s4 + $0x6b8] sm:$0xff]  ;;  %v1422_v54 = vsub.f32 %v3673_v1, %v397_v49 }
 0x103   : > { %2414 = vst [vmem:[%s3685_s20 + $0x5b0] sm:$0xff] %v1390_v53  ;;  %v399_v53 = vld [vmem:[%s3666_s4 + $0x6c0] sm:$0xff]  ;;  %v1423_v56 = vsub.f32 %v3673_v1, %v398_v51 }
 0x104   : > { %2415 = vst [vmem:[%s3685_s20 + $0x5b8] sm:$0xff] %v1391_v55  ;;  %v400_v55 = vld [vmem:[%s3666_s4 + $0x6c8] sm:$0xff]  ;;  %v1424_v58 = vsub.f32 %v3673_v1, %v399_v53 }
 0x105   : > { %2416 = vst [vmem:[%s3685_s20 + $0x5c0] sm:$0xff] %v1392_v57  ;;  %v401_v57 = vld [vmem:[%s3666_s4 + $0x6d0] sm:$0xff]  ;;  %v1425_v60 = vsub.f32 %v3673_v1, %v400_v55 }
 0x106   : > { %2417 = vst [vmem:[%s3685_s20 + $0x5c8] sm:$0xff] %v1393_v59  ;;  %v402_v59 = vld [vmem:[%s3666_s4 + $0x6d8] sm:$0xff]  ;;  %v1426_v62 = vsub.f32 %v3673_v1, %v401_v57 }
 0x107   : > { %2418 = vst [vmem:[%s3685_s20 + $0x5d0] sm:$0xff] %v1394_v61  ;;  %v403_v61 = vld [vmem:[%s3666_s4 + $0x6e0] sm:$0xff]  ;;  %v1427_v0 = vsub.f32 %v3673_v1, %v402_v59 }
 0x108   : > { %2419 = vst [vmem:[%s3685_s20 + $0x5d8] sm:$0xff] %v1395_v63  ;;  %v404_v63 = vld [vmem:[%s3666_s4 + $0x6e8] sm:$0xff]  ;;  %v1428_v3 = vsub.f32 %v3673_v1, %v403_v61 }
 0x109   : > { %2420 = vst [vmem:[%s3685_s20 + $0x5e0] sm:$0xff] %v1396_v2  ;;  %v405_v2 = vld [vmem:[%s3666_s4 + $0x6f0] sm:$0xff]  ;;  %v1429_v5 = vsub.f32 %v3673_v1, %v404_v63 }
 0x10a   : > { %2421 = vst [vmem:[%s3685_s20 + $0x5e8] sm:$0xff] %v1397_v4  ;;  %v406_v4 = vld [vmem:[%s3666_s4 + $0x6f8] sm:$0xff]  ;;  %v1430_v7 = vsub.f32 %v3673_v1, %v405_v2 }
 0x10b   : > { %2422 = vst [vmem:[%s3685_s20 + $0x5f0] sm:$0xff] %v1398_v6  ;;  %v407_v6 = vld [vmem:[%s3666_s4 + $0x700] sm:$0xff]  ;;  %v1431_v9 = vsub.f32 %v3673_v1, %v406_v4 }
 0x10c   : > { %2423 = vst [vmem:[%s3685_s20 + $0x5f8] sm:$0xff] %v1399_v8  ;;  %v408_v8 = vld [vmem:[%s3666_s4 + $0x708] sm:$0xff]  ;;  %v1432_v11 = vsub.f32 %v3673_v1, %v407_v6 }
 0x10d   : > { %2424 = vst [vmem:[%s3685_s20 + $0x600] sm:$0xff] %v1400_v10  ;;  %v409_v10 = vld [vmem:[%s3666_s4 + $0x710] sm:$0xff]  ;;  %v1433_v13 = vsub.f32 %v3673_v1, %v408_v8 }
 0x10e   : > { %2425 = vst [vmem:[%s3685_s20 + $0x608] sm:$0xff] %v1401_v12  ;;  %v410_v12 = vld [vmem:[%s3666_s4 + $0x718] sm:$0xff]  ;;  %v1434_v15 = vsub.f32 %v3673_v1, %v409_v10 }
 0x10f   : > { %2426 = vst [vmem:[%s3685_s20 + $0x610] sm:$0xff] %v1402_v14  ;;  %v411_v14 = vld [vmem:[%s3666_s4 + $0x720] sm:$0xff]  ;;  %v1435_v17 = vsub.f32 %v3673_v1, %v410_v12 }
 0x110   : > { %2427 = vst [vmem:[%s3685_s20 + $0x618] sm:$0xff] %v1403_v16  ;;  %v412_v16 = vld [vmem:[%s3666_s4 + $0x728] sm:$0xff]  ;;  %v1436_v19 = vsub.f32 %v3673_v1, %v411_v14 }
 0x111   : > { %2428 = vst [vmem:[%s3685_s20 + $0x620] sm:$0xff] %v1404_v18  ;;  %v413_v18 = vld [vmem:[%s3666_s4 + $0x730] sm:$0xff]  ;;  %v1437_v21 = vsub.f32 %v3673_v1, %v412_v16 }
 0x112   : > { %2429 = vst [vmem:[%s3685_s20 + $0x628] sm:$0xff] %v1405_v20  ;;  %v414_v20 = vld [vmem:[%s3666_s4 + $0x738] sm:$0xff]  ;;  %v1438_v23 = vsub.f32 %v3673_v1, %v413_v18 }
 0x113   : > { %2430 = vst [vmem:[%s3685_s20 + $0x630] sm:$0xff] %v1406_v22  ;;  %v415_v22 = vld [vmem:[%s3666_s4 + $0x740] sm:$0xff]  ;;  %v1439_v25 = vsub.f32 %v3673_v1, %v414_v20 }
 0x114   : > { %2431 = vst [vmem:[%s3685_s20 + $0x638] sm:$0xff] %v1407_v24  ;;  %v416_v24 = vld [vmem:[%s3666_s4 + $0x748] sm:$0xff]  ;;  %v1440_v27 = vsub.f32 %v3673_v1, %v415_v22 }
 0x115   : > { %2432 = vst [vmem:[%s3685_s20 + $0x640] sm:$0xff] %v1408_v26  ;;  %v417_v26 = vld [vmem:[%s3666_s4 + $0x750] sm:$0xff]  ;;  %v1441_v29 = vsub.f32 %v3673_v1, %v416_v24 }
 0x116   : > { %2433 = vst [vmem:[%s3685_s20 + $0x648] sm:$0xff] %v1409_v28  ;;  %v418_v28 = vld [vmem:[%s3666_s4 + $0x758] sm:$0xff]  ;;  %v1442_v31 = vsub.f32 %v3673_v1, %v417_v26 }
 0x117   : > { %2434 = vst [vmem:[%s3685_s20 + $0x650] sm:$0xff] %v1410_v30  ;;  %v419_v30 = vld [vmem:[%s3666_s4 + $0x760] sm:$0xff]  ;;  %v1443_v33 = vsub.f32 %v3673_v1, %v418_v28 }
 0x118   : > { %2435 = vst [vmem:[%s3685_s20 + $0x658] sm:$0xff] %v1411_v32  ;;  %v420_v32 = vld [vmem:[%s3666_s4 + $0x768] sm:$0xff]  ;;  %v1444_v35 = vsub.f32 %v3673_v1, %v419_v30 }
 0x119   : > { %2436 = vst [vmem:[%s3685_s20 + $0x660] sm:$0xff] %v1412_v34  ;;  %v421_v34 = vld [vmem:[%s3666_s4 + $0x770] sm:$0xff]  ;;  %v1445_v37 = vsub.f32 %v3673_v1, %v420_v32 }
 0x11a   : > { %2437 = vst [vmem:[%s3685_s20 + $0x668] sm:$0xff] %v1413_v36  ;;  %v422_v36 = vld [vmem:[%s3666_s4 + $0x778] sm:$0xff]  ;;  %v1446_v39 = vsub.f32 %v3673_v1, %v421_v34 }
 0x11b   : > { %2438 = vst [vmem:[%s3685_s20 + $0x670] sm:$0xff] %v1414_v38  ;;  %v423_v38 = vld [vmem:[%s3666_s4 + $0x780] sm:$0xff]  ;;  %v1447_v41 = vsub.f32 %v3673_v1, %v422_v36 }
 0x11c   : > { %2439 = vst [vmem:[%s3685_s20 + $0x678] sm:$0xff] %v1415_v40  ;;  %v424_v40 = vld [vmem:[%s3666_s4 + $0x788] sm:$0xff]  ;;  %v1448_v43 = vsub.f32 %v3673_v1, %v423_v38 }
 0x11d   : > { %2440 = vst [vmem:[%s3685_s20 + $0x680] sm:$0xff] %v1416_v42  ;;  %v425_v42 = vld [vmem:[%s3666_s4 + $0x790] sm:$0xff]  ;;  %v1449_v45 = vsub.f32 %v3673_v1, %v424_v40 }
 0x11e   : > { %2441 = vst [vmem:[%s3685_s20 + $0x688] sm:$0xff] %v1417_v44  ;;  %v426_v44 = vld [vmem:[%s3666_s4 + $0x798] sm:$0xff]  ;;  %v1450_v47 = vsub.f32 %v3673_v1, %v425_v42 }
 0x11f   : > { %2442 = vst [vmem:[%s3685_s20 + $0x690] sm:$0xff] %v1418_v46  ;;  %v427_v46 = vld [vmem:[%s3666_s4 + $0x7a0] sm:$0xff]  ;;  %v1451_v49 = vsub.f32 %v3673_v1, %v426_v44 }
 0x120   : > { %2443 = vst [vmem:[%s3685_s20 + $0x698] sm:$0xff] %v1419_v48  ;;  %v428_v48 = vld [vmem:[%s3666_s4 + $0x7a8] sm:$0xff]  ;;  %v1452_v51 = vsub.f32 %v3673_v1, %v427_v46 }
 0x121   : > { %2444 = vst [vmem:[%s3685_s20 + $0x6a0] sm:$0xff] %v1420_v50  ;;  %v429_v50 = vld [vmem:[%s3666_s4 + $0x7b0] sm:$0xff]  ;;  %v1453_v53 = vsub.f32 %v3673_v1, %v428_v48 }
 0x122   : > { %2445 = vst [vmem:[%s3685_s20 + $0x6a8] sm:$0xff] %v1421_v52  ;;  %v430_v52 = vld [vmem:[%s3666_s4 + $0x7b8] sm:$0xff]  ;;  %v1454_v55 = vsub.f32 %v3673_v1, %v429_v50 }
 0x123   : > { %2446 = vst [vmem:[%s3685_s20 + $0x6b0] sm:$0xff] %v1422_v54  ;;  %v431_v54 = vld [vmem:[%s3666_s4 + $0x7c0] sm:$0xff]  ;;  %v1455_v57 = vsub.f32 %v3673_v1, %v430_v52 }
 0x124   : > { %2447 = vst [vmem:[%s3685_s20 + $0x6b8] sm:$0xff] %v1423_v56  ;;  %v432_v56 = vld [vmem:[%s3666_s4 + $0x7c8] sm:$0xff]  ;;  %v1456_v59 = vsub.f32 %v3673_v1, %v431_v54 }
 0x125   : > { %2448 = vst [vmem:[%s3685_s20 + $0x6c0] sm:$0xff] %v1424_v58  ;;  %v433_v58 = vld [vmem:[%s3666_s4 + $0x7d0] sm:$0xff]  ;;  %v1457_v61 = vsub.f32 %v3673_v1, %v432_v56 }
 0x126   : > { %2449 = vst [vmem:[%s3685_s20 + $0x6c8] sm:$0xff] %v1425_v60  ;;  %v434_v60 = vld [vmem:[%s3666_s4 + $0x7d8] sm:$0xff]  ;;  %v1458_v63 = vsub.f32 %v3673_v1, %v433_v58 }
 0x127   : > { %2450 = vst [vmem:[%s3685_s20 + $0x6d0] sm:$0xff] %v1426_v62  ;;  %v435_v62 = vld [vmem:[%s3666_s4 + $0x7e0] sm:$0xff]  ;;  %v1459_v2 = vsub.f32 %v3673_v1, %v434_v60 }
 0x128   : > { %2451 = vst [vmem:[%s3685_s20 + $0x6d8] sm:$0xff] %v1427_v0  ;;  %v436_v0 = vld [vmem:[%s3666_s4 + $0x7e8] sm:$0xff]  ;;  %v1460_v4 = vsub.f32 %v3673_v1, %v435_v62 }
 0x129   : > { %2452 = vst [vmem:[%s3685_s20 + $0x6e0] sm:$0xff] %v1428_v3  ;;  %v437_v3 = vld [vmem:[%s3666_s4 + $0x7f0] sm:$0xff]  ;;  %v1461_v6 = vsub.f32 %v3673_v1, %v436_v0 }
 0x12a   : > { %2453 = vst [vmem:[%s3685_s20 + $0x6e8] sm:$0xff] %v1429_v5  ;;  %v438_v5 = vld [vmem:[%s3666_s4 + $0x7f8] sm:$0xff]  ;;  %v1462_v8 = vsub.f32 %v3673_v1, %v437_v3 }
 0x12b   : > { %2454 = vst [vmem:[%s3685_s20 + $0x6f0] sm:$0xff] %v1430_v7  ;;  %v439_v7 = vld [vmem:[%s3666_s4 + $0x800] sm:$0xff]  ;;  %v1463_v10 = vsub.f32 %v3673_v1, %v438_v5 }
 0x12c   : > { %2455 = vst [vmem:[%s3685_s20 + $0x6f8] sm:$0xff] %v1431_v9  ;;  %v440_v9 = vld [vmem:[%s3666_s4 + $0x808] sm:$0xff]  ;;  %v1464_v12 = vsub.f32 %v3673_v1, %v439_v7 }
 0x12d   : > { %2456 = vst [vmem:[%s3685_s20 + $0x700] sm:$0xff] %v1432_v11  ;;  %v441_v11 = vld [vmem:[%s3666_s4 + $0x810] sm:$0xff]  ;;  %v1465_v14 = vsub.f32 %v3673_v1, %v440_v9 }
 0x12e   : > { %2457 = vst [vmem:[%s3685_s20 + $0x708] sm:$0xff] %v1433_v13  ;;  %v442_v13 = vld [vmem:[%s3666_s4 + $0x818] sm:$0xff]  ;;  %v1466_v16 = vsub.f32 %v3673_v1, %v441_v11 }
 0x12f   : > { %2458 = vst [vmem:[%s3685_s20 + $0x710] sm:$0xff] %v1434_v15  ;;  %v443_v15 = vld [vmem:[%s3666_s4 + $0x820] sm:$0xff]  ;;  %v1467_v18 = vsub.f32 %v3673_v1, %v442_v13 }
 0x130   : > { %2459 = vst [vmem:[%s3685_s20 + $0x718] sm:$0xff] %v1435_v17  ;;  %v444_v17 = vld [vmem:[%s3666_s4 + $0x828] sm:$0xff]  ;;  %v1468_v20 = vsub.f32 %v3673_v1, %v443_v15 }
 0x131   : > { %2460 = vst [vmem:[%s3685_s20 + $0x720] sm:$0xff] %v1436_v19  ;;  %v445_v19 = vld [vmem:[%s3666_s4 + $0x830] sm:$0xff]  ;;  %v1469_v22 = vsub.f32 %v3673_v1, %v444_v17 }
 0x132   : > { %2461 = vst [vmem:[%s3685_s20 + $0x728] sm:$0xff] %v1437_v21  ;;  %v446_v21 = vld [vmem:[%s3666_s4 + $0x838] sm:$0xff]  ;;  %v1470_v24 = vsub.f32 %v3673_v1, %v445_v19 }
 0x133   : > { %2462 = vst [vmem:[%s3685_s20 + $0x730] sm:$0xff] %v1438_v23  ;;  %v447_v23 = vld [vmem:[%s3666_s4 + $0x840] sm:$0xff]  ;;  %v1471_v26 = vsub.f32 %v3673_v1, %v446_v21 }
 0x134   : > { %2463 = vst [vmem:[%s3685_s20 + $0x738] sm:$0xff] %v1439_v25  ;;  %v448_v25 = vld [vmem:[%s3666_s4 + $0x848] sm:$0xff]  ;;  %v1472_v28 = vsub.f32 %v3673_v1, %v447_v23 }
 0x135   : > { %2464 = vst [vmem:[%s3685_s20 + $0x740] sm:$0xff] %v1440_v27  ;;  %v449_v27 = vld [vmem:[%s3666_s4 + $0x850] sm:$0xff]  ;;  %v1473_v30 = vsub.f32 %v3673_v1, %v448_v25 }
 0x136   : > { %2465 = vst [vmem:[%s3685_s20 + $0x748] sm:$0xff] %v1441_v29  ;;  %v450_v29 = vld [vmem:[%s3666_s4 + $0x858] sm:$0xff]  ;;  %v1474_v32 = vsub.f32 %v3673_v1, %v449_v27 }
 0x137   : > { %2466 = vst [vmem:[%s3685_s20 + $0x750] sm:$0xff] %v1442_v31  ;;  %v451_v31 = vld [vmem:[%s3666_s4 + $0x860] sm:$0xff]  ;;  %v1475_v34 = vsub.f32 %v3673_v1, %v450_v29 }
 0x138   : > { %2467 = vst [vmem:[%s3685_s20 + $0x758] sm:$0xff] %v1443_v33  ;;  %v452_v33 = vld [vmem:[%s3666_s4 + $0x868] sm:$0xff]  ;;  %v1476_v36 = vsub.f32 %v3673_v1, %v451_v31 }
 0x139   : > { %2468 = vst [vmem:[%s3685_s20 + $0x760] sm:$0xff] %v1444_v35  ;;  %v453_v35 = vld [vmem:[%s3666_s4 + $0x870] sm:$0xff]  ;;  %v1477_v38 = vsub.f32 %v3673_v1, %v452_v33 }
 0x13a   : > { %2469 = vst [vmem:[%s3685_s20 + $0x768] sm:$0xff] %v1445_v37  ;;  %v454_v37 = vld [vmem:[%s3666_s4 + $0x878] sm:$0xff]  ;;  %v1478_v40 = vsub.f32 %v3673_v1, %v453_v35 }
 0x13b   : > { %2470 = vst [vmem:[%s3685_s20 + $0x770] sm:$0xff] %v1446_v39  ;;  %v455_v39 = vld [vmem:[%s3666_s4 + $0x880] sm:$0xff]  ;;  %v1479_v42 = vsub.f32 %v3673_v1, %v454_v37 }
 0x13c   : > { %2471 = vst [vmem:[%s3685_s20 + $0x778] sm:$0xff] %v1447_v41  ;;  %v456_v41 = vld [vmem:[%s3666_s4 + $0x888] sm:$0xff]  ;;  %v1480_v44 = vsub.f32 %v3673_v1, %v455_v39 }
 0x13d   : > { %2472 = vst [vmem:[%s3685_s20 + $0x780] sm:$0xff] %v1448_v43  ;;  %v457_v43 = vld [vmem:[%s3666_s4 + $0x890] sm:$0xff]  ;;  %v1481_v46 = vsub.f32 %v3673_v1, %v456_v41 }
 0x13e   : > { %2473 = vst [vmem:[%s3685_s20 + $0x788] sm:$0xff] %v1449_v45  ;;  %v458_v45 = vld [vmem:[%s3666_s4 + $0x898] sm:$0xff]  ;;  %v1482_v48 = vsub.f32 %v3673_v1, %v457_v43 }
 0x13f   : > { %2474 = vst [vmem:[%s3685_s20 + $0x790] sm:$0xff] %v1450_v47  ;;  %v459_v47 = vld [vmem:[%s3666_s4 + $0x8a0] sm:$0xff]  ;;  %v1483_v50 = vsub.f32 %v3673_v1, %v458_v45 }
 0x140   : > { %2475 = vst [vmem:[%s3685_s20 + $0x798] sm:$0xff] %v1451_v49  ;;  %v460_v49 = vld [vmem:[%s3666_s4 + $0x8a8] sm:$0xff]  ;;  %v1484_v52 = vsub.f32 %v3673_v1, %v459_v47 }
 0x141   : > { %2476 = vst [vmem:[%s3685_s20 + $0x7a0] sm:$0xff] %v1452_v51  ;;  %v461_v51 = vld [vmem:[%s3666_s4 + $0x8b0] sm:$0xff]  ;;  %v1485_v54 = vsub.f32 %v3673_v1, %v460_v49 }
 0x142   : > { %2477 = vst [vmem:[%s3685_s20 + $0x7a8] sm:$0xff] %v1453_v53  ;;  %v462_v53 = vld [vmem:[%s3666_s4 + $0x8b8] sm:$0xff]  ;;  %v1486_v56 = vsub.f32 %v3673_v1, %v461_v51 }
 0x143   : > { %2478 = vst [vmem:[%s3685_s20 + $0x7b0] sm:$0xff] %v1454_v55  ;;  %v463_v55 = vld [vmem:[%s3666_s4 + $0x8c0] sm:$0xff]  ;;  %v1487_v58 = vsub.f32 %v3673_v1, %v462_v53 }
 0x144   : > { %2479 = vst [vmem:[%s3685_s20 + $0x7b8] sm:$0xff] %v1455_v57  ;;  %v464_v57 = vld [vmem:[%s3666_s4 + $0x8c8] sm:$0xff]  ;;  %v1488_v60 = vsub.f32 %v3673_v1, %v463_v55 }
 0x145   : > { %2480 = vst [vmem:[%s3685_s20 + $0x7c0] sm:$0xff] %v1456_v59  ;;  %v465_v59 = vld [vmem:[%s3666_s4 + $0x8d0] sm:$0xff]  ;;  %v1489_v62 = vsub.f32 %v3673_v1, %v464_v57 }
 0x146   : > { %2481 = vst [vmem:[%s3685_s20 + $0x7c8] sm:$0xff] %v1457_v61  ;;  %v466_v61 = vld [vmem:[%s3666_s4 + $0x8d8] sm:$0xff]  ;;  %v1490_v0 = vsub.f32 %v3673_v1, %v465_v59 }
 0x147   : > { %2482 = vst [vmem:[%s3685_s20 + $0x7d0] sm:$0xff] %v1458_v63  ;;  %v467_v63 = vld [vmem:[%s3666_s4 + $0x8e0] sm:$0xff]  ;;  %v1491_v3 = vsub.f32 %v3673_v1, %v466_v61 }
 0x148   : > { %2483 = vst [vmem:[%s3685_s20 + $0x7d8] sm:$0xff] %v1459_v2  ;;  %v468_v2 = vld [vmem:[%s3666_s4 + $0x8e8] sm:$0xff]  ;;  %v1492_v5 = vsub.f32 %v3673_v1, %v467_v63 }
 0x149   : > { %2484 = vst [vmem:[%s3685_s20 + $0x7e0] sm:$0xff] %v1460_v4  ;;  %v469_v4 = vld [vmem:[%s3666_s4 + $0x8f0] sm:$0xff]  ;;  %v1493_v7 = vsub.f32 %v3673_v1, %v468_v2 }
 0x14a   : > { %2485 = vst [vmem:[%s3685_s20 + $0x7e8] sm:$0xff] %v1461_v6  ;;  %v470_v6 = vld [vmem:[%s3666_s4 + $0x8f8] sm:$0xff]  ;;  %v1494_v9 = vsub.f32 %v3673_v1, %v469_v4 }
 0x14b   : > { %2486 = vst [vmem:[%s3685_s20 + $0x7f0] sm:$0xff] %v1462_v8  ;;  %v471_v8 = vld [vmem:[%s3666_s4 + $0x900] sm:$0xff]  ;;  %v1495_v11 = vsub.f32 %v3673_v1, %v470_v6 }
 0x14c   : > { %2487 = vst [vmem:[%s3685_s20 + $0x7f8] sm:$0xff] %v1463_v10  ;;  %v472_v10 = vld [vmem:[%s3666_s4 + $0x908] sm:$0xff]  ;;  %v1496_v13 = vsub.f32 %v3673_v1, %v471_v8 }
 0x14d   : > { %2488 = vst [vmem:[%s3685_s20 + $0x800] sm:$0xff] %v1464_v12  ;;  %v473_v12 = vld [vmem:[%s3666_s4 + $0x910] sm:$0xff]  ;;  %v1497_v15 = vsub.f32 %v3673_v1, %v472_v10 }
 0x14e   : > { %2489 = vst [vmem:[%s3685_s20 + $0x808] sm:$0xff] %v1465_v14  ;;  %v474_v14 = vld [vmem:[%s3666_s4 + $0x918] sm:$0xff]  ;;  %v1498_v17 = vsub.f32 %v3673_v1, %v473_v12 }
 0x14f   : > { %2490 = vst [vmem:[%s3685_s20 + $0x810] sm:$0xff] %v1466_v16  ;;  %v475_v16 = vld [vmem:[%s3666_s4 + $0x920] sm:$0xff]  ;;  %v1499_v19 = vsub.f32 %v3673_v1, %v474_v14 }
 0x150   : > { %2491 = vst [vmem:[%s3685_s20 + $0x818] sm:$0xff] %v1467_v18  ;;  %v476_v18 = vld [vmem:[%s3666_s4 + $0x928] sm:$0xff]  ;;  %v1500_v21 = vsub.f32 %v3673_v1, %v475_v16 }
 0x151   : > { %2492 = vst [vmem:[%s3685_s20 + $0x820] sm:$0xff] %v1468_v20  ;;  %v477_v20 = vld [vmem:[%s3666_s4 + $0x930] sm:$0xff]  ;;  %v1501_v23 = vsub.f32 %v3673_v1, %v476_v18 }
 0x152   : > { %2493 = vst [vmem:[%s3685_s20 + $0x828] sm:$0xff] %v1469_v22  ;;  %v478_v22 = vld [vmem:[%s3666_s4 + $0x938] sm:$0xff]  ;;  %v1502_v25 = vsub.f32 %v3673_v1, %v477_v20 }
 0x153   : > { %2494 = vst [vmem:[%s3685_s20 + $0x830] sm:$0xff] %v1470_v24  ;;  %v479_v24 = vld [vmem:[%s3666_s4 + $0x940] sm:$0xff]  ;;  %v1503_v27 = vsub.f32 %v3673_v1, %v478_v22 }
 0x154   : > { %2495 = vst [vmem:[%s3685_s20 + $0x838] sm:$0xff] %v1471_v26  ;;  %v480_v26 = vld [vmem:[%s3666_s4 + $0x948] sm:$0xff]  ;;  %v1504_v29 = vsub.f32 %v3673_v1, %v479_v24 }
 0x155   : > { %2496 = vst [vmem:[%s3685_s20 + $0x840] sm:$0xff] %v1472_v28  ;;  %v481_v28 = vld [vmem:[%s3666_s4 + $0x950] sm:$0xff]  ;;  %v1505_v31 = vsub.f32 %v3673_v1, %v480_v26 }
 0x156   : > { %2497 = vst [vmem:[%s3685_s20 + $0x848] sm:$0xff] %v1473_v30  ;;  %v482_v30 = vld [vmem:[%s3666_s4 + $0x958] sm:$0xff]  ;;  %v1506_v33 = vsub.f32 %v3673_v1, %v481_v28 }
 0x157   : > { %2498 = vst [vmem:[%s3685_s20 + $0x850] sm:$0xff] %v1474_v32  ;;  %v483_v32 = vld [vmem:[%s3666_s4 + $0x960] sm:$0xff]  ;;  %v1507_v35 = vsub.f32 %v3673_v1, %v482_v30 }
 0x158   : > { %2499 = vst [vmem:[%s3685_s20 + $0x858] sm:$0xff] %v1475_v34  ;;  %v484_v34 = vld [vmem:[%s3666_s4 + $0x968] sm:$0xff]  ;;  %v1508_v37 = vsub.f32 %v3673_v1, %v483_v32 }
 0x159   : > { %2500 = vst [vmem:[%s3685_s20 + $0x860] sm:$0xff] %v1476_v36  ;;  %v485_v36 = vld [vmem:[%s3666_s4 + $0x970] sm:$0xff]  ;;  %v1509_v39 = vsub.f32 %v3673_v1, %v484_v34 }
 0x15a   : > { %2501 = vst [vmem:[%s3685_s20 + $0x868] sm:$0xff] %v1477_v38  ;;  %v486_v38 = vld [vmem:[%s3666_s4 + $0x978] sm:$0xff]  ;;  %v1510_v41 = vsub.f32 %v3673_v1, %v485_v36 }
 0x15b   : > { %2502 = vst [vmem:[%s3685_s20 + $0x870] sm:$0xff] %v1478_v40  ;;  %v487_v40 = vld [vmem:[%s3666_s4 + $0x980] sm:$0xff]  ;;  %v1511_v43 = vsub.f32 %v3673_v1, %v486_v38 }
 0x15c   : > { %2503 = vst [vmem:[%s3685_s20 + $0x878] sm:$0xff] %v1479_v42  ;;  %v488_v42 = vld [vmem:[%s3666_s4 + $0x988] sm:$0xff]  ;;  %v1512_v45 = vsub.f32 %v3673_v1, %v487_v40 }
 0x15d   : > { %2504 = vst [vmem:[%s3685_s20 + $0x880] sm:$0xff] %v1480_v44  ;;  %v489_v44 = vld [vmem:[%s3666_s4 + $0x990] sm:$0xff]  ;;  %v1513_v47 = vsub.f32 %v3673_v1, %v488_v42 }
 0x15e   : > { %2505 = vst [vmem:[%s3685_s20 + $0x888] sm:$0xff] %v1481_v46  ;;  %v490_v46 = vld [vmem:[%s3666_s4 + $0x998] sm:$0xff]  ;;  %v1514_v49 = vsub.f32 %v3673_v1, %v489_v44 }
 0x15f   : > { %2506 = vst [vmem:[%s3685_s20 + $0x890] sm:$0xff] %v1482_v48  ;;  %v491_v48 = vld [vmem:[%s3666_s4 + $0x9a0] sm:$0xff]  ;;  %v1515_v51 = vsub.f32 %v3673_v1, %v490_v46 }
 0x160   : > { %2507 = vst [vmem:[%s3685_s20 + $0x898] sm:$0xff] %v1483_v50  ;;  %v492_v50 = vld [vmem:[%s3666_s4 + $0x9a8] sm:$0xff]  ;;  %v1516_v53 = vsub.f32 %v3673_v1, %v491_v48 }
 0x161   : > { %2508 = vst [vmem:[%s3685_s20 + $0x8a0] sm:$0xff] %v1484_v52  ;;  %v493_v52 = vld [vmem:[%s3666_s4 + $0x9b0] sm:$0xff]  ;;  %v1517_v55 = vsub.f32 %v3673_v1, %v492_v50 }
 0x162   : > { %2509 = vst [vmem:[%s3685_s20 + $0x8a8] sm:$0xff] %v1485_v54  ;;  %v494_v54 = vld [vmem:[%s3666_s4 + $0x9b8] sm:$0xff]  ;;  %v1518_v57 = vsub.f32 %v3673_v1, %v493_v52 }
 0x163   : > { %2510 = vst [vmem:[%s3685_s20 + $0x8b0] sm:$0xff] %v1486_v56  ;;  %v495_v56 = vld [vmem:[%s3666_s4 + $0x9c0] sm:$0xff]  ;;  %v1519_v59 = vsub.f32 %v3673_v1, %v494_v54 }
 0x164   : > { %2511 = vst [vmem:[%s3685_s20 + $0x8b8] sm:$0xff] %v1487_v58  ;;  %v496_v58 = vld [vmem:[%s3666_s4 + $0x9c8] sm:$0xff]  ;;  %v1520_v61 = vsub.f32 %v3673_v1, %v495_v56 }
 0x165   : > { %2512 = vst [vmem:[%s3685_s20 + $0x8c0] sm:$0xff] %v1488_v60  ;;  %v497_v60 = vld [vmem:[%s3666_s4 + $0x9d0] sm:$0xff]  ;;  %v1521_v63 = vsub.f32 %v3673_v1, %v496_v58 }
 0x166   : > { %2513 = vst [vmem:[%s3685_s20 + $0x8c8] sm:$0xff] %v1489_v62  ;;  %v498_v62 = vld [vmem:[%s3666_s4 + $0x9d8] sm:$0xff]  ;;  %v1522_v2 = vsub.f32 %v3673_v1, %v497_v60 }
 0x167   : > { %2514 = vst [vmem:[%s3685_s20 + $0x8d0] sm:$0xff] %v1490_v0  ;;  %v499_v0 = vld [vmem:[%s3666_s4 + $0x9e0] sm:$0xff]  ;;  %v1523_v4 = vsub.f32 %v3673_v1, %v498_v62 }
 0x168   : > { %2515 = vst [vmem:[%s3685_s20 + $0x8d8] sm:$0xff] %v1491_v3  ;;  %v500_v3 = vld [vmem:[%s3666_s4 + $0x9e8] sm:$0xff]  ;;  %v1524_v6 = vsub.f32 %v3673_v1, %v499_v0 }
 0x169   : > { %2516 = vst [vmem:[%s3685_s20 + $0x8e0] sm:$0xff] %v1492_v5  ;;  %v501_v5 = vld [vmem:[%s3666_s4 + $0x9f0] sm:$0xff]  ;;  %v1525_v8 = vsub.f32 %v3673_v1, %v500_v3 }
 0x16a   : > { %2517 = vst [vmem:[%s3685_s20 + $0x8e8] sm:$0xff] %v1493_v7  ;;  %v502_v7 = vld [vmem:[%s3666_s4 + $0x9f8] sm:$0xff]  ;;  %v1526_v10 = vsub.f32 %v3673_v1, %v501_v5 }
 0x16b   : > { %2518 = vst [vmem:[%s3685_s20 + $0x8f0] sm:$0xff] %v1494_v9  ;;  %v503_v9 = vld [vmem:[%s3666_s4 + $0xa00] sm:$0xff]  ;;  %v1527_v12 = vsub.f32 %v3673_v1, %v502_v7 }
 0x16c   : > { %2519 = vst [vmem:[%s3685_s20 + $0x8f8] sm:$0xff] %v1495_v11  ;;  %v504_v11 = vld [vmem:[%s3666_s4 + $0xa08] sm:$0xff]  ;;  %v1528_v14 = vsub.f32 %v3673_v1, %v503_v9 }
 0x16d   : > { %2520 = vst [vmem:[%s3685_s20 + $0x900] sm:$0xff] %v1496_v13  ;;  %v505_v13 = vld [vmem:[%s3666_s4 + $0xa10] sm:$0xff]  ;;  %v1529_v16 = vsub.f32 %v3673_v1, %v504_v11 }
 0x16e   : > { %2521 = vst [vmem:[%s3685_s20 + $0x908] sm:$0xff] %v1497_v15  ;;  %v506_v15 = vld [vmem:[%s3666_s4 + $0xa18] sm:$0xff]  ;;  %v1530_v18 = vsub.f32 %v3673_v1, %v505_v13 }
 0x16f   : > { %2522 = vst [vmem:[%s3685_s20 + $0x910] sm:$0xff] %v1498_v17  ;;  %v507_v17 = vld [vmem:[%s3666_s4 + $0xa20] sm:$0xff]  ;;  %v1531_v20 = vsub.f32 %v3673_v1, %v506_v15 }
 0x170   : > { %2523 = vst [vmem:[%s3685_s20 + $0x918] sm:$0xff] %v1499_v19  ;;  %v508_v19 = vld [vmem:[%s3666_s4 + $0xa28] sm:$0xff]  ;;  %v1532_v22 = vsub.f32 %v3673_v1, %v507_v17 }
 0x171   : > { %2524 = vst [vmem:[%s3685_s20 + $0x920] sm:$0xff] %v1500_v21  ;;  %v509_v21 = vld [vmem:[%s3666_s4 + $0xa30] sm:$0xff]  ;;  %v1533_v24 = vsub.f32 %v3673_v1, %v508_v19 }
 0x172   : > { %2525 = vst [vmem:[%s3685_s20 + $0x928] sm:$0xff] %v1501_v23  ;;  %v510_v23 = vld [vmem:[%s3666_s4 + $0xa38] sm:$0xff]  ;;  %v1534_v26 = vsub.f32 %v3673_v1, %v509_v21 }
 0x173   : > { %2526 = vst [vmem:[%s3685_s20 + $0x930] sm:$0xff] %v1502_v25  ;;  %v511_v25 = vld [vmem:[%s3666_s4 + $0xa40] sm:$0xff]  ;;  %v1535_v28 = vsub.f32 %v3673_v1, %v510_v23 }
 0x174   : > { %2527 = vst [vmem:[%s3685_s20 + $0x938] sm:$0xff] %v1503_v27  ;;  %v512_v27 = vld [vmem:[%s3666_s4 + $0xa48] sm:$0xff]  ;;  %v1536_v30 = vsub.f32 %v3673_v1, %v511_v25 }
 0x175   : > { %2528 = vst [vmem:[%s3685_s20 + $0x940] sm:$0xff] %v1504_v29  ;;  %v513_v29 = vld [vmem:[%s3666_s4 + $0xa50] sm:$0xff]  ;;  %v1537_v32 = vsub.f32 %v3673_v1, %v512_v27 }
 0x176   : > { %2529 = vst [vmem:[%s3685_s20 + $0x948] sm:$0xff] %v1505_v31  ;;  %v514_v31 = vld [vmem:[%s3666_s4 + $0xa58] sm:$0xff]  ;;  %v1538_v34 = vsub.f32 %v3673_v1, %v513_v29 }
 0x177   : > { %2530 = vst [vmem:[%s3685_s20 + $0x950] sm:$0xff] %v1506_v33  ;;  %v515_v33 = vld [vmem:[%s3666_s4 + $0xa60] sm:$0xff]  ;;  %v1539_v36 = vsub.f32 %v3673_v1, %v514_v31 }
 0x178   : > { %2531 = vst [vmem:[%s3685_s20 + $0x958] sm:$0xff] %v1507_v35  ;;  %v516_v35 = vld [vmem:[%s3666_s4 + $0xa68] sm:$0xff]  ;;  %v1540_v38 = vsub.f32 %v3673_v1, %v515_v33 }
 0x179   : > { %2532 = vst [vmem:[%s3685_s20 + $0x960] sm:$0xff] %v1508_v37  ;;  %v517_v37 = vld [vmem:[%s3666_s4 + $0xa70] sm:$0xff]  ;;  %v1541_v40 = vsub.f32 %v3673_v1, %v516_v35 }
 0x17a   : > { %2533 = vst [vmem:[%s3685_s20 + $0x968] sm:$0xff] %v1509_v39  ;;  %v518_v39 = vld [vmem:[%s3666_s4 + $0xa78] sm:$0xff]  ;;  %v1542_v42 = vsub.f32 %v3673_v1, %v517_v37 }
 0x17b   : > { %2534 = vst [vmem:[%s3685_s20 + $0x970] sm:$0xff] %v1510_v41  ;;  %v519_v41 = vld [vmem:[%s3666_s4 + $0xa80] sm:$0xff]  ;;  %v1543_v44 = vsub.f32 %v3673_v1, %v518_v39 }
 0x17c   : > { %2535 = vst [vmem:[%s3685_s20 + $0x978] sm:$0xff] %v1511_v43  ;;  %v520_v43 = vld [vmem:[%s3666_s4 + $0xa88] sm:$0xff]  ;;  %v1544_v46 = vsub.f32 %v3673_v1, %v519_v41 }
 0x17d   : > { %2536 = vst [vmem:[%s3685_s20 + $0x980] sm:$0xff] %v1512_v45  ;;  %v521_v45 = vld [vmem:[%s3666_s4 + $0xa90] sm:$0xff]  ;;  %v1545_v48 = vsub.f32 %v3673_v1, %v520_v43 }
 0x17e   : > { %2537 = vst [vmem:[%s3685_s20 + $0x988] sm:$0xff] %v1513_v47  ;;  %v522_v47 = vld [vmem:[%s3666_s4 + $0xa98] sm:$0xff]  ;;  %v1546_v50 = vsub.f32 %v3673_v1, %v521_v45 }
 0x17f   : > { %2538 = vst [vmem:[%s3685_s20 + $0x990] sm:$0xff] %v1514_v49  ;;  %v523_v49 = vld [vmem:[%s3666_s4 + $0xaa0] sm:$0xff]  ;;  %v1547_v52 = vsub.f32 %v3673_v1, %v522_v47 }
 0x180   : > { %2539 = vst [vmem:[%s3685_s20 + $0x998] sm:$0xff] %v1515_v51  ;;  %v524_v51 = vld [vmem:[%s3666_s4 + $0xaa8] sm:$0xff]  ;;  %v1548_v54 = vsub.f32 %v3673_v1, %v523_v49 }
 0x181   : > { %2540 = vst [vmem:[%s3685_s20 + $0x9a0] sm:$0xff] %v1516_v53  ;;  %v525_v53 = vld [vmem:[%s3666_s4 + $0xab0] sm:$0xff]  ;;  %v1549_v56 = vsub.f32 %v3673_v1, %v524_v51 }
 0x182   : > { %2541 = vst [vmem:[%s3685_s20 + $0x9a8] sm:$0xff] %v1517_v55  ;;  %v526_v55 = vld [vmem:[%s3666_s4 + $0xab8] sm:$0xff]  ;;  %v1550_v58 = vsub.f32 %v3673_v1, %v525_v53 }
 0x183   : > { %2542 = vst [vmem:[%s3685_s20 + $0x9b0] sm:$0xff] %v1518_v57  ;;  %v527_v57 = vld [vmem:[%s3666_s4 + $0xac0] sm:$0xff]  ;;  %v1551_v60 = vsub.f32 %v3673_v1, %v526_v55 }
 0x184   : > { %2543 = vst [vmem:[%s3685_s20 + $0x9b8] sm:$0xff] %v1519_v59  ;;  %v528_v59 = vld [vmem:[%s3666_s4 + $0xac8] sm:$0xff]  ;;  %v1552_v62 = vsub.f32 %v3673_v1, %v527_v57 }
 0x185   : > { %2544 = vst [vmem:[%s3685_s20 + $0x9c0] sm:$0xff] %v1520_v61  ;;  %v529_v61 = vld [vmem:[%s3666_s4 + $0xad0] sm:$0xff]  ;;  %v1553_v0 = vsub.f32 %v3673_v1, %v528_v59 }
 0x186   : > { %2545 = vst [vmem:[%s3685_s20 + $0x9c8] sm:$0xff] %v1521_v63  ;;  %v530_v63 = vld [vmem:[%s3666_s4 + $0xad8] sm:$0xff]  ;;  %v1554_v3 = vsub.f32 %v3673_v1, %v529_v61 }
 0x187   : > { %2546 = vst [vmem:[%s3685_s20 + $0x9d0] sm:$0xff] %v1522_v2  ;;  %v531_v2 = vld [vmem:[%s3666_s4 + $0xae0] sm:$0xff]  ;;  %v1555_v5 = vsub.f32 %v3673_v1, %v530_v63 }
 0x188   : > { %2547 = vst [vmem:[%s3685_s20 + $0x9d8] sm:$0xff] %v1523_v4  ;;  %v532_v4 = vld [vmem:[%s3666_s4 + $0xae8] sm:$0xff]  ;;  %v1556_v7 = vsub.f32 %v3673_v1, %v531_v2 }
 0x189   : > { %2548 = vst [vmem:[%s3685_s20 + $0x9e0] sm:$0xff] %v1524_v6  ;;  %v533_v6 = vld [vmem:[%s3666_s4 + $0xaf0] sm:$0xff]  ;;  %v1557_v9 = vsub.f32 %v3673_v1, %v532_v4 }
 0x18a   : > { %2549 = vst [vmem:[%s3685_s20 + $0x9e8] sm:$0xff] %v1525_v8  ;;  %v534_v8 = vld [vmem:[%s3666_s4 + $0xaf8] sm:$0xff]  ;;  %v1558_v11 = vsub.f32 %v3673_v1, %v533_v6 }
 0x18b   : > { %2550 = vst [vmem:[%s3685_s20 + $0x9f0] sm:$0xff] %v1526_v10  ;;  %v535_v10 = vld [vmem:[%s3666_s4 + $0xb00] sm:$0xff]  ;;  %v1559_v13 = vsub.f32 %v3673_v1, %v534_v8 }
 0x18c   : > { %2551 = vst [vmem:[%s3685_s20 + $0x9f8] sm:$0xff] %v1527_v12  ;;  %v536_v12 = vld [vmem:[%s3666_s4 + $0xb08] sm:$0xff]  ;;  %v1560_v15 = vsub.f32 %v3673_v1, %v535_v10 }
 0x18d   : > { %2552 = vst [vmem:[%s3685_s20 + $0xa00] sm:$0xff] %v1528_v14  ;;  %v537_v14 = vld [vmem:[%s3666_s4 + $0xb10] sm:$0xff]  ;;  %v1561_v17 = vsub.f32 %v3673_v1, %v536_v12 }
 0x18e   : > { %2553 = vst [vmem:[%s3685_s20 + $0xa08] sm:$0xff] %v1529_v16  ;;  %v538_v16 = vld [vmem:[%s3666_s4 + $0xb18] sm:$0xff]  ;;  %v1562_v19 = vsub.f32 %v3673_v1, %v537_v14 }
 0x18f   : > { %2554 = vst [vmem:[%s3685_s20 + $0xa10] sm:$0xff] %v1530_v18  ;;  %v539_v18 = vld [vmem:[%s3666_s4 + $0xb20] sm:$0xff]  ;;  %v1563_v21 = vsub.f32 %v3673_v1, %v538_v16 }
 0x190   : > { %2555 = vst [vmem:[%s3685_s20 + $0xa18] sm:$0xff] %v1531_v20  ;;  %v540_v20 = vld [vmem:[%s3666_s4 + $0xb28] sm:$0xff]  ;;  %v1564_v23 = vsub.f32 %v3673_v1, %v539_v18 }
 0x191   : > { %2556 = vst [vmem:[%s3685_s20 + $0xa20] sm:$0xff] %v1532_v22  ;;  %v541_v22 = vld [vmem:[%s3666_s4 + $0xb30] sm:$0xff]  ;;  %v1565_v25 = vsub.f32 %v3673_v1, %v540_v20 }
 0x192   : > { %2557 = vst [vmem:[%s3685_s20 + $0xa28] sm:$0xff] %v1533_v24  ;;  %v542_v24 = vld [vmem:[%s3666_s4 + $0xb38] sm:$0xff]  ;;  %v1566_v27 = vsub.f32 %v3673_v1, %v541_v22 }
 0x193   : > { %2558 = vst [vmem:[%s3685_s20 + $0xa30] sm:$0xff] %v1534_v26  ;;  %v543_v26 = vld [vmem:[%s3666_s4 + $0xb40] sm:$0xff]  ;;  %v1567_v29 = vsub.f32 %v3673_v1, %v542_v24 }
 0x194   : > { %2559 = vst [vmem:[%s3685_s20 + $0xa38] sm:$0xff] %v1535_v28  ;;  %v544_v28 = vld [vmem:[%s3666_s4 + $0xb48] sm:$0xff]  ;;  %v1568_v31 = vsub.f32 %v3673_v1, %v543_v26 }
 0x195   : > { %2560 = vst [vmem:[%s3685_s20 + $0xa40] sm:$0xff] %v1536_v30  ;;  %v545_v30 = vld [vmem:[%s3666_s4 + $0xb50] sm:$0xff]  ;;  %v1569_v33 = vsub.f32 %v3673_v1, %v544_v28 }
 0x196   : > { %2561 = vst [vmem:[%s3685_s20 + $0xa48] sm:$0xff] %v1537_v32  ;;  %v546_v32 = vld [vmem:[%s3666_s4 + $0xb58] sm:$0xff]  ;;  %v1570_v35 = vsub.f32 %v3673_v1, %v545_v30 }
 0x197   : > { %2562 = vst [vmem:[%s3685_s20 + $0xa50] sm:$0xff] %v1538_v34  ;;  %v547_v34 = vld [vmem:[%s3666_s4 + $0xb60] sm:$0xff]  ;;  %v1571_v37 = vsub.f32 %v3673_v1, %v546_v32 }
 0x198   : > { %2563 = vst [vmem:[%s3685_s20 + $0xa58] sm:$0xff] %v1539_v36  ;;  %v548_v36 = vld [vmem:[%s3666_s4 + $0xb68] sm:$0xff]  ;;  %v1572_v39 = vsub.f32 %v3673_v1, %v547_v34 }
 0x199   : > { %2564 = vst [vmem:[%s3685_s20 + $0xa60] sm:$0xff] %v1540_v38  ;;  %v549_v38 = vld [vmem:[%s3666_s4 + $0xb70] sm:$0xff]  ;;  %v1573_v41 = vsub.f32 %v3673_v1, %v548_v36 }
 0x19a   : > { %2565 = vst [vmem:[%s3685_s20 + $0xa68] sm:$0xff] %v1541_v40  ;;  %v550_v40 = vld [vmem:[%s3666_s4 + $0xb78] sm:$0xff]  ;;  %v1574_v43 = vsub.f32 %v3673_v1, %v549_v38 }
 0x19b   : > { %2566 = vst [vmem:[%s3685_s20 + $0xa70] sm:$0xff] %v1542_v42  ;;  %v551_v42 = vld [vmem:[%s3666_s4 + $0xb80] sm:$0xff]  ;;  %v1575_v45 = vsub.f32 %v3673_v1, %v550_v40 }
 0x19c   : > { %2567 = vst [vmem:[%s3685_s20 + $0xa78] sm:$0xff] %v1543_v44  ;;  %v552_v44 = vld [vmem:[%s3666_s4 + $0xb88] sm:$0xff]  ;;  %v1576_v47 = vsub.f32 %v3673_v1, %v551_v42 }
 0x19d   : > { %2568 = vst [vmem:[%s3685_s20 + $0xa80] sm:$0xff] %v1544_v46  ;;  %v553_v46 = vld [vmem:[%s3666_s4 + $0xb90] sm:$0xff]  ;;  %v1577_v49 = vsub.f32 %v3673_v1, %v552_v44 }
 0x19e   : > { %2569 = vst [vmem:[%s3685_s20 + $0xa88] sm:$0xff] %v1545_v48  ;;  %v554_v48 = vld [vmem:[%s3666_s4 + $0xb98] sm:$0xff]  ;;  %v1578_v51 = vsub.f32 %v3673_v1, %v553_v46 }
 0x19f   : > { %2570 = vst [vmem:[%s3685_s20 + $0xa90] sm:$0xff] %v1546_v50  ;;  %v555_v50 = vld [vmem:[%s3666_s4 + $0xba0] sm:$0xff]  ;;  %v1579_v53 = vsub.f32 %v3673_v1, %v554_v48 }
 0x1a0   : > { %2571 = vst [vmem:[%s3685_s20 + $0xa98] sm:$0xff] %v1547_v52  ;;  %v556_v52 = vld [vmem:[%s3666_s4 + $0xba8] sm:$0xff]  ;;  %v1580_v55 = vsub.f32 %v3673_v1, %v555_v50 }
 0x1a1   : > { %2572 = vst [vmem:[%s3685_s20 + $0xaa0] sm:$0xff] %v1548_v54  ;;  %v557_v54 = vld [vmem:[%s3666_s4 + $0xbb0] sm:$0xff]  ;;  %v1581_v57 = vsub.f32 %v3673_v1, %v556_v52 }
 0x1a2   : > { %2573 = vst [vmem:[%s3685_s20 + $0xaa8] sm:$0xff] %v1549_v56  ;;  %v558_v56 = vld [vmem:[%s3666_s4 + $0xbb8] sm:$0xff]  ;;  %v1582_v59 = vsub.f32 %v3673_v1, %v557_v54 }
 0x1a3   : > { %2574 = vst [vmem:[%s3685_s20 + $0xab0] sm:$0xff] %v1550_v58  ;;  %v559_v58 = vld [vmem:[%s3666_s4 + $0xbc0] sm:$0xff]  ;;  %v1583_v61 = vsub.f32 %v3673_v1, %v558_v56 }
 0x1a4   : > { %2575 = vst [vmem:[%s3685_s20 + $0xab8] sm:$0xff] %v1551_v60  ;;  %v560_v60 = vld [vmem:[%s3666_s4 + $0xbc8] sm:$0xff]  ;;  %v1584_v63 = vsub.f32 %v3673_v1, %v559_v58 }
 0x1a5   : > { %2576 = vst [vmem:[%s3685_s20 + $0xac0] sm:$0xff] %v1552_v62  ;;  %v561_v62 = vld [vmem:[%s3666_s4 + $0xbd0] sm:$0xff]  ;;  %v1585_v2 = vsub.f32 %v3673_v1, %v560_v60 }
 0x1a6   : > { %2577 = vst [vmem:[%s3685_s20 + $0xac8] sm:$0xff] %v1553_v0  ;;  %v562_v0 = vld [vmem:[%s3666_s4 + $0xbd8] sm:$0xff]  ;;  %v1586_v4 = vsub.f32 %v3673_v1, %v561_v62 }
 0x1a7   : > { %2578 = vst [vmem:[%s3685_s20 + $0xad0] sm:$0xff] %v1554_v3  ;;  %v563_v3 = vld [vmem:[%s3666_s4 + $0xbe0] sm:$0xff]  ;;  %v1587_v6 = vsub.f32 %v3673_v1, %v562_v0 }
 0x1a8   : > { %2579 = vst [vmem:[%s3685_s20 + $0xad8] sm:$0xff] %v1555_v5  ;;  %v564_v5 = vld [vmem:[%s3666_s4 + $0xbe8] sm:$0xff]  ;;  %v1588_v8 = vsub.f32 %v3673_v1, %v563_v3 }
 0x1a9   : > { %2580 = vst [vmem:[%s3685_s20 + $0xae0] sm:$0xff] %v1556_v7  ;;  %v565_v7 = vld [vmem:[%s3666_s4 + $0xbf0] sm:$0xff]  ;;  %v1589_v10 = vsub.f32 %v3673_v1, %v564_v5 }
 0x1aa   : > { %2581 = vst [vmem:[%s3685_s20 + $0xae8] sm:$0xff] %v1557_v9  ;;  %v566_v9 = vld [vmem:[%s3666_s4 + $0xbf8] sm:$0xff]  ;;  %v1590_v12 = vsub.f32 %v3673_v1, %v565_v7 }
 0x1ab   : > { %2582 = vst [vmem:[%s3685_s20 + $0xaf0] sm:$0xff] %v1558_v11  ;;  %v567_v11 = vld [vmem:[%s3666_s4 + $0xc00] sm:$0xff]  ;;  %v1591_v14 = vsub.f32 %v3673_v1, %v566_v9 }
 0x1ac   : > { %2583 = vst [vmem:[%s3685_s20 + $0xaf8] sm:$0xff] %v1559_v13  ;;  %v568_v13 = vld [vmem:[%s3666_s4 + $0xc08] sm:$0xff]  ;;  %v1592_v16 = vsub.f32 %v3673_v1, %v567_v11 }
 0x1ad   : > { %2584 = vst [vmem:[%s3685_s20 + $0xb00] sm:$0xff] %v1560_v15  ;;  %v569_v15 = vld [vmem:[%s3666_s4 + $0xc10] sm:$0xff]  ;;  %v1593_v18 = vsub.f32 %v3673_v1, %v568_v13 }
 0x1ae   : > { %2585 = vst [vmem:[%s3685_s20 + $0xb08] sm:$0xff] %v1561_v17  ;;  %v570_v17 = vld [vmem:[%s3666_s4 + $0xc18] sm:$0xff]  ;;  %v1594_v20 = vsub.f32 %v3673_v1, %v569_v15 }
 0x1af   : > { %2586 = vst [vmem:[%s3685_s20 + $0xb10] sm:$0xff] %v1562_v19  ;;  %v571_v19 = vld [vmem:[%s3666_s4 + $0xc20] sm:$0xff]  ;;  %v1595_v22 = vsub.f32 %v3673_v1, %v570_v17 }
 0x1b0   : > { %2587 = vst [vmem:[%s3685_s20 + $0xb18] sm:$0xff] %v1563_v21  ;;  %v572_v21 = vld [vmem:[%s3666_s4 + $0xc28] sm:$0xff]  ;;  %v1596_v24 = vsub.f32 %v3673_v1, %v571_v19 }
 0x1b1   : > { %2588 = vst [vmem:[%s3685_s20 + $0xb20] sm:$0xff] %v1564_v23  ;;  %v573_v23 = vld [vmem:[%s3666_s4 + $0xc30] sm:$0xff]  ;;  %v1597_v26 = vsub.f32 %v3673_v1, %v572_v21 }
 0x1b2   : > { %2589 = vst [vmem:[%s3685_s20 + $0xb28] sm:$0xff] %v1565_v25  ;;  %v574_v25 = vld [vmem:[%s3666_s4 + $0xc38] sm:$0xff]  ;;  %v1598_v28 = vsub.f32 %v3673_v1, %v573_v23 }
 0x1b3   : > { %2590 = vst [vmem:[%s3685_s20 + $0xb30] sm:$0xff] %v1566_v27  ;;  %v575_v27 = vld [vmem:[%s3666_s4 + $0xc40] sm:$0xff]  ;;  %v1599_v30 = vsub.f32 %v3673_v1, %v574_v25 }
 0x1b4   : > { %2591 = vst [vmem:[%s3685_s20 + $0xb38] sm:$0xff] %v1567_v29  ;;  %v576_v29 = vld [vmem:[%s3666_s4 + $0xc48] sm:$0xff]  ;;  %v1600_v32 = vsub.f32 %v3673_v1, %v575_v27 }
 0x1b5   : > { %2592 = vst [vmem:[%s3685_s20 + $0xb40] sm:$0xff] %v1568_v31  ;;  %v577_v31 = vld [vmem:[%s3666_s4 + $0xc50] sm:$0xff]  ;;  %v1601_v34 = vsub.f32 %v3673_v1, %v576_v29 }
 0x1b6   : > { %2593 = vst [vmem:[%s3685_s20 + $0xb48] sm:$0xff] %v1569_v33  ;;  %v578_v33 = vld [vmem:[%s3666_s4 + $0xc58] sm:$0xff]  ;;  %v1602_v36 = vsub.f32 %v3673_v1, %v577_v31 }
 0x1b7   : > { %2594 = vst [vmem:[%s3685_s20 + $0xb50] sm:$0xff] %v1570_v35  ;;  %v579_v35 = vld [vmem:[%s3666_s4 + $0xc60] sm:$0xff]  ;;  %v1603_v38 = vsub.f32 %v3673_v1, %v578_v33 }
 0x1b8   : > { %2595 = vst [vmem:[%s3685_s20 + $0xb58] sm:$0xff] %v1571_v37  ;;  %v580_v37 = vld [vmem:[%s3666_s4 + $0xc68] sm:$0xff]  ;;  %v1604_v40 = vsub.f32 %v3673_v1, %v579_v35 }
 0x1b9   : > { %2596 = vst [vmem:[%s3685_s20 + $0xb60] sm:$0xff] %v1572_v39  ;;  %v581_v39 = vld [vmem:[%s3666_s4 + $0xc70] sm:$0xff]  ;;  %v1605_v42 = vsub.f32 %v3673_v1, %v580_v37 }
 0x1ba   : > { %2597 = vst [vmem:[%s3685_s20 + $0xb68] sm:$0xff] %v1573_v41  ;;  %v582_v41 = vld [vmem:[%s3666_s4 + $0xc78] sm:$0xff]  ;;  %v1606_v44 = vsub.f32 %v3673_v1, %v581_v39 }
 0x1bb   : > { %2598 = vst [vmem:[%s3685_s20 + $0xb70] sm:$0xff] %v1574_v43  ;;  %v583_v43 = vld [vmem:[%s3666_s4 + $0xc80] sm:$0xff]  ;;  %v1607_v46 = vsub.f32 %v3673_v1, %v582_v41 }
 0x1bc   : > { %2599 = vst [vmem:[%s3685_s20 + $0xb78] sm:$0xff] %v1575_v45  ;;  %v584_v45 = vld [vmem:[%s3666_s4 + $0xc88] sm:$0xff]  ;;  %v1608_v48 = vsub.f32 %v3673_v1, %v583_v43 }
 0x1bd   : > { %2600 = vst [vmem:[%s3685_s20 + $0xb80] sm:$0xff] %v1576_v47  ;;  %v585_v47 = vld [vmem:[%s3666_s4 + $0xc90] sm:$0xff]  ;;  %v1609_v50 = vsub.f32 %v3673_v1, %v584_v45 }
 0x1be   : > { %2601 = vst [vmem:[%s3685_s20 + $0xb88] sm:$0xff] %v1577_v49  ;;  %v586_v49 = vld [vmem:[%s3666_s4 + $0xc98] sm:$0xff]  ;;  %v1610_v52 = vsub.f32 %v3673_v1, %v585_v47 }
 0x1bf   : > { %2602 = vst [vmem:[%s3685_s20 + $0xb90] sm:$0xff] %v1578_v51  ;;  %v587_v51 = vld [vmem:[%s3666_s4 + $0xca0] sm:$0xff]  ;;  %v1611_v54 = vsub.f32 %v3673_v1, %v586_v49 }
 0x1c0   : > { %2603 = vst [vmem:[%s3685_s20 + $0xb98] sm:$0xff] %v1579_v53  ;;  %v588_v53 = vld [vmem:[%s3666_s4 + $0xca8] sm:$0xff]  ;;  %v1612_v56 = vsub.f32 %v3673_v1, %v587_v51 }
 0x1c1   : > { %2604 = vst [vmem:[%s3685_s20 + $0xba0] sm:$0xff] %v1580_v55  ;;  %v589_v55 = vld [vmem:[%s3666_s4 + $0xcb0] sm:$0xff]  ;;  %v1613_v58 = vsub.f32 %v3673_v1, %v588_v53 }
 0x1c2   : > { %2605 = vst [vmem:[%s3685_s20 + $0xba8] sm:$0xff] %v1581_v57  ;;  %v590_v57 = vld [vmem:[%s3666_s4 + $0xcb8] sm:$0xff]  ;;  %v1614_v60 = vsub.f32 %v3673_v1, %v589_v55 }
 0x1c3   : > { %2606 = vst [vmem:[%s3685_s20 + $0xbb0] sm:$0xff] %v1582_v59  ;;  %v591_v59 = vld [vmem:[%s3666_s4 + $0xcc0] sm:$0xff]  ;;  %v1615_v62 = vsub.f32 %v3673_v1, %v590_v57 }
 0x1c4   : > { %2607 = vst [vmem:[%s3685_s20 + $0xbb8] sm:$0xff] %v1583_v61  ;;  %v592_v61 = vld [vmem:[%s3666_s4 + $0xcc8] sm:$0xff]  ;;  %v1616_v0 = vsub.f32 %v3673_v1, %v591_v59 }
 0x1c5   : > { %2608 = vst [vmem:[%s3685_s20 + $0xbc0] sm:$0xff] %v1584_v63  ;;  %v593_v63 = vld [vmem:[%s3666_s4 + $0xcd0] sm:$0xff]  ;;  %v1617_v3 = vsub.f32 %v3673_v1, %v592_v61 }
 0x1c6   : > { %2609 = vst [vmem:[%s3685_s20 + $0xbc8] sm:$0xff] %v1585_v2  ;;  %v594_v2 = vld [vmem:[%s3666_s4 + $0xcd8] sm:$0xff]  ;;  %v1618_v5 = vsub.f32 %v3673_v1, %v593_v63 }
 0x1c7   : > { %2610 = vst [vmem:[%s3685_s20 + $0xbd0] sm:$0xff] %v1586_v4  ;;  %v595_v4 = vld [vmem:[%s3666_s4 + $0xce0] sm:$0xff]  ;;  %v1619_v7 = vsub.f32 %v3673_v1, %v594_v2 }
 0x1c8   : > { %2611 = vst [vmem:[%s3685_s20 + $0xbd8] sm:$0xff] %v1587_v6  ;;  %v596_v6 = vld [vmem:[%s3666_s4 + $0xce8] sm:$0xff]  ;;  %v1620_v9 = vsub.f32 %v3673_v1, %v595_v4 }
 0x1c9   : > { %2612 = vst [vmem:[%s3685_s20 + $0xbe0] sm:$0xff] %v1588_v8  ;;  %v597_v8 = vld [vmem:[%s3666_s4 + $0xcf0] sm:$0xff]  ;;  %v1621_v11 = vsub.f32 %v3673_v1, %v596_v6 }
 0x1ca   : > { %2613 = vst [vmem:[%s3685_s20 + $0xbe8] sm:$0xff] %v1589_v10  ;;  %v598_v10 = vld [vmem:[%s3666_s4 + $0xcf8] sm:$0xff]  ;;  %v1622_v13 = vsub.f32 %v3673_v1, %v597_v8 }
 0x1cb   : > { %2614 = vst [vmem:[%s3685_s20 + $0xbf0] sm:$0xff] %v1590_v12  ;;  %v599_v12 = vld [vmem:[%s3666_s4 + $0xd00] sm:$0xff]  ;;  %v1623_v15 = vsub.f32 %v3673_v1, %v598_v10 }
 0x1cc   : > { %2615 = vst [vmem:[%s3685_s20 + $0xbf8] sm:$0xff] %v1591_v14  ;;  %v600_v14 = vld [vmem:[%s3666_s4 + $0xd08] sm:$0xff]  ;;  %v1624_v17 = vsub.f32 %v3673_v1, %v599_v12 }
 0x1cd   : > { %2616 = vst [vmem:[%s3685_s20 + $0xc00] sm:$0xff] %v1592_v16  ;;  %v601_v16 = vld [vmem:[%s3666_s4 + $0xd10] sm:$0xff]  ;;  %v1625_v19 = vsub.f32 %v3673_v1, %v600_v14 }
 0x1ce   : > { %2617 = vst [vmem:[%s3685_s20 + $0xc08] sm:$0xff] %v1593_v18  ;;  %v602_v18 = vld [vmem:[%s3666_s4 + $0xd18] sm:$0xff]  ;;  %v1626_v21 = vsub.f32 %v3673_v1, %v601_v16 }
 0x1cf   : > { %2618 = vst [vmem:[%s3685_s20 + $0xc10] sm:$0xff] %v1594_v20  ;;  %v603_v20 = vld [vmem:[%s3666_s4 + $0xd20] sm:$0xff]  ;;  %v1627_v23 = vsub.f32 %v3673_v1, %v602_v18 }
 0x1d0   : > { %2619 = vst [vmem:[%s3685_s20 + $0xc18] sm:$0xff] %v1595_v22  ;;  %v604_v22 = vld [vmem:[%s3666_s4 + $0xd28] sm:$0xff]  ;;  %v1628_v25 = vsub.f32 %v3673_v1, %v603_v20 }
 0x1d1   : > { %2620 = vst [vmem:[%s3685_s20 + $0xc20] sm:$0xff] %v1596_v24  ;;  %v605_v24 = vld [vmem:[%s3666_s4 + $0xd30] sm:$0xff]  ;;  %v1629_v27 = vsub.f32 %v3673_v1, %v604_v22 }
 0x1d2   : > { %2621 = vst [vmem:[%s3685_s20 + $0xc28] sm:$0xff] %v1597_v26  ;;  %v606_v26 = vld [vmem:[%s3666_s4 + $0xd38] sm:$0xff]  ;;  %v1630_v29 = vsub.f32 %v3673_v1, %v605_v24 }
 0x1d3   : > { %2622 = vst [vmem:[%s3685_s20 + $0xc30] sm:$0xff] %v1598_v28  ;;  %v607_v28 = vld [vmem:[%s3666_s4 + $0xd40] sm:$0xff]  ;;  %v1631_v31 = vsub.f32 %v3673_v1, %v606_v26 }
 0x1d4   : > { %2623 = vst [vmem:[%s3685_s20 + $0xc38] sm:$0xff] %v1599_v30  ;;  %v608_v30 = vld [vmem:[%s3666_s4 + $0xd48] sm:$0xff]  ;;  %v1632_v33 = vsub.f32 %v3673_v1, %v607_v28 }
 0x1d5   : > { %2624 = vst [vmem:[%s3685_s20 + $0xc40] sm:$0xff] %v1600_v32  ;;  %v609_v32 = vld [vmem:[%s3666_s4 + $0xd50] sm:$0xff]  ;;  %v1633_v35 = vsub.f32 %v3673_v1, %v608_v30 }
 0x1d6   : > { %2625 = vst [vmem:[%s3685_s20 + $0xc48] sm:$0xff] %v1601_v34  ;;  %v610_v34 = vld [vmem:[%s3666_s4 + $0xd58] sm:$0xff]  ;;  %v1634_v37 = vsub.f32 %v3673_v1, %v609_v32 }
 0x1d7   : > { %2626 = vst [vmem:[%s3685_s20 + $0xc50] sm:$0xff] %v1602_v36  ;;  %v611_v36 = vld [vmem:[%s3666_s4 + $0xd60] sm:$0xff]  ;;  %v1635_v39 = vsub.f32 %v3673_v1, %v610_v34 }
 0x1d8   : > { %2627 = vst [vmem:[%s3685_s20 + $0xc58] sm:$0xff] %v1603_v38  ;;  %v612_v38 = vld [vmem:[%s3666_s4 + $0xd68] sm:$0xff]  ;;  %v1636_v41 = vsub.f32 %v3673_v1, %v611_v36 }
 0x1d9   : > { %2628 = vst [vmem:[%s3685_s20 + $0xc60] sm:$0xff] %v1604_v40  ;;  %v613_v40 = vld [vmem:[%s3666_s4 + $0xd70] sm:$0xff]  ;;  %v1637_v43 = vsub.f32 %v3673_v1, %v612_v38 }
 0x1da   : > { %2629 = vst [vmem:[%s3685_s20 + $0xc68] sm:$0xff] %v1605_v42  ;;  %v614_v42 = vld [vmem:[%s3666_s4 + $0xd78] sm:$0xff]  ;;  %v1638_v45 = vsub.f32 %v3673_v1, %v613_v40 }
 0x1db   : > { %2630 = vst [vmem:[%s3685_s20 + $0xc70] sm:$0xff] %v1606_v44  ;;  %v615_v44 = vld [vmem:[%s3666_s4 + $0xd80] sm:$0xff]  ;;  %v1639_v47 = vsub.f32 %v3673_v1, %v614_v42 }
 0x1dc   : > { %2631 = vst [vmem:[%s3685_s20 + $0xc78] sm:$0xff] %v1607_v46  ;;  %v616_v46 = vld [vmem:[%s3666_s4 + $0xd88] sm:$0xff]  ;;  %v1640_v49 = vsub.f32 %v3673_v1, %v615_v44 }
 0x1dd   : > { %2632 = vst [vmem:[%s3685_s20 + $0xc80] sm:$0xff] %v1608_v48  ;;  %v617_v48 = vld [vmem:[%s3666_s4 + $0xd90] sm:$0xff]  ;;  %v1641_v51 = vsub.f32 %v3673_v1, %v616_v46 }
 0x1de   : > { %2633 = vst [vmem:[%s3685_s20 + $0xc88] sm:$0xff] %v1609_v50  ;;  %v618_v50 = vld [vmem:[%s3666_s4 + $0xd98] sm:$0xff]  ;;  %v1642_v53 = vsub.f32 %v3673_v1, %v617_v48 }
 0x1df   : > { %2634 = vst [vmem:[%s3685_s20 + $0xc90] sm:$0xff] %v1610_v52  ;;  %v619_v52 = vld [vmem:[%s3666_s4 + $0xda0] sm:$0xff]  ;;  %v1643_v55 = vsub.f32 %v3673_v1, %v618_v50 }
 0x1e0   : > { %2635 = vst [vmem:[%s3685_s20 + $0xc98] sm:$0xff] %v1611_v54  ;;  %v620_v54 = vld [vmem:[%s3666_s4 + $0xda8] sm:$0xff]  ;;  %v1644_v57 = vsub.f32 %v3673_v1, %v619_v52 }
 0x1e1   : > { %2636 = vst [vmem:[%s3685_s20 + $0xca0] sm:$0xff] %v1612_v56  ;;  %v621_v56 = vld [vmem:[%s3666_s4 + $0xdb0] sm:$0xff]  ;;  %v1645_v59 = vsub.f32 %v3673_v1, %v620_v54 }
 0x1e2   : > { %2637 = vst [vmem:[%s3685_s20 + $0xca8] sm:$0xff] %v1613_v58  ;;  %v622_v58 = vld [vmem:[%s3666_s4 + $0xdb8] sm:$0xff]  ;;  %v1646_v61 = vsub.f32 %v3673_v1, %v621_v56 }
 0x1e3   : > { %2638 = vst [vmem:[%s3685_s20 + $0xcb0] sm:$0xff] %v1614_v60  ;;  %v623_v60 = vld [vmem:[%s3666_s4 + $0xdc0] sm:$0xff]  ;;  %v1647_v63 = vsub.f32 %v3673_v1, %v622_v58 }
 0x1e4   : > { %2639 = vst [vmem:[%s3685_s20 + $0xcb8] sm:$0xff] %v1615_v62  ;;  %v624_v62 = vld [vmem:[%s3666_s4 + $0xdc8] sm:$0xff]  ;;  %v1648_v2 = vsub.f32 %v3673_v1, %v623_v60 }
 0x1e5   : > { %2640 = vst [vmem:[%s3685_s20 + $0xcc0] sm:$0xff] %v1616_v0  ;;  %v625_v0 = vld [vmem:[%s3666_s4 + $0xdd0] sm:$0xff]  ;;  %v1649_v4 = vsub.f32 %v3673_v1, %v624_v62 }
 0x1e6   : > { %2641 = vst [vmem:[%s3685_s20 + $0xcc8] sm:$0xff] %v1617_v3  ;;  %v626_v3 = vld [vmem:[%s3666_s4 + $0xdd8] sm:$0xff]  ;;  %v1650_v6 = vsub.f32 %v3673_v1, %v625_v0 }
 0x1e7   : > { %2642 = vst [vmem:[%s3685_s20 + $0xcd0] sm:$0xff] %v1618_v5  ;;  %v627_v5 = vld [vmem:[%s3666_s4 + $0xde0] sm:$0xff]  ;;  %v1651_v8 = vsub.f32 %v3673_v1, %v626_v3 }
 0x1e8   : > { %2643 = vst [vmem:[%s3685_s20 + $0xcd8] sm:$0xff] %v1619_v7  ;;  %v628_v7 = vld [vmem:[%s3666_s4 + $0xde8] sm:$0xff]  ;;  %v1652_v10 = vsub.f32 %v3673_v1, %v627_v5 }
 0x1e9   : > { %2644 = vst [vmem:[%s3685_s20 + $0xce0] sm:$0xff] %v1620_v9  ;;  %v629_v9 = vld [vmem:[%s3666_s4 + $0xdf0] sm:$0xff]  ;;  %v1653_v12 = vsub.f32 %v3673_v1, %v628_v7 }
 0x1ea   : > { %2645 = vst [vmem:[%s3685_s20 + $0xce8] sm:$0xff] %v1621_v11  ;;  %v630_v11 = vld [vmem:[%s3666_s4 + $0xdf8] sm:$0xff]  ;;  %v1654_v14 = vsub.f32 %v3673_v1, %v629_v9 }
 0x1eb   : > { %2646 = vst [vmem:[%s3685_s20 + $0xcf0] sm:$0xff] %v1622_v13  ;;  %v631_v13 = vld [vmem:[%s3666_s4 + $0xe00] sm:$0xff]  ;;  %v1655_v16 = vsub.f32 %v3673_v1, %v630_v11 }
 0x1ec   : > { %2647 = vst [vmem:[%s3685_s20 + $0xcf8] sm:$0xff] %v1623_v15  ;;  %v632_v15 = vld [vmem:[%s3666_s4 + $0xe08] sm:$0xff]  ;;  %v1656_v18 = vsub.f32 %v3673_v1, %v631_v13 }
 0x1ed   : > { %2648 = vst [vmem:[%s3685_s20 + $0xd00] sm:$0xff] %v1624_v17  ;;  %v633_v17 = vld [vmem:[%s3666_s4 + $0xe10] sm:$0xff]  ;;  %v1657_v20 = vsub.f32 %v3673_v1, %v632_v15 }
 0x1ee   : > { %2649 = vst [vmem:[%s3685_s20 + $0xd08] sm:$0xff] %v1625_v19  ;;  %v634_v19 = vld [vmem:[%s3666_s4 + $0xe18] sm:$0xff]  ;;  %v1658_v22 = vsub.f32 %v3673_v1, %v633_v17 }
 0x1ef   : > { %2650 = vst [vmem:[%s3685_s20 + $0xd10] sm:$0xff] %v1626_v21  ;;  %v635_v21 = vld [vmem:[%s3666_s4 + $0xe20] sm:$0xff]  ;;  %v1659_v24 = vsub.f32 %v3673_v1, %v634_v19 }
 0x1f0   : > { %2651 = vst [vmem:[%s3685_s20 + $0xd18] sm:$0xff] %v1627_v23  ;;  %v636_v23 = vld [vmem:[%s3666_s4 + $0xe28] sm:$0xff]  ;;  %v1660_v26 = vsub.f32 %v3673_v1, %v635_v21 }
 0x1f1   : > { %2652 = vst [vmem:[%s3685_s20 + $0xd20] sm:$0xff] %v1628_v25  ;;  %v637_v25 = vld [vmem:[%s3666_s4 + $0xe30] sm:$0xff]  ;;  %v1661_v28 = vsub.f32 %v3673_v1, %v636_v23 }
 0x1f2   : > { %2653 = vst [vmem:[%s3685_s20 + $0xd28] sm:$0xff] %v1629_v27  ;;  %v638_v27 = vld [vmem:[%s3666_s4 + $0xe38] sm:$0xff]  ;;  %v1662_v30 = vsub.f32 %v3673_v1, %v637_v25 }
 0x1f3   : > { %2654 = vst [vmem:[%s3685_s20 + $0xd30] sm:$0xff] %v1630_v29  ;;  %v639_v29 = vld [vmem:[%s3666_s4 + $0xe40] sm:$0xff]  ;;  %v1663_v32 = vsub.f32 %v3673_v1, %v638_v27 }
 0x1f4   : > { %2655 = vst [vmem:[%s3685_s20 + $0xd38] sm:$0xff] %v1631_v31  ;;  %v640_v31 = vld [vmem:[%s3666_s4 + $0xe48] sm:$0xff]  ;;  %v1664_v34 = vsub.f32 %v3673_v1, %v639_v29 }
 0x1f5   : > { %2656 = vst [vmem:[%s3685_s20 + $0xd40] sm:$0xff] %v1632_v33  ;;  %v641_v33 = vld [vmem:[%s3666_s4 + $0xe50] sm:$0xff]  ;;  %v1665_v36 = vsub.f32 %v3673_v1, %v640_v31 }
 0x1f6   : > { %2657 = vst [vmem:[%s3685_s20 + $0xd48] sm:$0xff] %v1633_v35  ;;  %v642_v35 = vld [vmem:[%s3666_s4 + $0xe58] sm:$0xff]  ;;  %v1666_v38 = vsub.f32 %v3673_v1, %v641_v33 }
 0x1f7   : > { %2658 = vst [vmem:[%s3685_s20 + $0xd50] sm:$0xff] %v1634_v37  ;;  %v643_v37 = vld [vmem:[%s3666_s4 + $0xe60] sm:$0xff]  ;;  %v1667_v40 = vsub.f32 %v3673_v1, %v642_v35 }
 0x1f8   : > { %2659 = vst [vmem:[%s3685_s20 + $0xd58] sm:$0xff] %v1635_v39  ;;  %v644_v39 = vld [vmem:[%s3666_s4 + $0xe68] sm:$0xff]  ;;  %v1668_v42 = vsub.f32 %v3673_v1, %v643_v37 }
 0x1f9   : > { %2660 = vst [vmem:[%s3685_s20 + $0xd60] sm:$0xff] %v1636_v41  ;;  %v645_v41 = vld [vmem:[%s3666_s4 + $0xe70] sm:$0xff]  ;;  %v1669_v44 = vsub.f32 %v3673_v1, %v644_v39 }
 0x1fa   : > { %2661 = vst [vmem:[%s3685_s20 + $0xd68] sm:$0xff] %v1637_v43  ;;  %v646_v43 = vld [vmem:[%s3666_s4 + $0xe78] sm:$0xff]  ;;  %v1670_v46 = vsub.f32 %v3673_v1, %v645_v41 }
 0x1fb   : > { %2662 = vst [vmem:[%s3685_s20 + $0xd70] sm:$0xff] %v1638_v45  ;;  %v647_v45 = vld [vmem:[%s3666_s4 + $0xe80] sm:$0xff]  ;;  %v1671_v48 = vsub.f32 %v3673_v1, %v646_v43 }
 0x1fc   : > { %2663 = vst [vmem:[%s3685_s20 + $0xd78] sm:$0xff] %v1639_v47  ;;  %v648_v47 = vld [vmem:[%s3666_s4 + $0xe88] sm:$0xff]  ;;  %v1672_v50 = vsub.f32 %v3673_v1, %v647_v45 }
 0x1fd   : > { %2664 = vst [vmem:[%s3685_s20 + $0xd80] sm:$0xff] %v1640_v49  ;;  %v649_v49 = vld [vmem:[%s3666_s4 + $0xe90] sm:$0xff]  ;;  %v1673_v52 = vsub.f32 %v3673_v1, %v648_v47 }
 0x1fe   : > { %2665 = vst [vmem:[%s3685_s20 + $0xd88] sm:$0xff] %v1641_v51  ;;  %v650_v51 = vld [vmem:[%s3666_s4 + $0xe98] sm:$0xff]  ;;  %v1674_v54 = vsub.f32 %v3673_v1, %v649_v49 }
 0x1ff   : > { %2666 = vst [vmem:[%s3685_s20 + $0xd90] sm:$0xff] %v1642_v53  ;;  %v651_v53 = vld [vmem:[%s3666_s4 + $0xea0] sm:$0xff]  ;;  %v1675_v56 = vsub.f32 %v3673_v1, %v650_v51 }
 0x200   : > { %2667 = vst [vmem:[%s3685_s20 + $0xd98] sm:$0xff] %v1643_v55  ;;  %v652_v55 = vld [vmem:[%s3666_s4 + $0xea8] sm:$0xff]  ;;  %v1676_v58 = vsub.f32 %v3673_v1, %v651_v53 }
 0x201   : > { %2668 = vst [vmem:[%s3685_s20 + $0xda0] sm:$0xff] %v1644_v57  ;;  %v653_v57 = vld [vmem:[%s3666_s4 + $0xeb0] sm:$0xff]  ;;  %v1677_v60 = vsub.f32 %v3673_v1, %v652_v55 }
 0x202   : > { %2669 = vst [vmem:[%s3685_s20 + $0xda8] sm:$0xff] %v1645_v59  ;;  %v654_v59 = vld [vmem:[%s3666_s4 + $0xeb8] sm:$0xff]  ;;  %v1678_v62 = vsub.f32 %v3673_v1, %v653_v57 }
 0x203   : > { %2670 = vst [vmem:[%s3685_s20 + $0xdb0] sm:$0xff] %v1646_v61  ;;  %v655_v61 = vld [vmem:[%s3666_s4 + $0xec0] sm:$0xff]  ;;  %v1679_v0 = vsub.f32 %v3673_v1, %v654_v59 }
 0x204   : > { %2671 = vst [vmem:[%s3685_s20 + $0xdb8] sm:$0xff] %v1647_v63  ;;  %v656_v63 = vld [vmem:[%s3666_s4 + $0xec8] sm:$0xff]  ;;  %v1680_v3 = vsub.f32 %v3673_v1, %v655_v61 }
 0x205   : > { %2672 = vst [vmem:[%s3685_s20 + $0xdc0] sm:$0xff] %v1648_v2  ;;  %v657_v2 = vld [vmem:[%s3666_s4 + $0xed0] sm:$0xff]  ;;  %v1681_v5 = vsub.f32 %v3673_v1, %v656_v63 }
 0x206   : > { %2673 = vst [vmem:[%s3685_s20 + $0xdc8] sm:$0xff] %v1649_v4  ;;  %v658_v4 = vld [vmem:[%s3666_s4 + $0xed8] sm:$0xff]  ;;  %v1682_v7 = vsub.f32 %v3673_v1, %v657_v2 }
 0x207   : > { %2674 = vst [vmem:[%s3685_s20 + $0xdd0] sm:$0xff] %v1650_v6  ;;  %v659_v6 = vld [vmem:[%s3666_s4 + $0xee0] sm:$0xff]  ;;  %v1683_v9 = vsub.f32 %v3673_v1, %v658_v4 }
 0x208   : > { %2675 = vst [vmem:[%s3685_s20 + $0xdd8] sm:$0xff] %v1651_v8  ;;  %v660_v8 = vld [vmem:[%s3666_s4 + $0xee8] sm:$0xff]  ;;  %v1684_v11 = vsub.f32 %v3673_v1, %v659_v6 }
 0x209   : > { %2676 = vst [vmem:[%s3685_s20 + $0xde0] sm:$0xff] %v1652_v10  ;;  %v661_v10 = vld [vmem:[%s3666_s4 + $0xef0] sm:$0xff]  ;;  %v1685_v13 = vsub.f32 %v3673_v1, %v660_v8 }
 0x20a   : > { %2677 = vst [vmem:[%s3685_s20 + $0xde8] sm:$0xff] %v1653_v12  ;;  %v662_v12 = vld [vmem:[%s3666_s4 + $0xef8] sm:$0xff]  ;;  %v1686_v15 = vsub.f32 %v3673_v1, %v661_v10 }
 0x20b   : > { %2678 = vst [vmem:[%s3685_s20 + $0xdf0] sm:$0xff] %v1654_v14  ;;  %v663_v14 = vld [vmem:[%s3666_s4 + $0xf00] sm:$0xff]  ;;  %v1687_v17 = vsub.f32 %v3673_v1, %v662_v12 }
 0x20c   : > { %2679 = vst [vmem:[%s3685_s20 + $0xdf8] sm:$0xff] %v1655_v16  ;;  %v664_v16 = vld [vmem:[%s3666_s4 + $0xf08] sm:$0xff]  ;;  %v1688_v19 = vsub.f32 %v3673_v1, %v663_v14 }
 0x20d   : > { %2680 = vst [vmem:[%s3685_s20 + $0xe00] sm:$0xff] %v1656_v18  ;;  %v665_v18 = vld [vmem:[%s3666_s4 + $0xf10] sm:$0xff]  ;;  %v1689_v21 = vsub.f32 %v3673_v1, %v664_v16 }
 0x20e   : > { %2681 = vst [vmem:[%s3685_s20 + $0xe08] sm:$0xff] %v1657_v20  ;;  %v666_v20 = vld [vmem:[%s3666_s4 + $0xf18] sm:$0xff]  ;;  %v1690_v23 = vsub.f32 %v3673_v1, %v665_v18 }
 0x20f   : > { %2682 = vst [vmem:[%s3685_s20 + $0xe10] sm:$0xff] %v1658_v22  ;;  %v667_v22 = vld [vmem:[%s3666_s4 + $0xf20] sm:$0xff]  ;;  %v1691_v25 = vsub.f32 %v3673_v1, %v666_v20 }
 0x210   : > { %2683 = vst [vmem:[%s3685_s20 + $0xe18] sm:$0xff] %v1659_v24  ;;  %v668_v24 = vld [vmem:[%s3666_s4 + $0xf28] sm:$0xff]  ;;  %v1692_v27 = vsub.f32 %v3673_v1, %v667_v22 }
 0x211   : > { %2684 = vst [vmem:[%s3685_s20 + $0xe20] sm:$0xff] %v1660_v26  ;;  %v669_v26 = vld [vmem:[%s3666_s4 + $0xf30] sm:$0xff]  ;;  %v1693_v29 = vsub.f32 %v3673_v1, %v668_v24 }
 0x212   : > { %2685 = vst [vmem:[%s3685_s20 + $0xe28] sm:$0xff] %v1661_v28  ;;  %v670_v28 = vld [vmem:[%s3666_s4 + $0xf38] sm:$0xff]  ;;  %v1694_v31 = vsub.f32 %v3673_v1, %v669_v26 }
 0x213   : > { %2686 = vst [vmem:[%s3685_s20 + $0xe30] sm:$0xff] %v1662_v30  ;;  %v671_v30 = vld [vmem:[%s3666_s4 + $0xf40] sm:$0xff]  ;;  %v1695_v33 = vsub.f32 %v3673_v1, %v670_v28 }
 0x214   : > { %2687 = vst [vmem:[%s3685_s20 + $0xe38] sm:$0xff] %v1663_v32  ;;  %v672_v32 = vld [vmem:[%s3666_s4 + $0xf48] sm:$0xff]  ;;  %v1696_v35 = vsub.f32 %v3673_v1, %v671_v30 }
 0x215   : > { %2688 = vst [vmem:[%s3685_s20 + $0xe40] sm:$0xff] %v1664_v34  ;;  %v673_v34 = vld [vmem:[%s3666_s4 + $0xf50] sm:$0xff]  ;;  %v1697_v37 = vsub.f32 %v3673_v1, %v672_v32 }
 0x216   : > { %2689 = vst [vmem:[%s3685_s20 + $0xe48] sm:$0xff] %v1665_v36  ;;  %v674_v36 = vld [vmem:[%s3666_s4 + $0xf58] sm:$0xff]  ;;  %v1698_v39 = vsub.f32 %v3673_v1, %v673_v34 }
 0x217   : > { %2690 = vst [vmem:[%s3685_s20 + $0xe50] sm:$0xff] %v1666_v38  ;;  %v675_v38 = vld [vmem:[%s3666_s4 + $0xf60] sm:$0xff]  ;;  %v1699_v41 = vsub.f32 %v3673_v1, %v674_v36 }
 0x218   : > { %2691 = vst [vmem:[%s3685_s20 + $0xe58] sm:$0xff] %v1667_v40  ;;  %v676_v40 = vld [vmem:[%s3666_s4 + $0xf68] sm:$0xff]  ;;  %v1700_v43 = vsub.f32 %v3673_v1, %v675_v38 }
 0x219   : > { %2692 = vst [vmem:[%s3685_s20 + $0xe60] sm:$0xff] %v1668_v42  ;;  %v677_v42 = vld [vmem:[%s3666_s4 + $0xf70] sm:$0xff]  ;;  %v1701_v45 = vsub.f32 %v3673_v1, %v676_v40 }
 0x21a   : > { %2693 = vst [vmem:[%s3685_s20 + $0xe68] sm:$0xff] %v1669_v44  ;;  %v678_v44 = vld [vmem:[%s3666_s4 + $0xf78] sm:$0xff]  ;;  %v1702_v47 = vsub.f32 %v3673_v1, %v677_v42 }
 0x21b   : > { %2694 = vst [vmem:[%s3685_s20 + $0xe70] sm:$0xff] %v1670_v46  ;;  %v679_v46 = vld [vmem:[%s3666_s4 + $0xf80] sm:$0xff]  ;;  %v1703_v49 = vsub.f32 %v3673_v1, %v678_v44 }
 0x21c   : > { %2695 = vst [vmem:[%s3685_s20 + $0xe78] sm:$0xff] %v1671_v48  ;;  %v680_v48 = vld [vmem:[%s3666_s4 + $0xf88] sm:$0xff]  ;;  %v1704_v51 = vsub.f32 %v3673_v1, %v679_v46 }
 0x21d   : > { %2696 = vst [vmem:[%s3685_s20 + $0xe80] sm:$0xff] %v1672_v50  ;;  %v681_v50 = vld [vmem:[%s3666_s4 + $0xf90] sm:$0xff]  ;;  %v1705_v53 = vsub.f32 %v3673_v1, %v680_v48 }
 0x21e   : > { %2697 = vst [vmem:[%s3685_s20 + $0xe88] sm:$0xff] %v1673_v52  ;;  %v682_v52 = vld [vmem:[%s3666_s4 + $0xf98] sm:$0xff]  ;;  %v1706_v55 = vsub.f32 %v3673_v1, %v681_v50 }
 0x21f   : > { %2698 = vst [vmem:[%s3685_s20 + $0xe90] sm:$0xff] %v1674_v54  ;;  %v683_v54 = vld [vmem:[%s3666_s4 + $0xfa0] sm:$0xff]  ;;  %v1707_v57 = vsub.f32 %v3673_v1, %v682_v52 }
 0x220   : > { %2699 = vst [vmem:[%s3685_s20 + $0xe98] sm:$0xff] %v1675_v56  ;;  %v684_v56 = vld [vmem:[%s3666_s4 + $0xfa8] sm:$0xff]  ;;  %v1708_v59 = vsub.f32 %v3673_v1, %v683_v54 }
 0x221   : > { %2700 = vst [vmem:[%s3685_s20 + $0xea0] sm:$0xff] %v1676_v58  ;;  %v685_v58 = vld [vmem:[%s3666_s4 + $0xfb0] sm:$0xff]  ;;  %v1709_v61 = vsub.f32 %v3673_v1, %v684_v56 }
 0x222   : > { %2701 = vst [vmem:[%s3685_s20 + $0xea8] sm:$0xff] %v1677_v60  ;;  %v686_v60 = vld [vmem:[%s3666_s4 + $0xfb8] sm:$0xff]  ;;  %v1710_v63 = vsub.f32 %v3673_v1, %v685_v58 }
 0x223   : > { %2702 = vst [vmem:[%s3685_s20 + $0xeb0] sm:$0xff] %v1678_v62  ;;  %v687_v62 = vld [vmem:[%s3666_s4 + $0xfc0] sm:$0xff]  ;;  %v1711_v2 = vsub.f32 %v3673_v1, %v686_v60 }
 0x224   : > { %2703 = vst [vmem:[%s3685_s20 + $0xeb8] sm:$0xff] %v1679_v0  ;;  %v688_v0 = vld [vmem:[%s3666_s4 + $0xfc8] sm:$0xff]  ;;  %v1712_v4 = vsub.f32 %v3673_v1, %v687_v62 }
 0x225   : > { %2704 = vst [vmem:[%s3685_s20 + $0xec0] sm:$0xff] %v1680_v3  ;;  %v689_v3 = vld [vmem:[%s3666_s4 + $0xfd0] sm:$0xff]  ;;  %v1713_v6 = vsub.f32 %v3673_v1, %v688_v0 }
 0x226   : > { %2705 = vst [vmem:[%s3685_s20 + $0xec8] sm:$0xff] %v1681_v5  ;;  %v690_v5 = vld [vmem:[%s3666_s4 + $0xfd8] sm:$0xff]  ;;  %v1714_v8 = vsub.f32 %v3673_v1, %v689_v3 }
 0x227   : > { %2706 = vst [vmem:[%s3685_s20 + $0xed0] sm:$0xff] %v1682_v7  ;;  %v691_v7 = vld [vmem:[%s3666_s4 + $0xfe0] sm:$0xff]  ;;  %v1715_v10 = vsub.f32 %v3673_v1, %v690_v5 }
 0x228   : > { %2707 = vst [vmem:[%s3685_s20 + $0xed8] sm:$0xff] %v1683_v9  ;;  %v692_v9 = vld [vmem:[%s3666_s4 + $0xfe8] sm:$0xff]  ;;  %v1716_v12 = vsub.f32 %v3673_v1, %v691_v7 }
 0x229   : > { %2708 = vst [vmem:[%s3685_s20 + $0xee0] sm:$0xff] %v1684_v11  ;;  %v693_v11 = vld [vmem:[%s3666_s4 + $0xff0] sm:$0xff]  ;;  %v1717_v14 = vsub.f32 %v3673_v1, %v692_v9 }
 0x22a   : > { %2709 = vst [vmem:[%s3685_s20 + $0xee8] sm:$0xff] %v1685_v13  ;;  %v694_v13 = vld [vmem:[%s3666_s4 + $0xff8] sm:$0xff]  ;;  %v1718_v16 = vsub.f32 %v3673_v1, %v693_v11 }
 0x22b   : > { %2710 = vst [vmem:[%s3685_s20 + $0xef0] sm:$0xff] %v1686_v15  ;;  %v695_v15 = vld [vmem:[%s3666_s4 + $0x1000] sm:$0xff]  ;;  %v1719_v18 = vsub.f32 %v3673_v1, %v694_v13 }
 0x22c   : > { %2711 = vst [vmem:[%s3685_s20 + $0xef8] sm:$0xff] %v1687_v17  ;;  %v696_v17 = vld [vmem:[%s3666_s4 + $0x1008] sm:$0xff]  ;;  %v1720_v20 = vsub.f32 %v3673_v1, %v695_v15 }
 0x22d   : > { %2712 = vst [vmem:[%s3685_s20 + $0xf00] sm:$0xff] %v1688_v19  ;;  %v697_v19 = vld [vmem:[%s3666_s4 + $0x1010] sm:$0xff]  ;;  %v1721_v22 = vsub.f32 %v3673_v1, %v696_v17 }
 0x22e   : > { %2713 = vst [vmem:[%s3685_s20 + $0xf08] sm:$0xff] %v1689_v21  ;;  %v698_v21 = vld [vmem:[%s3666_s4 + $0x1018] sm:$0xff]  ;;  %v1722_v24 = vsub.f32 %v3673_v1, %v697_v19 }
 0x22f   : > { %2714 = vst [vmem:[%s3685_s20 + $0xf10] sm:$0xff] %v1690_v23  ;;  %v699_v23 = vld [vmem:[%s3666_s4 + $0x1020] sm:$0xff]  ;;  %v1723_v26 = vsub.f32 %v3673_v1, %v698_v21 }
 0x230   : > { %2715 = vst [vmem:[%s3685_s20 + $0xf18] sm:$0xff] %v1691_v25  ;;  %v700_v25 = vld [vmem:[%s3666_s4 + $0x1028] sm:$0xff]  ;;  %v1724_v28 = vsub.f32 %v3673_v1, %v699_v23 }
 0x231   : > { %2716 = vst [vmem:[%s3685_s20 + $0xf20] sm:$0xff] %v1692_v27  ;;  %v701_v27 = vld [vmem:[%s3666_s4 + $0x1030] sm:$0xff]  ;;  %v1725_v30 = vsub.f32 %v3673_v1, %v700_v25 }
 0x232   : > { %2717 = vst [vmem:[%s3685_s20 + $0xf28] sm:$0xff] %v1693_v29  ;;  %v702_v29 = vld [vmem:[%s3666_s4 + $0x1038] sm:$0xff]  ;;  %v1726_v32 = vsub.f32 %v3673_v1, %v701_v27 }
 0x233   : > { %2718 = vst [vmem:[%s3685_s20 + $0xf30] sm:$0xff] %v1694_v31  ;;  %v703_v31 = vld [vmem:[%s3666_s4 + $0x1040] sm:$0xff]  ;;  %v1727_v34 = vsub.f32 %v3673_v1, %v702_v29 }
 0x234   : > { %2719 = vst [vmem:[%s3685_s20 + $0xf38] sm:$0xff] %v1695_v33  ;;  %v704_v33 = vld [vmem:[%s3666_s4 + $0x1048] sm:$0xff]  ;;  %v1728_v36 = vsub.f32 %v3673_v1, %v703_v31 }
 0x235   : > { %2720 = vst [vmem:[%s3685_s20 + $0xf40] sm:$0xff] %v1696_v35  ;;  %v705_v35 = vld [vmem:[%s3666_s4 + $0x1050] sm:$0xff]  ;;  %v1729_v38 = vsub.f32 %v3673_v1, %v704_v33 }
 0x236   : > { %2721 = vst [vmem:[%s3685_s20 + $0xf48] sm:$0xff] %v1697_v37  ;;  %v706_v37 = vld [vmem:[%s3666_s4 + $0x1058] sm:$0xff]  ;;  %v1730_v40 = vsub.f32 %v3673_v1, %v705_v35 }
 0x237   : > { %2722 = vst [vmem:[%s3685_s20 + $0xf50] sm:$0xff] %v1698_v39  ;;  %v707_v39 = vld [vmem:[%s3666_s4 + $0x1060] sm:$0xff]  ;;  %v1731_v42 = vsub.f32 %v3673_v1, %v706_v37 }
 0x238   : > { %2723 = vst [vmem:[%s3685_s20 + $0xf58] sm:$0xff] %v1699_v41  ;;  %v708_v41 = vld [vmem:[%s3666_s4 + $0x1068] sm:$0xff]  ;;  %v1732_v44 = vsub.f32 %v3673_v1, %v707_v39 }
 0x239   : > { %2724 = vst [vmem:[%s3685_s20 + $0xf60] sm:$0xff] %v1700_v43  ;;  %v709_v43 = vld [vmem:[%s3666_s4 + $0x1070] sm:$0xff]  ;;  %v1733_v46 = vsub.f32 %v3673_v1, %v708_v41 }
 0x23a   : > { %2725 = vst [vmem:[%s3685_s20 + $0xf68] sm:$0xff] %v1701_v45  ;;  %v710_v45 = vld [vmem:[%s3666_s4 + $0x1078] sm:$0xff]  ;;  %v1734_v48 = vsub.f32 %v3673_v1, %v709_v43 }
 0x23b   : > { %2726 = vst [vmem:[%s3685_s20 + $0xf70] sm:$0xff] %v1702_v47  ;;  %v711_v47 = vld [vmem:[%s3666_s4 + $0x1080] sm:$0xff]  ;;  %v1735_v50 = vsub.f32 %v3673_v1, %v710_v45 }
 0x23c   : > { %2727 = vst [vmem:[%s3685_s20 + $0xf78] sm:$0xff] %v1703_v49  ;;  %v712_v49 = vld [vmem:[%s3666_s4 + $0x1088] sm:$0xff]  ;;  %v1736_v52 = vsub.f32 %v3673_v1, %v711_v47 }
 0x23d   : > { %2728 = vst [vmem:[%s3685_s20 + $0xf80] sm:$0xff] %v1704_v51  ;;  %v713_v51 = vld [vmem:[%s3666_s4 + $0x1090] sm:$0xff]  ;;  %v1737_v54 = vsub.f32 %v3673_v1, %v712_v49 }
 0x23e   : > { %2729 = vst [vmem:[%s3685_s20 + $0xf88] sm:$0xff] %v1705_v53  ;;  %v714_v53 = vld [vmem:[%s3666_s4 + $0x1098] sm:$0xff]  ;;  %v1738_v56 = vsub.f32 %v3673_v1, %v713_v51 }
 0x23f   : > { %2730 = vst [vmem:[%s3685_s20 + $0xf90] sm:$0xff] %v1706_v55  ;;  %v715_v55 = vld [vmem:[%s3666_s4 + $0x10a0] sm:$0xff]  ;;  %v1739_v58 = vsub.f32 %v3673_v1, %v714_v53 }
 0x240   : > { %2731 = vst [vmem:[%s3685_s20 + $0xf98] sm:$0xff] %v1707_v57  ;;  %v716_v57 = vld [vmem:[%s3666_s4 + $0x10a8] sm:$0xff]  ;;  %v1740_v60 = vsub.f32 %v3673_v1, %v715_v55 }
 0x241   : > { %2732 = vst [vmem:[%s3685_s20 + $0xfa0] sm:$0xff] %v1708_v59  ;;  %v717_v59 = vld [vmem:[%s3666_s4 + $0x10b0] sm:$0xff]  ;;  %v1741_v62 = vsub.f32 %v3673_v1, %v716_v57 }
 0x242   : > { %2733 = vst [vmem:[%s3685_s20 + $0xfa8] sm:$0xff] %v1709_v61  ;;  %v718_v61 = vld [vmem:[%s3666_s4 + $0x10b8] sm:$0xff]  ;;  %v1742_v0 = vsub.f32 %v3673_v1, %v717_v59 }
 0x243   : > { %2734 = vst [vmem:[%s3685_s20 + $0xfb0] sm:$0xff] %v1710_v63  ;;  %v719_v63 = vld [vmem:[%s3666_s4 + $0x10c0] sm:$0xff]  ;;  %v1743_v3 = vsub.f32 %v3673_v1, %v718_v61 }
 0x244   : > { %2735 = vst [vmem:[%s3685_s20 + $0xfb8] sm:$0xff] %v1711_v2  ;;  %v720_v2 = vld [vmem:[%s3666_s4 + $0x10c8] sm:$0xff]  ;;  %v1744_v5 = vsub.f32 %v3673_v1, %v719_v63 }
 0x245   : > { %2736 = vst [vmem:[%s3685_s20 + $0xfc0] sm:$0xff] %v1712_v4  ;;  %v721_v4 = vld [vmem:[%s3666_s4 + $0x10d0] sm:$0xff]  ;;  %v1745_v7 = vsub.f32 %v3673_v1, %v720_v2 }
 0x246   : > { %2737 = vst [vmem:[%s3685_s20 + $0xfc8] sm:$0xff] %v1713_v6  ;;  %v722_v6 = vld [vmem:[%s3666_s4 + $0x10d8] sm:$0xff]  ;;  %v1746_v9 = vsub.f32 %v3673_v1, %v721_v4 }
 0x247   : > { %2738 = vst [vmem:[%s3685_s20 + $0xfd0] sm:$0xff] %v1714_v8  ;;  %v723_v8 = vld [vmem:[%s3666_s4 + $0x10e0] sm:$0xff]  ;;  %v1747_v11 = vsub.f32 %v3673_v1, %v722_v6 }
 0x248   : > { %2739 = vst [vmem:[%s3685_s20 + $0xfd8] sm:$0xff] %v1715_v10  ;;  %v724_v10 = vld [vmem:[%s3666_s4 + $0x10e8] sm:$0xff]  ;;  %v1748_v13 = vsub.f32 %v3673_v1, %v723_v8 }
 0x249   : > { %2740 = vst [vmem:[%s3685_s20 + $0xfe0] sm:$0xff] %v1716_v12  ;;  %v725_v12 = vld [vmem:[%s3666_s4 + $0x10f0] sm:$0xff]  ;;  %v1749_v15 = vsub.f32 %v3673_v1, %v724_v10 }
 0x24a   : > { %2741 = vst [vmem:[%s3685_s20 + $0xfe8] sm:$0xff] %v1717_v14  ;;  %v726_v14 = vld [vmem:[%s3666_s4 + $0x10f8] sm:$0xff]  ;;  %v1750_v17 = vsub.f32 %v3673_v1, %v725_v12 }
 0x24b   : > { %2742 = vst [vmem:[%s3685_s20 + $0xff0] sm:$0xff] %v1718_v16  ;;  %v727_v16 = vld [vmem:[%s3666_s4 + $0x1100] sm:$0xff]  ;;  %v1751_v19 = vsub.f32 %v3673_v1, %v726_v14 }
 0x24c   : > { %2743 = vst [vmem:[%s3685_s20 + $0xff8] sm:$0xff] %v1719_v18  ;;  %v728_v18 = vld [vmem:[%s3666_s4 + $0x1108] sm:$0xff]  ;;  %v1752_v21 = vsub.f32 %v3673_v1, %v727_v16 }
 0x24d   : > { %2744 = vst [vmem:[%s3685_s20 + $0x1000] sm:$0xff] %v1720_v20  ;;  %v729_v20 = vld [vmem:[%s3666_s4 + $0x1110] sm:$0xff]  ;;  %v1753_v23 = vsub.f32 %v3673_v1, %v728_v18 }
 0x24e   : > { %2745 = vst [vmem:[%s3685_s20 + $0x1008] sm:$0xff] %v1721_v22  ;;  %v730_v22 = vld [vmem:[%s3666_s4 + $0x1118] sm:$0xff]  ;;  %v1754_v25 = vsub.f32 %v3673_v1, %v729_v20 }
 0x24f   : > { %2746 = vst [vmem:[%s3685_s20 + $0x1010] sm:$0xff] %v1722_v24  ;;  %v731_v24 = vld [vmem:[%s3666_s4 + $0x1120] sm:$0xff]  ;;  %v1755_v27 = vsub.f32 %v3673_v1, %v730_v22 }
 0x250   : > { %2747 = vst [vmem:[%s3685_s20 + $0x1018] sm:$0xff] %v1723_v26  ;;  %v732_v26 = vld [vmem:[%s3666_s4 + $0x1128] sm:$0xff]  ;;  %v1756_v29 = vsub.f32 %v3673_v1, %v731_v24 }
 0x251   : > { %2748 = vst [vmem:[%s3685_s20 + $0x1020] sm:$0xff] %v1724_v28  ;;  %v733_v28 = vld [vmem:[%s3666_s4 + $0x1130] sm:$0xff]  ;;  %v1757_v31 = vsub.f32 %v3673_v1, %v732_v26 }
 0x252   : > { %2749 = vst [vmem:[%s3685_s20 + $0x1028] sm:$0xff] %v1725_v30  ;;  %v734_v30 = vld [vmem:[%s3666_s4 + $0x1138] sm:$0xff]  ;;  %v1758_v33 = vsub.f32 %v3673_v1, %v733_v28 }
 0x253   : > { %2750 = vst [vmem:[%s3685_s20 + $0x1030] sm:$0xff] %v1726_v32  ;;  %v735_v32 = vld [vmem:[%s3666_s4 + $0x1140] sm:$0xff]  ;;  %v1759_v35 = vsub.f32 %v3673_v1, %v734_v30 }
 0x254   : > { %2751 = vst [vmem:[%s3685_s20 + $0x1038] sm:$0xff] %v1727_v34  ;;  %v736_v34 = vld [vmem:[%s3666_s4 + $0x1148] sm:$0xff]  ;;  %v1760_v37 = vsub.f32 %v3673_v1, %v735_v32 }
 0x255   : > { %2752 = vst [vmem:[%s3685_s20 + $0x1040] sm:$0xff] %v1728_v36  ;;  %v737_v36 = vld [vmem:[%s3666_s4 + $0x1150] sm:$0xff]  ;;  %v1761_v39 = vsub.f32 %v3673_v1, %v736_v34 }
 0x256   : > { %2753 = vst [vmem:[%s3685_s20 + $0x1048] sm:$0xff] %v1729_v38  ;;  %v738_v38 = vld [vmem:[%s3666_s4 + $0x1158] sm:$0xff]  ;;  %v1762_v41 = vsub.f32 %v3673_v1, %v737_v36 }
 0x257   : > { %2754 = vst [vmem:[%s3685_s20 + $0x1050] sm:$0xff] %v1730_v40  ;;  %v739_v40 = vld [vmem:[%s3666_s4 + $0x1160] sm:$0xff]  ;;  %v1763_v43 = vsub.f32 %v3673_v1, %v738_v38 }
 0x258   : > { %2755 = vst [vmem:[%s3685_s20 + $0x1058] sm:$0xff] %v1731_v42  ;;  %v740_v42 = vld [vmem:[%s3666_s4 + $0x1168] sm:$0xff]  ;;  %v1764_v45 = vsub.f32 %v3673_v1, %v739_v40 }
 0x259   : > { %2756 = vst [vmem:[%s3685_s20 + $0x1060] sm:$0xff] %v1732_v44  ;;  %v741_v44 = vld [vmem:[%s3666_s4 + $0x1170] sm:$0xff]  ;;  %v1765_v47 = vsub.f32 %v3673_v1, %v740_v42 }
 0x25a   : > { %2757 = vst [vmem:[%s3685_s20 + $0x1068] sm:$0xff] %v1733_v46  ;;  %v742_v46 = vld [vmem:[%s3666_s4 + $0x1178] sm:$0xff]  ;;  %v1766_v49 = vsub.f32 %v3673_v1, %v741_v44 }
 0x25b   : > { %2758 = vst [vmem:[%s3685_s20 + $0x1070] sm:$0xff] %v1734_v48  ;;  %v743_v48 = vld [vmem:[%s3666_s4 + $0x1180] sm:$0xff]  ;;  %v1767_v51 = vsub.f32 %v3673_v1, %v742_v46 }
 0x25c   : > { %2759 = vst [vmem:[%s3685_s20 + $0x1078] sm:$0xff] %v1735_v50  ;;  %v744_v50 = vld [vmem:[%s3666_s4 + $0x1188] sm:$0xff]  ;;  %v1768_v53 = vsub.f32 %v3673_v1, %v743_v48 }
 0x25d   : > { %2760 = vst [vmem:[%s3685_s20 + $0x1080] sm:$0xff] %v1736_v52  ;;  %v745_v52 = vld [vmem:[%s3666_s4 + $0x1190] sm:$0xff]  ;;  %v1769_v55 = vsub.f32 %v3673_v1, %v744_v50 }
 0x25e   : > { %2761 = vst [vmem:[%s3685_s20 + $0x1088] sm:$0xff] %v1737_v54  ;;  %v746_v54 = vld [vmem:[%s3666_s4 + $0x1198] sm:$0xff]  ;;  %v1770_v57 = vsub.f32 %v3673_v1, %v745_v52 }
 0x25f   : > { %2762 = vst [vmem:[%s3685_s20 + $0x1090] sm:$0xff] %v1738_v56  ;;  %v747_v56 = vld [vmem:[%s3666_s4 + $0x11a0] sm:$0xff]  ;;  %v1771_v59 = vsub.f32 %v3673_v1, %v746_v54 }
 0x260   : > { %2763 = vst [vmem:[%s3685_s20 + $0x1098] sm:$0xff] %v1739_v58  ;;  %v748_v58 = vld [vmem:[%s3666_s4 + $0x11a8] sm:$0xff]  ;;  %v1772_v61 = vsub.f32 %v3673_v1, %v747_v56 }
 0x261   : > { %2764 = vst [vmem:[%s3685_s20 + $0x10a0] sm:$0xff] %v1740_v60  ;;  %v749_v60 = vld [vmem:[%s3666_s4 + $0x11b0] sm:$0xff]  ;;  %v1773_v63 = vsub.f32 %v3673_v1, %v748_v58 }
 0x262   : > { %2765 = vst [vmem:[%s3685_s20 + $0x10a8] sm:$0xff] %v1741_v62  ;;  %v750_v62 = vld [vmem:[%s3666_s4 + $0x11b8] sm:$0xff]  ;;  %v1774_v2 = vsub.f32 %v3673_v1, %v749_v60 }
 0x263   : > { %2766 = vst [vmem:[%s3685_s20 + $0x10b0] sm:$0xff] %v1742_v0  ;;  %v751_v0 = vld [vmem:[%s3666_s4 + $0x11c0] sm:$0xff]  ;;  %v1775_v4 = vsub.f32 %v3673_v1, %v750_v62 }
 0x264   : > { %2767 = vst [vmem:[%s3685_s20 + $0x10b8] sm:$0xff] %v1743_v3  ;;  %v752_v3 = vld [vmem:[%s3666_s4 + $0x11c8] sm:$0xff]  ;;  %v1776_v6 = vsub.f32 %v3673_v1, %v751_v0 }
 0x265   : > { %2768 = vst [vmem:[%s3685_s20 + $0x10c0] sm:$0xff] %v1744_v5  ;;  %v753_v5 = vld [vmem:[%s3666_s4 + $0x11d0] sm:$0xff]  ;;  %v1777_v8 = vsub.f32 %v3673_v1, %v752_v3 }
 0x266   : > { %2769 = vst [vmem:[%s3685_s20 + $0x10c8] sm:$0xff] %v1745_v7  ;;  %v754_v7 = vld [vmem:[%s3666_s4 + $0x11d8] sm:$0xff]  ;;  %v1778_v10 = vsub.f32 %v3673_v1, %v753_v5 }
 0x267   : > { %2770 = vst [vmem:[%s3685_s20 + $0x10d0] sm:$0xff] %v1746_v9  ;;  %v755_v9 = vld [vmem:[%s3666_s4 + $0x11e0] sm:$0xff]  ;;  %v1779_v12 = vsub.f32 %v3673_v1, %v754_v7 }
 0x268   : > { %2771 = vst [vmem:[%s3685_s20 + $0x10d8] sm:$0xff] %v1747_v11  ;;  %v756_v11 = vld [vmem:[%s3666_s4 + $0x11e8] sm:$0xff]  ;;  %v1780_v14 = vsub.f32 %v3673_v1, %v755_v9 }
 0x269   : > { %2772 = vst [vmem:[%s3685_s20 + $0x10e0] sm:$0xff] %v1748_v13  ;;  %v757_v13 = vld [vmem:[%s3666_s4 + $0x11f0] sm:$0xff]  ;;  %v1781_v16 = vsub.f32 %v3673_v1, %v756_v11 }
 0x26a   : > { %2773 = vst [vmem:[%s3685_s20 + $0x10e8] sm:$0xff] %v1749_v15  ;;  %v758_v15 = vld [vmem:[%s3666_s4 + $0x11f8] sm:$0xff]  ;;  %v1782_v18 = vsub.f32 %v3673_v1, %v757_v13 }
 0x26b   : > { %2774 = vst [vmem:[%s3685_s20 + $0x10f0] sm:$0xff] %v1750_v17  ;;  %v759_v17 = vld [vmem:[%s3666_s4 + $0x1200] sm:$0xff]  ;;  %v1783_v20 = vsub.f32 %v3673_v1, %v758_v15 }
 0x26c   : > { %2775 = vst [vmem:[%s3685_s20 + $0x10f8] sm:$0xff] %v1751_v19  ;;  %v760_v19 = vld [vmem:[%s3666_s4 + $0x1208] sm:$0xff]  ;;  %v1784_v22 = vsub.f32 %v3673_v1, %v759_v17 }
 0x26d   : > { %2776 = vst [vmem:[%s3685_s20 + $0x1100] sm:$0xff] %v1752_v21  ;;  %v761_v21 = vld [vmem:[%s3666_s4 + $0x1210] sm:$0xff]  ;;  %v1785_v24 = vsub.f32 %v3673_v1, %v760_v19 }
 0x26e   : > { %2777 = vst [vmem:[%s3685_s20 + $0x1108] sm:$0xff] %v1753_v23  ;;  %v762_v23 = vld [vmem:[%s3666_s4 + $0x1218] sm:$0xff]  ;;  %v1786_v26 = vsub.f32 %v3673_v1, %v761_v21 }
 0x26f   : > { %2778 = vst [vmem:[%s3685_s20 + $0x1110] sm:$0xff] %v1754_v25  ;;  %v763_v25 = vld [vmem:[%s3666_s4 + $0x1220] sm:$0xff]  ;;  %v1787_v28 = vsub.f32 %v3673_v1, %v762_v23 }
 0x270   : > { %2779 = vst [vmem:[%s3685_s20 + $0x1118] sm:$0xff] %v1755_v27  ;;  %v764_v27 = vld [vmem:[%s3666_s4 + $0x1228] sm:$0xff]  ;;  %v1788_v30 = vsub.f32 %v3673_v1, %v763_v25 }
 0x271   : > { %2780 = vst [vmem:[%s3685_s20 + $0x1120] sm:$0xff] %v1756_v29  ;;  %v765_v29 = vld [vmem:[%s3666_s4 + $0x1230] sm:$0xff]  ;;  %v1789_v32 = vsub.f32 %v3673_v1, %v764_v27 }
 0x272   : > { %2781 = vst [vmem:[%s3685_s20 + $0x1128] sm:$0xff] %v1757_v31  ;;  %v766_v31 = vld [vmem:[%s3666_s4 + $0x1238] sm:$0xff]  ;;  %v1790_v34 = vsub.f32 %v3673_v1, %v765_v29 }
 0x273   : > { %2782 = vst [vmem:[%s3685_s20 + $0x1130] sm:$0xff] %v1758_v33  ;;  %v767_v33 = vld [vmem:[%s3666_s4 + $0x1240] sm:$0xff]  ;;  %v1791_v36 = vsub.f32 %v3673_v1, %v766_v31 }
 0x274   : > { %2783 = vst [vmem:[%s3685_s20 + $0x1138] sm:$0xff] %v1759_v35  ;;  %v768_v35 = vld [vmem:[%s3666_s4 + $0x1248] sm:$0xff]  ;;  %v1792_v38 = vsub.f32 %v3673_v1, %v767_v33 }
 0x275   : > { %2784 = vst [vmem:[%s3685_s20 + $0x1140] sm:$0xff] %v1760_v37  ;;  %v769_v37 = vld [vmem:[%s3666_s4 + $0x1250] sm:$0xff]  ;;  %v1793_v40 = vsub.f32 %v3673_v1, %v768_v35 }
 0x276   : > { %2785 = vst [vmem:[%s3685_s20 + $0x1148] sm:$0xff] %v1761_v39  ;;  %v770_v39 = vld [vmem:[%s3666_s4 + $0x1258] sm:$0xff]  ;;  %v1794_v42 = vsub.f32 %v3673_v1, %v769_v37 }
 0x277   : > { %2786 = vst [vmem:[%s3685_s20 + $0x1150] sm:$0xff] %v1762_v41  ;;  %v771_v41 = vld [vmem:[%s3666_s4 + $0x1260] sm:$0xff]  ;;  %v1795_v44 = vsub.f32 %v3673_v1, %v770_v39 }
 0x278   : > { %2787 = vst [vmem:[%s3685_s20 + $0x1158] sm:$0xff] %v1763_v43  ;;  %v772_v43 = vld [vmem:[%s3666_s4 + $0x1268] sm:$0xff]  ;;  %v1796_v46 = vsub.f32 %v3673_v1, %v771_v41 }
 0x279   : > { %2788 = vst [vmem:[%s3685_s20 + $0x1160] sm:$0xff] %v1764_v45  ;;  %v773_v45 = vld [vmem:[%s3666_s4 + $0x1270] sm:$0xff]  ;;  %v1797_v48 = vsub.f32 %v3673_v1, %v772_v43 }
 0x27a   : > { %2789 = vst [vmem:[%s3685_s20 + $0x1168] sm:$0xff] %v1765_v47  ;;  %v774_v47 = vld [vmem:[%s3666_s4 + $0x1278] sm:$0xff]  ;;  %v1798_v50 = vsub.f32 %v3673_v1, %v773_v45 }
 0x27b   : > { %2790 = vst [vmem:[%s3685_s20 + $0x1170] sm:$0xff] %v1766_v49  ;;  %v775_v49 = vld [vmem:[%s3666_s4 + $0x1280] sm:$0xff]  ;;  %v1799_v52 = vsub.f32 %v3673_v1, %v774_v47 }
 0x27c   : > { %2791 = vst [vmem:[%s3685_s20 + $0x1178] sm:$0xff] %v1767_v51  ;;  %v776_v51 = vld [vmem:[%s3666_s4 + $0x1288] sm:$0xff]  ;;  %v1800_v54 = vsub.f32 %v3673_v1, %v775_v49 }
 0x27d   : > { %2792 = vst [vmem:[%s3685_s20 + $0x1180] sm:$0xff] %v1768_v53  ;;  %v777_v53 = vld [vmem:[%s3666_s4 + $0x1290] sm:$0xff]  ;;  %v1801_v56 = vsub.f32 %v3673_v1, %v776_v51 }
 0x27e   : > { %2793 = vst [vmem:[%s3685_s20 + $0x1188] sm:$0xff] %v1769_v55  ;;  %v778_v55 = vld [vmem:[%s3666_s4 + $0x1298] sm:$0xff]  ;;  %v1802_v58 = vsub.f32 %v3673_v1, %v777_v53 }
 0x27f   : > { %2794 = vst [vmem:[%s3685_s20 + $0x1190] sm:$0xff] %v1770_v57  ;;  %v779_v57 = vld [vmem:[%s3666_s4 + $0x12a0] sm:$0xff]  ;;  %v1803_v60 = vsub.f32 %v3673_v1, %v778_v55 }
 0x280   : > { %2795 = vst [vmem:[%s3685_s20 + $0x1198] sm:$0xff] %v1771_v59  ;;  %v780_v59 = vld [vmem:[%s3666_s4 + $0x12a8] sm:$0xff]  ;;  %v1804_v62 = vsub.f32 %v3673_v1, %v779_v57 }
 0x281   : > { %2796 = vst [vmem:[%s3685_s20 + $0x11a0] sm:$0xff] %v1772_v61  ;;  %v781_v61 = vld [vmem:[%s3666_s4 + $0x12b0] sm:$0xff]  ;;  %v1805_v0 = vsub.f32 %v3673_v1, %v780_v59 }
 0x282   : > { %2797 = vst [vmem:[%s3685_s20 + $0x11a8] sm:$0xff] %v1773_v63  ;;  %v782_v63 = vld [vmem:[%s3666_s4 + $0x12b8] sm:$0xff]  ;;  %v1806_v3 = vsub.f32 %v3673_v1, %v781_v61 }
 0x283   : > { %2798 = vst [vmem:[%s3685_s20 + $0x11b0] sm:$0xff] %v1774_v2  ;;  %v783_v2 = vld [vmem:[%s3666_s4 + $0x12c0] sm:$0xff]  ;;  %v1807_v5 = vsub.f32 %v3673_v1, %v782_v63 }
 0x284   : > { %2799 = vst [vmem:[%s3685_s20 + $0x11b8] sm:$0xff] %v1775_v4  ;;  %v784_v4 = vld [vmem:[%s3666_s4 + $0x12c8] sm:$0xff]  ;;  %v1808_v7 = vsub.f32 %v3673_v1, %v783_v2 }
 0x285   : > { %2800 = vst [vmem:[%s3685_s20 + $0x11c0] sm:$0xff] %v1776_v6  ;;  %v785_v6 = vld [vmem:[%s3666_s4 + $0x12d0] sm:$0xff]  ;;  %v1809_v9 = vsub.f32 %v3673_v1, %v784_v4 }
 0x286   : > { %2801 = vst [vmem:[%s3685_s20 + $0x11c8] sm:$0xff] %v1777_v8  ;;  %v786_v8 = vld [vmem:[%s3666_s4 + $0x12d8] sm:$0xff]  ;;  %v1810_v11 = vsub.f32 %v3673_v1, %v785_v6 }
 0x287   : > { %2802 = vst [vmem:[%s3685_s20 + $0x11d0] sm:$0xff] %v1778_v10  ;;  %v787_v10 = vld [vmem:[%s3666_s4 + $0x12e0] sm:$0xff]  ;;  %v1811_v13 = vsub.f32 %v3673_v1, %v786_v8 }
 0x288   : > { %2803 = vst [vmem:[%s3685_s20 + $0x11d8] sm:$0xff] %v1779_v12  ;;  %v788_v12 = vld [vmem:[%s3666_s4 + $0x12e8] sm:$0xff]  ;;  %v1812_v15 = vsub.f32 %v3673_v1, %v787_v10 }
 0x289   : > { %2804 = vst [vmem:[%s3685_s20 + $0x11e0] sm:$0xff] %v1780_v14  ;;  %v789_v14 = vld [vmem:[%s3666_s4 + $0x12f0] sm:$0xff]  ;;  %v1813_v17 = vsub.f32 %v3673_v1, %v788_v12 }
 0x28a   : > { %2805 = vst [vmem:[%s3685_s20 + $0x11e8] sm:$0xff] %v1781_v16  ;;  %v790_v16 = vld [vmem:[%s3666_s4 + $0x12f8] sm:$0xff]  ;;  %v1814_v19 = vsub.f32 %v3673_v1, %v789_v14 }
 0x28b   : > { %2806 = vst [vmem:[%s3685_s20 + $0x11f0] sm:$0xff] %v1782_v18  ;;  %v791_v18 = vld [vmem:[%s3666_s4 + $0x1300] sm:$0xff]  ;;  %v1815_v21 = vsub.f32 %v3673_v1, %v790_v16 }
 0x28c   : > { %2807 = vst [vmem:[%s3685_s20 + $0x11f8] sm:$0xff] %v1783_v20  ;;  %v792_v20 = vld [vmem:[%s3666_s4 + $0x1308] sm:$0xff]  ;;  %v1816_v23 = vsub.f32 %v3673_v1, %v791_v18 }
 0x28d   : > { %2808 = vst [vmem:[%s3685_s20 + $0x1200] sm:$0xff] %v1784_v22  ;;  %v793_v22 = vld [vmem:[%s3666_s4 + $0x1310] sm:$0xff]  ;;  %v1817_v25 = vsub.f32 %v3673_v1, %v792_v20 }
 0x28e   : > { %2809 = vst [vmem:[%s3685_s20 + $0x1208] sm:$0xff] %v1785_v24  ;;  %v794_v24 = vld [vmem:[%s3666_s4 + $0x1318] sm:$0xff]  ;;  %v1818_v27 = vsub.f32 %v3673_v1, %v793_v22 }
 0x28f   : > { %2810 = vst [vmem:[%s3685_s20 + $0x1210] sm:$0xff] %v1786_v26  ;;  %v795_v26 = vld [vmem:[%s3666_s4 + $0x1320] sm:$0xff]  ;;  %v1819_v29 = vsub.f32 %v3673_v1, %v794_v24 }
 0x290   : > { %2811 = vst [vmem:[%s3685_s20 + $0x1218] sm:$0xff] %v1787_v28  ;;  %v796_v28 = vld [vmem:[%s3666_s4 + $0x1328] sm:$0xff]  ;;  %v1820_v31 = vsub.f32 %v3673_v1, %v795_v26 }
 0x291   : > { %2812 = vst [vmem:[%s3685_s20 + $0x1220] sm:$0xff] %v1788_v30  ;;  %v797_v30 = vld [vmem:[%s3666_s4 + $0x1330] sm:$0xff]  ;;  %v1821_v33 = vsub.f32 %v3673_v1, %v796_v28 }
 0x292   : > { %2813 = vst [vmem:[%s3685_s20 + $0x1228] sm:$0xff] %v1789_v32  ;;  %v798_v32 = vld [vmem:[%s3666_s4 + $0x1338] sm:$0xff]  ;;  %v1822_v35 = vsub.f32 %v3673_v1, %v797_v30 }
 0x293   : > { %2814 = vst [vmem:[%s3685_s20 + $0x1230] sm:$0xff] %v1790_v34  ;;  %v799_v34 = vld [vmem:[%s3666_s4 + $0x1340] sm:$0xff]  ;;  %v1823_v37 = vsub.f32 %v3673_v1, %v798_v32 }
 0x294   : > { %2815 = vst [vmem:[%s3685_s20 + $0x1238] sm:$0xff] %v1791_v36  ;;  %v800_v36 = vld [vmem:[%s3666_s4 + $0x1348] sm:$0xff]  ;;  %v1824_v39 = vsub.f32 %v3673_v1, %v799_v34 }
 0x295   : > { %2816 = vst [vmem:[%s3685_s20 + $0x1240] sm:$0xff] %v1792_v38  ;;  %v801_v38 = vld [vmem:[%s3666_s4 + $0x1350] sm:$0xff]  ;;  %v1825_v41 = vsub.f32 %v3673_v1, %v800_v36 }
 0x296   : > { %2817 = vst [vmem:[%s3685_s20 + $0x1248] sm:$0xff] %v1793_v40  ;;  %v802_v40 = vld [vmem:[%s3666_s4 + $0x1358] sm:$0xff]  ;;  %v1826_v43 = vsub.f32 %v3673_v1, %v801_v38 }
 0x297   : > { %2818 = vst [vmem:[%s3685_s20 + $0x1250] sm:$0xff] %v1794_v42  ;;  %v803_v42 = vld [vmem:[%s3666_s4 + $0x1360] sm:$0xff]  ;;  %v1827_v45 = vsub.f32 %v3673_v1, %v802_v40 }
 0x298   : > { %2819 = vst [vmem:[%s3685_s20 + $0x1258] sm:$0xff] %v1795_v44  ;;  %v804_v44 = vld [vmem:[%s3666_s4 + $0x1368] sm:$0xff]  ;;  %v1828_v47 = vsub.f32 %v3673_v1, %v803_v42 }
 0x299   : > { %2820 = vst [vmem:[%s3685_s20 + $0x1260] sm:$0xff] %v1796_v46  ;;  %v805_v46 = vld [vmem:[%s3666_s4 + $0x1370] sm:$0xff]  ;;  %v1829_v49 = vsub.f32 %v3673_v1, %v804_v44 }
 0x29a   : > { %2821 = vst [vmem:[%s3685_s20 + $0x1268] sm:$0xff] %v1797_v48  ;;  %v806_v48 = vld [vmem:[%s3666_s4 + $0x1378] sm:$0xff]  ;;  %v1830_v51 = vsub.f32 %v3673_v1, %v805_v46 }
 0x29b   : > { %2822 = vst [vmem:[%s3685_s20 + $0x1270] sm:$0xff] %v1798_v50  ;;  %v807_v50 = vld [vmem:[%s3666_s4 + $0x1380] sm:$0xff]  ;;  %v1831_v53 = vsub.f32 %v3673_v1, %v806_v48 }
 0x29c   : > { %2823 = vst [vmem:[%s3685_s20 + $0x1278] sm:$0xff] %v1799_v52  ;;  %v808_v52 = vld [vmem:[%s3666_s4 + $0x1388] sm:$0xff]  ;;  %v1832_v55 = vsub.f32 %v3673_v1, %v807_v50 }
 0x29d   : > { %2824 = vst [vmem:[%s3685_s20 + $0x1280] sm:$0xff] %v1800_v54  ;;  %v809_v54 = vld [vmem:[%s3666_s4 + $0x1390] sm:$0xff]  ;;  %v1833_v57 = vsub.f32 %v3673_v1, %v808_v52 }
 0x29e   : > { %2825 = vst [vmem:[%s3685_s20 + $0x1288] sm:$0xff] %v1801_v56  ;;  %v810_v56 = vld [vmem:[%s3666_s4 + $0x1398] sm:$0xff]  ;;  %v1834_v59 = vsub.f32 %v3673_v1, %v809_v54 }
 0x29f   : > { %2826 = vst [vmem:[%s3685_s20 + $0x1290] sm:$0xff] %v1802_v58  ;;  %v811_v58 = vld [vmem:[%s3666_s4 + $0x13a0] sm:$0xff]  ;;  %v1835_v61 = vsub.f32 %v3673_v1, %v810_v56 }
 0x2a0   : > { %2827 = vst [vmem:[%s3685_s20 + $0x1298] sm:$0xff] %v1803_v60  ;;  %v812_v60 = vld [vmem:[%s3666_s4 + $0x13a8] sm:$0xff]  ;;  %v1836_v63 = vsub.f32 %v3673_v1, %v811_v58 }
 0x2a1   : > { %2828 = vst [vmem:[%s3685_s20 + $0x12a0] sm:$0xff] %v1804_v62  ;;  %v813_v62 = vld [vmem:[%s3666_s4 + $0x13b0] sm:$0xff]  ;;  %v1837_v2 = vsub.f32 %v3673_v1, %v812_v60 }
 0x2a2   : > { %2829 = vst [vmem:[%s3685_s20 + $0x12a8] sm:$0xff] %v1805_v0  ;;  %v814_v0 = vld [vmem:[%s3666_s4 + $0x13b8] sm:$0xff]  ;;  %v1838_v4 = vsub.f32 %v3673_v1, %v813_v62 }
 0x2a3   : > { %2830 = vst [vmem:[%s3685_s20 + $0x12b0] sm:$0xff] %v1806_v3  ;;  %v815_v3 = vld [vmem:[%s3666_s4 + $0x13c0] sm:$0xff]  ;;  %v1839_v6 = vsub.f32 %v3673_v1, %v814_v0 }
 0x2a4   : > { %2831 = vst [vmem:[%s3685_s20 + $0x12b8] sm:$0xff] %v1807_v5  ;;  %v816_v5 = vld [vmem:[%s3666_s4 + $0x13c8] sm:$0xff]  ;;  %v1840_v8 = vsub.f32 %v3673_v1, %v815_v3 }
 0x2a5   : > { %2832 = vst [vmem:[%s3685_s20 + $0x12c0] sm:$0xff] %v1808_v7  ;;  %v817_v7 = vld [vmem:[%s3666_s4 + $0x13d0] sm:$0xff]  ;;  %v1841_v10 = vsub.f32 %v3673_v1, %v816_v5 }
 0x2a6   : > { %2833 = vst [vmem:[%s3685_s20 + $0x12c8] sm:$0xff] %v1809_v9  ;;  %v818_v9 = vld [vmem:[%s3666_s4 + $0x13d8] sm:$0xff]  ;;  %v1842_v12 = vsub.f32 %v3673_v1, %v817_v7 }
 0x2a7   : > { %2834 = vst [vmem:[%s3685_s20 + $0x12d0] sm:$0xff] %v1810_v11  ;;  %v819_v11 = vld [vmem:[%s3666_s4 + $0x13e0] sm:$0xff]  ;;  %v1843_v14 = vsub.f32 %v3673_v1, %v818_v9 }
 0x2a8   : > { %2835 = vst [vmem:[%s3685_s20 + $0x12d8] sm:$0xff] %v1811_v13  ;;  %v820_v13 = vld [vmem:[%s3666_s4 + $0x13e8] sm:$0xff]  ;;  %v1844_v16 = vsub.f32 %v3673_v1, %v819_v11 }
 0x2a9   : > { %2836 = vst [vmem:[%s3685_s20 + $0x12e0] sm:$0xff] %v1812_v15  ;;  %v821_v15 = vld [vmem:[%s3666_s4 + $0x13f0] sm:$0xff]  ;;  %v1845_v18 = vsub.f32 %v3673_v1, %v820_v13 }
 0x2aa   : > { %2837 = vst [vmem:[%s3685_s20 + $0x12e8] sm:$0xff] %v1813_v17  ;;  %v822_v17 = vld [vmem:[%s3666_s4 + $0x13f8] sm:$0xff]  ;;  %v1846_v20 = vsub.f32 %v3673_v1, %v821_v15 }
 0x2ab   : > { %2838 = vst [vmem:[%s3685_s20 + $0x12f0] sm:$0xff] %v1814_v19  ;;  %v823_v19 = vld [vmem:[%s3666_s4 + $0x1400] sm:$0xff]  ;;  %v1847_v22 = vsub.f32 %v3673_v1, %v822_v17 }
 0x2ac   : > { %2839 = vst [vmem:[%s3685_s20 + $0x12f8] sm:$0xff] %v1815_v21  ;;  %v824_v21 = vld [vmem:[%s3666_s4 + $0x1408] sm:$0xff]  ;;  %v1848_v24 = vsub.f32 %v3673_v1, %v823_v19 }
 0x2ad   : > { %2840 = vst [vmem:[%s3685_s20 + $0x1300] sm:$0xff] %v1816_v23  ;;  %v825_v23 = vld [vmem:[%s3666_s4 + $0x1410] sm:$0xff]  ;;  %v1849_v26 = vsub.f32 %v3673_v1, %v824_v21 }
 0x2ae   : > { %2841 = vst [vmem:[%s3685_s20 + $0x1308] sm:$0xff] %v1817_v25  ;;  %v826_v25 = vld [vmem:[%s3666_s4 + $0x1418] sm:$0xff]  ;;  %v1850_v28 = vsub.f32 %v3673_v1, %v825_v23 }
 0x2af   : > { %2842 = vst [vmem:[%s3685_s20 + $0x1310] sm:$0xff] %v1818_v27  ;;  %v827_v27 = vld [vmem:[%s3666_s4 + $0x1420] sm:$0xff]  ;;  %v1851_v30 = vsub.f32 %v3673_v1, %v826_v25 }
 0x2b0   : > { %2843 = vst [vmem:[%s3685_s20 + $0x1318] sm:$0xff] %v1819_v29  ;;  %v828_v29 = vld [vmem:[%s3666_s4 + $0x1428] sm:$0xff]  ;;  %v1852_v32 = vsub.f32 %v3673_v1, %v827_v27 }
 0x2b1   : > { %2844 = vst [vmem:[%s3685_s20 + $0x1320] sm:$0xff] %v1820_v31  ;;  %v829_v31 = vld [vmem:[%s3666_s4 + $0x1430] sm:$0xff]  ;;  %v1853_v34 = vsub.f32 %v3673_v1, %v828_v29 }
 0x2b2   : > { %2845 = vst [vmem:[%s3685_s20 + $0x1328] sm:$0xff] %v1821_v33  ;;  %v830_v33 = vld [vmem:[%s3666_s4 + $0x1438] sm:$0xff]  ;;  %v1854_v36 = vsub.f32 %v3673_v1, %v829_v31 }
 0x2b3   : > { %2846 = vst [vmem:[%s3685_s20 + $0x1330] sm:$0xff] %v1822_v35  ;;  %v831_v35 = vld [vmem:[%s3666_s4 + $0x1440] sm:$0xff]  ;;  %v1855_v38 = vsub.f32 %v3673_v1, %v830_v33 }
 0x2b4   : > { %2847 = vst [vmem:[%s3685_s20 + $0x1338] sm:$0xff] %v1823_v37  ;;  %v832_v37 = vld [vmem:[%s3666_s4 + $0x1448] sm:$0xff]  ;;  %v1856_v40 = vsub.f32 %v3673_v1, %v831_v35 }
 0x2b5   : > { %2848 = vst [vmem:[%s3685_s20 + $0x1340] sm:$0xff] %v1824_v39  ;;  %v833_v39 = vld [vmem:[%s3666_s4 + $0x1450] sm:$0xff]  ;;  %v1857_v42 = vsub.f32 %v3673_v1, %v832_v37 }
 0x2b6   : > { %2849 = vst [vmem:[%s3685_s20 + $0x1348] sm:$0xff] %v1825_v41  ;;  %v834_v41 = vld [vmem:[%s3666_s4 + $0x1458] sm:$0xff]  ;;  %v1858_v44 = vsub.f32 %v3673_v1, %v833_v39 }
 0x2b7   : > { %2850 = vst [vmem:[%s3685_s20 + $0x1350] sm:$0xff] %v1826_v43  ;;  %v835_v43 = vld [vmem:[%s3666_s4 + $0x1460] sm:$0xff]  ;;  %v1859_v46 = vsub.f32 %v3673_v1, %v834_v41 }
 0x2b8   : > { %2851 = vst [vmem:[%s3685_s20 + $0x1358] sm:$0xff] %v1827_v45  ;;  %v836_v45 = vld [vmem:[%s3666_s4 + $0x1468] sm:$0xff]  ;;  %v1860_v48 = vsub.f32 %v3673_v1, %v835_v43 }
 0x2b9   : > { %2852 = vst [vmem:[%s3685_s20 + $0x1360] sm:$0xff] %v1828_v47  ;;  %v837_v47 = vld [vmem:[%s3666_s4 + $0x1470] sm:$0xff]  ;;  %v1861_v50 = vsub.f32 %v3673_v1, %v836_v45 }
 0x2ba   : > { %2853 = vst [vmem:[%s3685_s20 + $0x1368] sm:$0xff] %v1829_v49  ;;  %v838_v49 = vld [vmem:[%s3666_s4 + $0x1478] sm:$0xff]  ;;  %v1862_v52 = vsub.f32 %v3673_v1, %v837_v47 }
 0x2bb   : > { %2854 = vst [vmem:[%s3685_s20 + $0x1370] sm:$0xff] %v1830_v51  ;;  %v839_v51 = vld [vmem:[%s3666_s4 + $0x1480] sm:$0xff]  ;;  %v1863_v54 = vsub.f32 %v3673_v1, %v838_v49 }
 0x2bc   : > { %2855 = vst [vmem:[%s3685_s20 + $0x1378] sm:$0xff] %v1831_v53  ;;  %v840_v53 = vld [vmem:[%s3666_s4 + $0x1488] sm:$0xff]  ;;  %v1864_v56 = vsub.f32 %v3673_v1, %v839_v51 }
 0x2bd   : > { %2856 = vst [vmem:[%s3685_s20 + $0x1380] sm:$0xff] %v1832_v55  ;;  %v841_v55 = vld [vmem:[%s3666_s4 + $0x1490] sm:$0xff]  ;;  %v1865_v58 = vsub.f32 %v3673_v1, %v840_v53 }
 0x2be   : > { %2857 = vst [vmem:[%s3685_s20 + $0x1388] sm:$0xff] %v1833_v57  ;;  %v842_v57 = vld [vmem:[%s3666_s4 + $0x1498] sm:$0xff]  ;;  %v1866_v60 = vsub.f32 %v3673_v1, %v841_v55 }
 0x2bf   : > { %2858 = vst [vmem:[%s3685_s20 + $0x1390] sm:$0xff] %v1834_v59  ;;  %v843_v59 = vld [vmem:[%s3666_s4 + $0x14a0] sm:$0xff]  ;;  %v1867_v62 = vsub.f32 %v3673_v1, %v842_v57 }
 0x2c0   : > { %2859 = vst [vmem:[%s3685_s20 + $0x1398] sm:$0xff] %v1835_v61  ;;  %v844_v61 = vld [vmem:[%s3666_s4 + $0x14a8] sm:$0xff]  ;;  %v1868_v0 = vsub.f32 %v3673_v1, %v843_v59 }
 0x2c1   : > { %2860 = vst [vmem:[%s3685_s20 + $0x13a0] sm:$0xff] %v1836_v63  ;;  %v845_v63 = vld [vmem:[%s3666_s4 + $0x14b0] sm:$0xff]  ;;  %v1869_v3 = vsub.f32 %v3673_v1, %v844_v61 }
 0x2c2   : > { %2861 = vst [vmem:[%s3685_s20 + $0x13a8] sm:$0xff] %v1837_v2  ;;  %v846_v2 = vld [vmem:[%s3666_s4 + $0x14b8] sm:$0xff]  ;;  %v1870_v5 = vsub.f32 %v3673_v1, %v845_v63 }
 0x2c3   : > { %2862 = vst [vmem:[%s3685_s20 + $0x13b0] sm:$0xff] %v1838_v4  ;;  %v847_v4 = vld [vmem:[%s3666_s4 + $0x14c0] sm:$0xff]  ;;  %v1871_v7 = vsub.f32 %v3673_v1, %v846_v2 }
 0x2c4   : > { %2863 = vst [vmem:[%s3685_s20 + $0x13b8] sm:$0xff] %v1839_v6  ;;  %v848_v6 = vld [vmem:[%s3666_s4 + $0x14c8] sm:$0xff]  ;;  %v1872_v9 = vsub.f32 %v3673_v1, %v847_v4 }
 0x2c5   : > { %2864 = vst [vmem:[%s3685_s20 + $0x13c0] sm:$0xff] %v1840_v8  ;;  %v849_v8 = vld [vmem:[%s3666_s4 + $0x14d0] sm:$0xff]  ;;  %v1873_v11 = vsub.f32 %v3673_v1, %v848_v6 }
 0x2c6   : > { %2865 = vst [vmem:[%s3685_s20 + $0x13c8] sm:$0xff] %v1841_v10  ;;  %v850_v10 = vld [vmem:[%s3666_s4 + $0x14d8] sm:$0xff]  ;;  %v1874_v13 = vsub.f32 %v3673_v1, %v849_v8 }
 0x2c7   : > { %2866 = vst [vmem:[%s3685_s20 + $0x13d0] sm:$0xff] %v1842_v12  ;;  %v851_v12 = vld [vmem:[%s3666_s4 + $0x14e0] sm:$0xff]  ;;  %v1875_v15 = vsub.f32 %v3673_v1, %v850_v10 }
 0x2c8   : > { %2867 = vst [vmem:[%s3685_s20 + $0x13d8] sm:$0xff] %v1843_v14  ;;  %v852_v14 = vld [vmem:[%s3666_s4 + $0x14e8] sm:$0xff]  ;;  %v1876_v17 = vsub.f32 %v3673_v1, %v851_v12 }
 0x2c9   : > { %2868 = vst [vmem:[%s3685_s20 + $0x13e0] sm:$0xff] %v1844_v16  ;;  %v853_v16 = vld [vmem:[%s3666_s4 + $0x14f0] sm:$0xff]  ;;  %v1877_v19 = vsub.f32 %v3673_v1, %v852_v14 }
 0x2ca   : > { %2869 = vst [vmem:[%s3685_s20 + $0x13e8] sm:$0xff] %v1845_v18  ;;  %v854_v18 = vld [vmem:[%s3666_s4 + $0x14f8] sm:$0xff]  ;;  %v1878_v21 = vsub.f32 %v3673_v1, %v853_v16 }
 0x2cb   : > { %2870 = vst [vmem:[%s3685_s20 + $0x13f0] sm:$0xff] %v1846_v20  ;;  %v855_v20 = vld [vmem:[%s3666_s4 + $0x1500] sm:$0xff]  ;;  %v1879_v23 = vsub.f32 %v3673_v1, %v854_v18 }
 0x2cc   : > { %2871 = vst [vmem:[%s3685_s20 + $0x13f8] sm:$0xff] %v1847_v22  ;;  %v856_v22 = vld [vmem:[%s3666_s4 + $0x1508] sm:$0xff]  ;;  %v1880_v25 = vsub.f32 %v3673_v1, %v855_v20 }
 0x2cd   : > { %2872 = vst [vmem:[%s3685_s20 + $0x1400] sm:$0xff] %v1848_v24  ;;  %v857_v24 = vld [vmem:[%s3666_s4 + $0x1510] sm:$0xff]  ;;  %v1881_v27 = vsub.f32 %v3673_v1, %v856_v22 }
 0x2ce   : > { %2873 = vst [vmem:[%s3685_s20 + $0x1408] sm:$0xff] %v1849_v26  ;;  %v858_v26 = vld [vmem:[%s3666_s4 + $0x1518] sm:$0xff]  ;;  %v1882_v29 = vsub.f32 %v3673_v1, %v857_v24 }
 0x2cf   : > { %2874 = vst [vmem:[%s3685_s20 + $0x1410] sm:$0xff] %v1850_v28  ;;  %v859_v28 = vld [vmem:[%s3666_s4 + $0x1520] sm:$0xff]  ;;  %v1883_v31 = vsub.f32 %v3673_v1, %v858_v26 }
 0x2d0   : > { %2875 = vst [vmem:[%s3685_s20 + $0x1418] sm:$0xff] %v1851_v30  ;;  %v860_v30 = vld [vmem:[%s3666_s4 + $0x1528] sm:$0xff]  ;;  %v1884_v33 = vsub.f32 %v3673_v1, %v859_v28 }
 0x2d1   : > { %2876 = vst [vmem:[%s3685_s20 + $0x1420] sm:$0xff] %v1852_v32  ;;  %v861_v32 = vld [vmem:[%s3666_s4 + $0x1530] sm:$0xff]  ;;  %v1885_v35 = vsub.f32 %v3673_v1, %v860_v30 }
 0x2d2   : > { %2877 = vst [vmem:[%s3685_s20 + $0x1428] sm:$0xff] %v1853_v34  ;;  %v862_v34 = vld [vmem:[%s3666_s4 + $0x1538] sm:$0xff]  ;;  %v1886_v37 = vsub.f32 %v3673_v1, %v861_v32 }
 0x2d3   : > { %2878 = vst [vmem:[%s3685_s20 + $0x1430] sm:$0xff] %v1854_v36  ;;  %v863_v36 = vld [vmem:[%s3666_s4 + $0x1540] sm:$0xff]  ;;  %v1887_v39 = vsub.f32 %v3673_v1, %v862_v34 }
 0x2d4   : > { %2879 = vst [vmem:[%s3685_s20 + $0x1438] sm:$0xff] %v1855_v38  ;;  %v864_v38 = vld [vmem:[%s3666_s4 + $0x1548] sm:$0xff]  ;;  %v1888_v41 = vsub.f32 %v3673_v1, %v863_v36 }
 0x2d5   : > { %2880 = vst [vmem:[%s3685_s20 + $0x1440] sm:$0xff] %v1856_v40  ;;  %v865_v40 = vld [vmem:[%s3666_s4 + $0x1550] sm:$0xff]  ;;  %v1889_v43 = vsub.f32 %v3673_v1, %v864_v38 }
 0x2d6   : > { %2881 = vst [vmem:[%s3685_s20 + $0x1448] sm:$0xff] %v1857_v42  ;;  %v866_v42 = vld [vmem:[%s3666_s4 + $0x1558] sm:$0xff]  ;;  %v1890_v45 = vsub.f32 %v3673_v1, %v865_v40 }
 0x2d7   : > { %2882 = vst [vmem:[%s3685_s20 + $0x1450] sm:$0xff] %v1858_v44  ;;  %v867_v44 = vld [vmem:[%s3666_s4 + $0x1560] sm:$0xff]  ;;  %v1891_v47 = vsub.f32 %v3673_v1, %v866_v42 }
 0x2d8   : > { %2883 = vst [vmem:[%s3685_s20 + $0x1458] sm:$0xff] %v1859_v46  ;;  %v868_v46 = vld [vmem:[%s3666_s4 + $0x1568] sm:$0xff]  ;;  %v1892_v49 = vsub.f32 %v3673_v1, %v867_v44 }
 0x2d9   : > { %2884 = vst [vmem:[%s3685_s20 + $0x1460] sm:$0xff] %v1860_v48  ;;  %v869_v48 = vld [vmem:[%s3666_s4 + $0x1570] sm:$0xff]  ;;  %v1893_v51 = vsub.f32 %v3673_v1, %v868_v46 }
 0x2da   : > { %2885 = vst [vmem:[%s3685_s20 + $0x1468] sm:$0xff] %v1861_v50  ;;  %v870_v50 = vld [vmem:[%s3666_s4 + $0x1578] sm:$0xff]  ;;  %v1894_v53 = vsub.f32 %v3673_v1, %v869_v48 }
 0x2db   : > { %2886 = vst [vmem:[%s3685_s20 + $0x1470] sm:$0xff] %v1862_v52  ;;  %v871_v52 = vld [vmem:[%s3666_s4 + $0x1580] sm:$0xff]  ;;  %v1895_v55 = vsub.f32 %v3673_v1, %v870_v50 }
 0x2dc   : > { %2887 = vst [vmem:[%s3685_s20 + $0x1478] sm:$0xff] %v1863_v54  ;;  %v872_v54 = vld [vmem:[%s3666_s4 + $0x1588] sm:$0xff]  ;;  %v1896_v57 = vsub.f32 %v3673_v1, %v871_v52 }
 0x2dd   : > { %2888 = vst [vmem:[%s3685_s20 + $0x1480] sm:$0xff] %v1864_v56  ;;  %v873_v56 = vld [vmem:[%s3666_s4 + $0x1590] sm:$0xff]  ;;  %v1897_v59 = vsub.f32 %v3673_v1, %v872_v54 }
 0x2de   : > { %2889 = vst [vmem:[%s3685_s20 + $0x1488] sm:$0xff] %v1865_v58  ;;  %v874_v58 = vld [vmem:[%s3666_s4 + $0x1598] sm:$0xff]  ;;  %v1898_v61 = vsub.f32 %v3673_v1, %v873_v56 }
 0x2df   : > { %2890 = vst [vmem:[%s3685_s20 + $0x1490] sm:$0xff] %v1866_v60  ;;  %v875_v60 = vld [vmem:[%s3666_s4 + $0x15a0] sm:$0xff]  ;;  %v1899_v63 = vsub.f32 %v3673_v1, %v874_v58 }
 0x2e0   : > { %2891 = vst [vmem:[%s3685_s20 + $0x1498] sm:$0xff] %v1867_v62  ;;  %v876_v62 = vld [vmem:[%s3666_s4 + $0x15a8] sm:$0xff]  ;;  %v1900_v2 = vsub.f32 %v3673_v1, %v875_v60 }
 0x2e1   : > { %2892 = vst [vmem:[%s3685_s20 + $0x14a0] sm:$0xff] %v1868_v0  ;;  %v877_v0 = vld [vmem:[%s3666_s4 + $0x15b0] sm:$0xff]  ;;  %v1901_v4 = vsub.f32 %v3673_v1, %v876_v62 }
 0x2e2   : > { %2893 = vst [vmem:[%s3685_s20 + $0x14a8] sm:$0xff] %v1869_v3  ;;  %v878_v3 = vld [vmem:[%s3666_s4 + $0x15b8] sm:$0xff]  ;;  %v1902_v6 = vsub.f32 %v3673_v1, %v877_v0 }
 0x2e3   : > { %2894 = vst [vmem:[%s3685_s20 + $0x14b0] sm:$0xff] %v1870_v5  ;;  %v879_v5 = vld [vmem:[%s3666_s4 + $0x15c0] sm:$0xff]  ;;  %v1903_v8 = vsub.f32 %v3673_v1, %v878_v3 }
 0x2e4   : > { %2895 = vst [vmem:[%s3685_s20 + $0x14b8] sm:$0xff] %v1871_v7  ;;  %v880_v7 = vld [vmem:[%s3666_s4 + $0x15c8] sm:$0xff]  ;;  %v1904_v10 = vsub.f32 %v3673_v1, %v879_v5 }
 0x2e5   : > { %2896 = vst [vmem:[%s3685_s20 + $0x14c0] sm:$0xff] %v1872_v9  ;;  %v881_v9 = vld [vmem:[%s3666_s4 + $0x15d0] sm:$0xff]  ;;  %v1905_v12 = vsub.f32 %v3673_v1, %v880_v7 }
 0x2e6   : > { %2897 = vst [vmem:[%s3685_s20 + $0x14c8] sm:$0xff] %v1873_v11  ;;  %v882_v11 = vld [vmem:[%s3666_s4 + $0x15d8] sm:$0xff]  ;;  %v1906_v14 = vsub.f32 %v3673_v1, %v881_v9 }
 0x2e7   : > { %2898 = vst [vmem:[%s3685_s20 + $0x14d0] sm:$0xff] %v1874_v13  ;;  %v883_v13 = vld [vmem:[%s3666_s4 + $0x15e0] sm:$0xff]  ;;  %v1907_v16 = vsub.f32 %v3673_v1, %v882_v11 }
 0x2e8   : > { %2899 = vst [vmem:[%s3685_s20 + $0x14d8] sm:$0xff] %v1875_v15  ;;  %v884_v15 = vld [vmem:[%s3666_s4 + $0x15e8] sm:$0xff]  ;;  %v1908_v18 = vsub.f32 %v3673_v1, %v883_v13 }
 0x2e9   : > { %2900 = vst [vmem:[%s3685_s20 + $0x14e0] sm:$0xff] %v1876_v17  ;;  %v885_v17 = vld [vmem:[%s3666_s4 + $0x15f0] sm:$0xff]  ;;  %v1909_v20 = vsub.f32 %v3673_v1, %v884_v15 }
 0x2ea   : > { %2901 = vst [vmem:[%s3685_s20 + $0x14e8] sm:$0xff] %v1877_v19  ;;  %v886_v19 = vld [vmem:[%s3666_s4 + $0x15f8] sm:$0xff]  ;;  %v1910_v22 = vsub.f32 %v3673_v1, %v885_v17 }
 0x2eb   : > { %2902 = vst [vmem:[%s3685_s20 + $0x14f0] sm:$0xff] %v1878_v21  ;;  %v887_v21 = vld [vmem:[%s3666_s4 + $0x1600] sm:$0xff]  ;;  %v1911_v24 = vsub.f32 %v3673_v1, %v886_v19 }
 0x2ec   : > { %2903 = vst [vmem:[%s3685_s20 + $0x14f8] sm:$0xff] %v1879_v23  ;;  %v888_v23 = vld [vmem:[%s3666_s4 + $0x1608] sm:$0xff]  ;;  %v1912_v26 = vsub.f32 %v3673_v1, %v887_v21 }
 0x2ed   : > { %2904 = vst [vmem:[%s3685_s20 + $0x1500] sm:$0xff] %v1880_v25  ;;  %v889_v25 = vld [vmem:[%s3666_s4 + $0x1610] sm:$0xff]  ;;  %v1913_v28 = vsub.f32 %v3673_v1, %v888_v23 }
 0x2ee   : > { %2905 = vst [vmem:[%s3685_s20 + $0x1508] sm:$0xff] %v1881_v27  ;;  %v890_v27 = vld [vmem:[%s3666_s4 + $0x1618] sm:$0xff]  ;;  %v1914_v30 = vsub.f32 %v3673_v1, %v889_v25 }
 0x2ef   : > { %2906 = vst [vmem:[%s3685_s20 + $0x1510] sm:$0xff] %v1882_v29  ;;  %v891_v29 = vld [vmem:[%s3666_s4 + $0x1620] sm:$0xff]  ;;  %v1915_v32 = vsub.f32 %v3673_v1, %v890_v27 }
 0x2f0   : > { %2907 = vst [vmem:[%s3685_s20 + $0x1518] sm:$0xff] %v1883_v31  ;;  %v892_v31 = vld [vmem:[%s3666_s4 + $0x1628] sm:$0xff]  ;;  %v1916_v34 = vsub.f32 %v3673_v1, %v891_v29 }
 0x2f1   : > { %2908 = vst [vmem:[%s3685_s20 + $0x1520] sm:$0xff] %v1884_v33  ;;  %v893_v33 = vld [vmem:[%s3666_s4 + $0x1630] sm:$0xff]  ;;  %v1917_v36 = vsub.f32 %v3673_v1, %v892_v31 }
 0x2f2   : > { %2909 = vst [vmem:[%s3685_s20 + $0x1528] sm:$0xff] %v1885_v35  ;;  %v894_v35 = vld [vmem:[%s3666_s4 + $0x1638] sm:$0xff]  ;;  %v1918_v38 = vsub.f32 %v3673_v1, %v893_v33 }
 0x2f3   : > { %2910 = vst [vmem:[%s3685_s20 + $0x1530] sm:$0xff] %v1886_v37  ;;  %v895_v37 = vld [vmem:[%s3666_s4 + $0x1640] sm:$0xff]  ;;  %v1919_v40 = vsub.f32 %v3673_v1, %v894_v35 }
 0x2f4   : > { %2911 = vst [vmem:[%s3685_s20 + $0x1538] sm:$0xff] %v1887_v39  ;;  %v896_v39 = vld [vmem:[%s3666_s4 + $0x1648] sm:$0xff]  ;;  %v1920_v42 = vsub.f32 %v3673_v1, %v895_v37 }
 0x2f5   : > { %2912 = vst [vmem:[%s3685_s20 + $0x1540] sm:$0xff] %v1888_v41  ;;  %v897_v41 = vld [vmem:[%s3666_s4 + $0x1650] sm:$0xff]  ;;  %v1921_v44 = vsub.f32 %v3673_v1, %v896_v39 }
 0x2f6   : > { %2913 = vst [vmem:[%s3685_s20 + $0x1548] sm:$0xff] %v1889_v43  ;;  %v898_v43 = vld [vmem:[%s3666_s4 + $0x1658] sm:$0xff]  ;;  %v1922_v46 = vsub.f32 %v3673_v1, %v897_v41 }
 0x2f7   : > { %2914 = vst [vmem:[%s3685_s20 + $0x1550] sm:$0xff] %v1890_v45  ;;  %v899_v45 = vld [vmem:[%s3666_s4 + $0x1660] sm:$0xff]  ;;  %v1923_v48 = vsub.f32 %v3673_v1, %v898_v43 }
 0x2f8   : > { %2915 = vst [vmem:[%s3685_s20 + $0x1558] sm:$0xff] %v1891_v47  ;;  %v900_v47 = vld [vmem:[%s3666_s4 + $0x1668] sm:$0xff]  ;;  %v1924_v50 = vsub.f32 %v3673_v1, %v899_v45 }
 0x2f9   : > { %2916 = vst [vmem:[%s3685_s20 + $0x1560] sm:$0xff] %v1892_v49  ;;  %v901_v49 = vld [vmem:[%s3666_s4 + $0x1670] sm:$0xff]  ;;  %v1925_v52 = vsub.f32 %v3673_v1, %v900_v47 }
 0x2fa   : > { %2917 = vst [vmem:[%s3685_s20 + $0x1568] sm:$0xff] %v1893_v51  ;;  %v902_v51 = vld [vmem:[%s3666_s4 + $0x1678] sm:$0xff]  ;;  %v1926_v54 = vsub.f32 %v3673_v1, %v901_v49 }
 0x2fb   : > { %2918 = vst [vmem:[%s3685_s20 + $0x1570] sm:$0xff] %v1894_v53  ;;  %v903_v53 = vld [vmem:[%s3666_s4 + $0x1680] sm:$0xff]  ;;  %v1927_v56 = vsub.f32 %v3673_v1, %v902_v51 }
 0x2fc   : > { %2919 = vst [vmem:[%s3685_s20 + $0x1578] sm:$0xff] %v1895_v55  ;;  %v904_v55 = vld [vmem:[%s3666_s4 + $0x1688] sm:$0xff]  ;;  %v1928_v58 = vsub.f32 %v3673_v1, %v903_v53 }
 0x2fd   : > { %2920 = vst [vmem:[%s3685_s20 + $0x1580] sm:$0xff] %v1896_v57  ;;  %v905_v57 = vld [vmem:[%s3666_s4 + $0x1690] sm:$0xff]  ;;  %v1929_v60 = vsub.f32 %v3673_v1, %v904_v55 }
 0x2fe   : > { %2921 = vst [vmem:[%s3685_s20 + $0x1588] sm:$0xff] %v1897_v59  ;;  %v906_v59 = vld [vmem:[%s3666_s4 + $0x1698] sm:$0xff]  ;;  %v1930_v62 = vsub.f32 %v3673_v1, %v905_v57 }
 0x2ff   : > { %2922 = vst [vmem:[%s3685_s20 + $0x1590] sm:$0xff] %v1898_v61  ;;  %v907_v61 = vld [vmem:[%s3666_s4 + $0x16a0] sm:$0xff]  ;;  %v1931_v0 = vsub.f32 %v3673_v1, %v906_v59 }
 0x300   : > { %2923 = vst [vmem:[%s3685_s20 + $0x1598] sm:$0xff] %v1899_v63  ;;  %v908_v63 = vld [vmem:[%s3666_s4 + $0x16a8] sm:$0xff]  ;;  %v1932_v3 = vsub.f32 %v3673_v1, %v907_v61 }
 0x301   : > { %2924 = vst [vmem:[%s3685_s20 + $0x15a0] sm:$0xff] %v1900_v2  ;;  %v909_v2 = vld [vmem:[%s3666_s4 + $0x16b0] sm:$0xff]  ;;  %v1933_v5 = vsub.f32 %v3673_v1, %v908_v63 }
 0x302   : > { %2925 = vst [vmem:[%s3685_s20 + $0x15a8] sm:$0xff] %v1901_v4  ;;  %v910_v4 = vld [vmem:[%s3666_s4 + $0x16b8] sm:$0xff]  ;;  %v1934_v7 = vsub.f32 %v3673_v1, %v909_v2 }
 0x303   : > { %2926 = vst [vmem:[%s3685_s20 + $0x15b0] sm:$0xff] %v1902_v6  ;;  %v911_v6 = vld [vmem:[%s3666_s4 + $0x16c0] sm:$0xff]  ;;  %v1935_v9 = vsub.f32 %v3673_v1, %v910_v4 }
 0x304   : > { %2927 = vst [vmem:[%s3685_s20 + $0x15b8] sm:$0xff] %v1903_v8  ;;  %v912_v8 = vld [vmem:[%s3666_s4 + $0x16c8] sm:$0xff]  ;;  %v1936_v11 = vsub.f32 %v3673_v1, %v911_v6 }
 0x305   : > { %2928 = vst [vmem:[%s3685_s20 + $0x15c0] sm:$0xff] %v1904_v10  ;;  %v913_v10 = vld [vmem:[%s3666_s4 + $0x16d0] sm:$0xff]  ;;  %v1937_v13 = vsub.f32 %v3673_v1, %v912_v8 }
 0x306   : > { %2929 = vst [vmem:[%s3685_s20 + $0x15c8] sm:$0xff] %v1905_v12  ;;  %v914_v12 = vld [vmem:[%s3666_s4 + $0x16d8] sm:$0xff]  ;;  %v1938_v15 = vsub.f32 %v3673_v1, %v913_v10 }
 0x307   : > { %2930 = vst [vmem:[%s3685_s20 + $0x15d0] sm:$0xff] %v1906_v14  ;;  %v915_v14 = vld [vmem:[%s3666_s4 + $0x16e0] sm:$0xff]  ;;  %v1939_v17 = vsub.f32 %v3673_v1, %v914_v12 }
 0x308   : > { %2931 = vst [vmem:[%s3685_s20 + $0x15d8] sm:$0xff] %v1907_v16  ;;  %v916_v16 = vld [vmem:[%s3666_s4 + $0x16e8] sm:$0xff]  ;;  %v1940_v19 = vsub.f32 %v3673_v1, %v915_v14 }
 0x309   : > { %2932 = vst [vmem:[%s3685_s20 + $0x15e0] sm:$0xff] %v1908_v18  ;;  %v917_v18 = vld [vmem:[%s3666_s4 + $0x16f0] sm:$0xff]  ;;  %v1941_v21 = vsub.f32 %v3673_v1, %v916_v16 }
 0x30a   : > { %2933 = vst [vmem:[%s3685_s20 + $0x15e8] sm:$0xff] %v1909_v20  ;;  %v918_v20 = vld [vmem:[%s3666_s4 + $0x16f8] sm:$0xff]  ;;  %v1942_v23 = vsub.f32 %v3673_v1, %v917_v18 }
 0x30b   : > { %2934 = vst [vmem:[%s3685_s20 + $0x15f0] sm:$0xff] %v1910_v22  ;;  %v919_v22 = vld [vmem:[%s3666_s4 + $0x1700] sm:$0xff]  ;;  %v1943_v25 = vsub.f32 %v3673_v1, %v918_v20 }
 0x30c   : > { %2935 = vst [vmem:[%s3685_s20 + $0x15f8] sm:$0xff] %v1911_v24  ;;  %v920_v24 = vld [vmem:[%s3666_s4 + $0x1708] sm:$0xff]  ;;  %v1944_v27 = vsub.f32 %v3673_v1, %v919_v22 }
 0x30d   : > { %2936 = vst [vmem:[%s3685_s20 + $0x1600] sm:$0xff] %v1912_v26  ;;  %v921_v26 = vld [vmem:[%s3666_s4 + $0x1710] sm:$0xff]  ;;  %v1945_v29 = vsub.f32 %v3673_v1, %v920_v24 }
 0x30e   : > { %2937 = vst [vmem:[%s3685_s20 + $0x1608] sm:$0xff] %v1913_v28  ;;  %v922_v28 = vld [vmem:[%s3666_s4 + $0x1718] sm:$0xff]  ;;  %v1946_v31 = vsub.f32 %v3673_v1, %v921_v26 }
 0x30f   : > { %2938 = vst [vmem:[%s3685_s20 + $0x1610] sm:$0xff] %v1914_v30  ;;  %v923_v30 = vld [vmem:[%s3666_s4 + $0x1720] sm:$0xff]  ;;  %v1947_v33 = vsub.f32 %v3673_v1, %v922_v28 }
 0x310   : > { %2939 = vst [vmem:[%s3685_s20 + $0x1618] sm:$0xff] %v1915_v32  ;;  %v924_v32 = vld [vmem:[%s3666_s4 + $0x1728] sm:$0xff]  ;;  %v1948_v35 = vsub.f32 %v3673_v1, %v923_v30 }
 0x311   : > { %2940 = vst [vmem:[%s3685_s20 + $0x1620] sm:$0xff] %v1916_v34  ;;  %v925_v34 = vld [vmem:[%s3666_s4 + $0x1730] sm:$0xff]  ;;  %v1949_v37 = vsub.f32 %v3673_v1, %v924_v32 }
 0x312   : > { %2941 = vst [vmem:[%s3685_s20 + $0x1628] sm:$0xff] %v1917_v36  ;;  %v926_v36 = vld [vmem:[%s3666_s4 + $0x1738] sm:$0xff]  ;;  %v1950_v39 = vsub.f32 %v3673_v1, %v925_v34 }
 0x313   : > { %2942 = vst [vmem:[%s3685_s20 + $0x1630] sm:$0xff] %v1918_v38  ;;  %v927_v38 = vld [vmem:[%s3666_s4 + $0x1740] sm:$0xff]  ;;  %v1951_v41 = vsub.f32 %v3673_v1, %v926_v36 }
 0x314   : > { %2943 = vst [vmem:[%s3685_s20 + $0x1638] sm:$0xff] %v1919_v40  ;;  %v928_v40 = vld [vmem:[%s3666_s4 + $0x1748] sm:$0xff]  ;;  %v1952_v43 = vsub.f32 %v3673_v1, %v927_v38 }
 0x315   : > { %2944 = vst [vmem:[%s3685_s20 + $0x1640] sm:$0xff] %v1920_v42  ;;  %v929_v42 = vld [vmem:[%s3666_s4 + $0x1750] sm:$0xff]  ;;  %v1953_v45 = vsub.f32 %v3673_v1, %v928_v40 }
 0x316   : > { %2945 = vst [vmem:[%s3685_s20 + $0x1648] sm:$0xff] %v1921_v44  ;;  %v930_v44 = vld [vmem:[%s3666_s4 + $0x1758] sm:$0xff]  ;;  %v1954_v47 = vsub.f32 %v3673_v1, %v929_v42 }
 0x317   : > { %2946 = vst [vmem:[%s3685_s20 + $0x1650] sm:$0xff] %v1922_v46  ;;  %v931_v46 = vld [vmem:[%s3666_s4 + $0x1760] sm:$0xff]  ;;  %v1955_v49 = vsub.f32 %v3673_v1, %v930_v44 }
 0x318   : > { %2947 = vst [vmem:[%s3685_s20 + $0x1658] sm:$0xff] %v1923_v48  ;;  %v932_v48 = vld [vmem:[%s3666_s4 + $0x1768] sm:$0xff]  ;;  %v1956_v51 = vsub.f32 %v3673_v1, %v931_v46 }
 0x319   : > { %2948 = vst [vmem:[%s3685_s20 + $0x1660] sm:$0xff] %v1924_v50  ;;  %v933_v50 = vld [vmem:[%s3666_s4 + $0x1770] sm:$0xff]  ;;  %v1957_v53 = vsub.f32 %v3673_v1, %v932_v48 }
 0x31a   : > { %2949 = vst [vmem:[%s3685_s20 + $0x1668] sm:$0xff] %v1925_v52  ;;  %v934_v52 = vld [vmem:[%s3666_s4 + $0x1778] sm:$0xff]  ;;  %v1958_v55 = vsub.f32 %v3673_v1, %v933_v50 }
 0x31b   : > { %2950 = vst [vmem:[%s3685_s20 + $0x1670] sm:$0xff] %v1926_v54  ;;  %v935_v54 = vld [vmem:[%s3666_s4 + $0x1780] sm:$0xff]  ;;  %v1959_v57 = vsub.f32 %v3673_v1, %v934_v52 }
 0x31c   : > { %2951 = vst [vmem:[%s3685_s20 + $0x1678] sm:$0xff] %v1927_v56  ;;  %v936_v56 = vld [vmem:[%s3666_s4 + $0x1788] sm:$0xff]  ;;  %v1960_v59 = vsub.f32 %v3673_v1, %v935_v54 }
 0x31d   : > { %2952 = vst [vmem:[%s3685_s20 + $0x1680] sm:$0xff] %v1928_v58  ;;  %v937_v58 = vld [vmem:[%s3666_s4 + $0x1790] sm:$0xff]  ;;  %v1961_v61 = vsub.f32 %v3673_v1, %v936_v56 }
 0x31e   : > { %2953 = vst [vmem:[%s3685_s20 + $0x1688] sm:$0xff] %v1929_v60  ;;  %v938_v60 = vld [vmem:[%s3666_s4 + $0x1798] sm:$0xff]  ;;  %v1962_v63 = vsub.f32 %v3673_v1, %v937_v58 }
 0x31f   : > { %2954 = vst [vmem:[%s3685_s20 + $0x1690] sm:$0xff] %v1930_v62  ;;  %v939_v62 = vld [vmem:[%s3666_s4 + $0x17a0] sm:$0xff]  ;;  %v1963_v2 = vsub.f32 %v3673_v1, %v938_v60 }
 0x320   : > { %2955 = vst [vmem:[%s3685_s20 + $0x1698] sm:$0xff] %v1931_v0  ;;  %v940_v0 = vld [vmem:[%s3666_s4 + $0x17a8] sm:$0xff]  ;;  %v1964_v4 = vsub.f32 %v3673_v1, %v939_v62 }
 0x321   : > { %2956 = vst [vmem:[%s3685_s20 + $0x16a0] sm:$0xff] %v1932_v3  ;;  %v941_v3 = vld [vmem:[%s3666_s4 + $0x17b0] sm:$0xff]  ;;  %v1965_v6 = vsub.f32 %v3673_v1, %v940_v0 }
 0x322   : > { %2957 = vst [vmem:[%s3685_s20 + $0x16a8] sm:$0xff] %v1933_v5  ;;  %v942_v5 = vld [vmem:[%s3666_s4 + $0x17b8] sm:$0xff]  ;;  %v1966_v8 = vsub.f32 %v3673_v1, %v941_v3 }
 0x323   : > { %2958 = vst [vmem:[%s3685_s20 + $0x16b0] sm:$0xff] %v1934_v7  ;;  %v943_v7 = vld [vmem:[%s3666_s4 + $0x17c0] sm:$0xff]  ;;  %v1967_v10 = vsub.f32 %v3673_v1, %v942_v5 }
 0x324   : > { %2959 = vst [vmem:[%s3685_s20 + $0x16b8] sm:$0xff] %v1935_v9  ;;  %v944_v9 = vld [vmem:[%s3666_s4 + $0x17c8] sm:$0xff]  ;;  %v1968_v12 = vsub.f32 %v3673_v1, %v943_v7 }
 0x325   : > { %2960 = vst [vmem:[%s3685_s20 + $0x16c0] sm:$0xff] %v1936_v11  ;;  %v945_v11 = vld [vmem:[%s3666_s4 + $0x17d0] sm:$0xff]  ;;  %v1969_v14 = vsub.f32 %v3673_v1, %v944_v9 }
 0x326   : > { %2961 = vst [vmem:[%s3685_s20 + $0x16c8] sm:$0xff] %v1937_v13  ;;  %v946_v13 = vld [vmem:[%s3666_s4 + $0x17d8] sm:$0xff]  ;;  %v1970_v16 = vsub.f32 %v3673_v1, %v945_v11 }
 0x327   : > { %2962 = vst [vmem:[%s3685_s20 + $0x16d0] sm:$0xff] %v1938_v15  ;;  %v947_v15 = vld [vmem:[%s3666_s4 + $0x17e0] sm:$0xff]  ;;  %v1971_v18 = vsub.f32 %v3673_v1, %v946_v13 }
 0x328   : > { %2963 = vst [vmem:[%s3685_s20 + $0x16d8] sm:$0xff] %v1939_v17  ;;  %v948_v17 = vld [vmem:[%s3666_s4 + $0x17e8] sm:$0xff]  ;;  %v1972_v20 = vsub.f32 %v3673_v1, %v947_v15 }
 0x329   : > { %2964 = vst [vmem:[%s3685_s20 + $0x16e0] sm:$0xff] %v1940_v19  ;;  %v949_v19 = vld [vmem:[%s3666_s4 + $0x17f0] sm:$0xff]  ;;  %v1973_v22 = vsub.f32 %v3673_v1, %v948_v17 }
 0x32a   : > { %2965 = vst [vmem:[%s3685_s20 + $0x16e8] sm:$0xff] %v1941_v21  ;;  %v950_v21 = vld [vmem:[%s3666_s4 + $0x17f8] sm:$0xff]  ;;  %v1974_v24 = vsub.f32 %v3673_v1, %v949_v19 }
 0x32b   : > { %2966 = vst [vmem:[%s3685_s20 + $0x16f0] sm:$0xff] %v1942_v23  ;;  %v951_v23 = vld [vmem:[%s3666_s4 + $0x1800] sm:$0xff]  ;;  %v1975_v26 = vsub.f32 %v3673_v1, %v950_v21 }
 0x32c   : > { %2967 = vst [vmem:[%s3685_s20 + $0x16f8] sm:$0xff] %v1943_v25  ;;  %v952_v25 = vld [vmem:[%s3666_s4 + $0x1808] sm:$0xff]  ;;  %v1976_v28 = vsub.f32 %v3673_v1, %v951_v23 }
 0x32d   : > { %2968 = vst [vmem:[%s3685_s20 + $0x1700] sm:$0xff] %v1944_v27  ;;  %v953_v27 = vld [vmem:[%s3666_s4 + $0x1810] sm:$0xff]  ;;  %v1977_v30 = vsub.f32 %v3673_v1, %v952_v25 }
 0x32e   : > { %2969 = vst [vmem:[%s3685_s20 + $0x1708] sm:$0xff] %v1945_v29  ;;  %v954_v29 = vld [vmem:[%s3666_s4 + $0x1818] sm:$0xff]  ;;  %v1978_v32 = vsub.f32 %v3673_v1, %v953_v27 }
 0x32f   : > { %2970 = vst [vmem:[%s3685_s20 + $0x1710] sm:$0xff] %v1946_v31  ;;  %v955_v31 = vld [vmem:[%s3666_s4 + $0x1820] sm:$0xff]  ;;  %v1979_v34 = vsub.f32 %v3673_v1, %v954_v29 }
 0x330   : > { %2971 = vst [vmem:[%s3685_s20 + $0x1718] sm:$0xff] %v1947_v33  ;;  %v956_v33 = vld [vmem:[%s3666_s4 + $0x1828] sm:$0xff]  ;;  %v1980_v36 = vsub.f32 %v3673_v1, %v955_v31 }
 0x331   : > { %2972 = vst [vmem:[%s3685_s20 + $0x1720] sm:$0xff] %v1948_v35  ;;  %v957_v35 = vld [vmem:[%s3666_s4 + $0x1830] sm:$0xff]  ;;  %v1981_v38 = vsub.f32 %v3673_v1, %v956_v33 }
 0x332   : > { %2973 = vst [vmem:[%s3685_s20 + $0x1728] sm:$0xff] %v1949_v37  ;;  %v958_v37 = vld [vmem:[%s3666_s4 + $0x1838] sm:$0xff]  ;;  %v1982_v40 = vsub.f32 %v3673_v1, %v957_v35 }
 0x333   : > { %2974 = vst [vmem:[%s3685_s20 + $0x1730] sm:$0xff] %v1950_v39  ;;  %v959_v39 = vld [vmem:[%s3666_s4 + $0x1840] sm:$0xff]  ;;  %v1983_v42 = vsub.f32 %v3673_v1, %v958_v37 }
 0x334   : > { %2975 = vst [vmem:[%s3685_s20 + $0x1738] sm:$0xff] %v1951_v41  ;;  %v960_v41 = vld [vmem:[%s3666_s4 + $0x1848] sm:$0xff]  ;;  %v1984_v44 = vsub.f32 %v3673_v1, %v959_v39 }
 0x335   : > { %2976 = vst [vmem:[%s3685_s20 + $0x1740] sm:$0xff] %v1952_v43  ;;  %v961_v43 = vld [vmem:[%s3666_s4 + $0x1850] sm:$0xff]  ;;  %v1985_v46 = vsub.f32 %v3673_v1, %v960_v41 }
 0x336   : > { %2977 = vst [vmem:[%s3685_s20 + $0x1748] sm:$0xff] %v1953_v45  ;;  %v962_v45 = vld [vmem:[%s3666_s4 + $0x1858] sm:$0xff]  ;;  %v1986_v48 = vsub.f32 %v3673_v1, %v961_v43 }
 0x337   : > { %2978 = vst [vmem:[%s3685_s20 + $0x1750] sm:$0xff] %v1954_v47  ;;  %v963_v47 = vld [vmem:[%s3666_s4 + $0x1860] sm:$0xff]  ;;  %v1987_v50 = vsub.f32 %v3673_v1, %v962_v45 }
 0x338   : > { %2979 = vst [vmem:[%s3685_s20 + $0x1758] sm:$0xff] %v1955_v49  ;;  %v964_v49 = vld [vmem:[%s3666_s4 + $0x1868] sm:$0xff]  ;;  %v1988_v52 = vsub.f32 %v3673_v1, %v963_v47 }
 0x339   : > { %2980 = vst [vmem:[%s3685_s20 + $0x1760] sm:$0xff] %v1956_v51  ;;  %v965_v51 = vld [vmem:[%s3666_s4 + $0x1870] sm:$0xff]  ;;  %v1989_v54 = vsub.f32 %v3673_v1, %v964_v49 }
 0x33a   : > { %2981 = vst [vmem:[%s3685_s20 + $0x1768] sm:$0xff] %v1957_v53  ;;  %v966_v53 = vld [vmem:[%s3666_s4 + $0x1878] sm:$0xff]  ;;  %v1990_v56 = vsub.f32 %v3673_v1, %v965_v51 }
 0x33b   : > { %2982 = vst [vmem:[%s3685_s20 + $0x1770] sm:$0xff] %v1958_v55  ;;  %v967_v55 = vld [vmem:[%s3666_s4 + $0x1880] sm:$0xff]  ;;  %v1991_v58 = vsub.f32 %v3673_v1, %v966_v53 }
 0x33c   : > { %2983 = vst [vmem:[%s3685_s20 + $0x1778] sm:$0xff] %v1959_v57  ;;  %v968_v57 = vld [vmem:[%s3666_s4 + $0x1888] sm:$0xff]  ;;  %v1992_v60 = vsub.f32 %v3673_v1, %v967_v55 }
 0x33d   : > { %2984 = vst [vmem:[%s3685_s20 + $0x1780] sm:$0xff] %v1960_v59  ;;  %v969_v59 = vld [vmem:[%s3666_s4 + $0x1890] sm:$0xff]  ;;  %v1993_v62 = vsub.f32 %v3673_v1, %v968_v57 }
 0x33e   : > { %2985 = vst [vmem:[%s3685_s20 + $0x1788] sm:$0xff] %v1961_v61  ;;  %v970_v61 = vld [vmem:[%s3666_s4 + $0x1898] sm:$0xff]  ;;  %v1994_v0 = vsub.f32 %v3673_v1, %v969_v59 }
 0x33f   : > { %2986 = vst [vmem:[%s3685_s20 + $0x1790] sm:$0xff] %v1962_v63  ;;  %v971_v63 = vld [vmem:[%s3666_s4 + $0x18a0] sm:$0xff]  ;;  %v1995_v3 = vsub.f32 %v3673_v1, %v970_v61 }
 0x340   : > { %2987 = vst [vmem:[%s3685_s20 + $0x1798] sm:$0xff] %v1963_v2  ;;  %v972_v2 = vld [vmem:[%s3666_s4 + $0x18a8] sm:$0xff]  ;;  %v1996_v5 = vsub.f32 %v3673_v1, %v971_v63 }
 0x341   : > { %2988 = vst [vmem:[%s3685_s20 + $0x17a0] sm:$0xff] %v1964_v4  ;;  %v973_v4 = vld [vmem:[%s3666_s4 + $0x18b0] sm:$0xff]  ;;  %v1997_v7 = vsub.f32 %v3673_v1, %v972_v2 }
 0x342   : > { %2989 = vst [vmem:[%s3685_s20 + $0x17a8] sm:$0xff] %v1965_v6  ;;  %v974_v6 = vld [vmem:[%s3666_s4 + $0x18b8] sm:$0xff]  ;;  %v1998_v9 = vsub.f32 %v3673_v1, %v973_v4 }
 0x343   : > { %2990 = vst [vmem:[%s3685_s20 + $0x17b0] sm:$0xff] %v1966_v8  ;;  %v975_v8 = vld [vmem:[%s3666_s4 + $0x18c0] sm:$0xff]  ;;  %v1999_v11 = vsub.f32 %v3673_v1, %v974_v6 }
 0x344   : > { %2991 = vst [vmem:[%s3685_s20 + $0x17b8] sm:$0xff] %v1967_v10  ;;  %v976_v10 = vld [vmem:[%s3666_s4 + $0x18c8] sm:$0xff]  ;;  %v2000_v13 = vsub.f32 %v3673_v1, %v975_v8 }
 0x345   : > { %2992 = vst [vmem:[%s3685_s20 + $0x17c0] sm:$0xff] %v1968_v12  ;;  %v977_v12 = vld [vmem:[%s3666_s4 + $0x18d0] sm:$0xff]  ;;  %v2001_v15 = vsub.f32 %v3673_v1, %v976_v10 }
 0x346   : > { %2993 = vst [vmem:[%s3685_s20 + $0x17c8] sm:$0xff] %v1969_v14  ;;  %v978_v14 = vld [vmem:[%s3666_s4 + $0x18d8] sm:$0xff]  ;;  %v2002_v17 = vsub.f32 %v3673_v1, %v977_v12 }
 0x347   : > { %2994 = vst [vmem:[%s3685_s20 + $0x17d0] sm:$0xff] %v1970_v16  ;;  %v979_v16 = vld [vmem:[%s3666_s4 + $0x18e0] sm:$0xff]  ;;  %v2003_v19 = vsub.f32 %v3673_v1, %v978_v14 }
 0x348   : > { %2995 = vst [vmem:[%s3685_s20 + $0x17d8] sm:$0xff] %v1971_v18  ;;  %v980_v18 = vld [vmem:[%s3666_s4 + $0x18e8] sm:$0xff]  ;;  %v2004_v21 = vsub.f32 %v3673_v1, %v979_v16 }
 0x349   : > { %2996 = vst [vmem:[%s3685_s20 + $0x17e0] sm:$0xff] %v1972_v20  ;;  %v981_v20 = vld [vmem:[%s3666_s4 + $0x18f0] sm:$0xff]  ;;  %v2005_v23 = vsub.f32 %v3673_v1, %v980_v18 }
 0x34a   : > { %2997 = vst [vmem:[%s3685_s20 + $0x17e8] sm:$0xff] %v1973_v22  ;;  %v982_v22 = vld [vmem:[%s3666_s4 + $0x18f8] sm:$0xff]  ;;  %v2006_v25 = vsub.f32 %v3673_v1, %v981_v20 }
 0x34b   : > { %2998 = vst [vmem:[%s3685_s20 + $0x17f0] sm:$0xff] %v1974_v24  ;;  %v983_v24 = vld [vmem:[%s3666_s4 + $0x1900] sm:$0xff]  ;;  %v2007_v27 = vsub.f32 %v3673_v1, %v982_v22 }
 0x34c   : > { %2999 = vst [vmem:[%s3685_s20 + $0x17f8] sm:$0xff] %v1975_v26  ;;  %v984_v26 = vld [vmem:[%s3666_s4 + $0x1908] sm:$0xff]  ;;  %v2008_v29 = vsub.f32 %v3673_v1, %v983_v24 }
 0x34d   : > { %3000 = vst [vmem:[%s3685_s20 + $0x1800] sm:$0xff] %v1976_v28  ;;  %v985_v28 = vld [vmem:[%s3666_s4 + $0x1910] sm:$0xff]  ;;  %v2009_v31 = vsub.f32 %v3673_v1, %v984_v26 }
 0x34e   : > { %3001 = vst [vmem:[%s3685_s20 + $0x1808] sm:$0xff] %v1977_v30  ;;  %v986_v30 = vld [vmem:[%s3666_s4 + $0x1918] sm:$0xff]  ;;  %v2010_v33 = vsub.f32 %v3673_v1, %v985_v28 }
 0x34f   : > { %3002 = vst [vmem:[%s3685_s20 + $0x1810] sm:$0xff] %v1978_v32  ;;  %v987_v32 = vld [vmem:[%s3666_s4 + $0x1920] sm:$0xff]  ;;  %v2011_v35 = vsub.f32 %v3673_v1, %v986_v30 }
 0x350   : > { %3003 = vst [vmem:[%s3685_s20 + $0x1818] sm:$0xff] %v1979_v34  ;;  %v988_v34 = vld [vmem:[%s3666_s4 + $0x1928] sm:$0xff]  ;;  %v2012_v37 = vsub.f32 %v3673_v1, %v987_v32 }
 0x351   : > { %3004 = vst [vmem:[%s3685_s20 + $0x1820] sm:$0xff] %v1980_v36  ;;  %v989_v36 = vld [vmem:[%s3666_s4 + $0x1930] sm:$0xff]  ;;  %v2013_v39 = vsub.f32 %v3673_v1, %v988_v34 }
 0x352   : > { %3005 = vst [vmem:[%s3685_s20 + $0x1828] sm:$0xff] %v1981_v38  ;;  %v990_v38 = vld [vmem:[%s3666_s4 + $0x1938] sm:$0xff]  ;;  %v2014_v41 = vsub.f32 %v3673_v1, %v989_v36 }
 0x353   : > { %3006 = vst [vmem:[%s3685_s20 + $0x1830] sm:$0xff] %v1982_v40  ;;  %v991_v40 = vld [vmem:[%s3666_s4 + $0x1940] sm:$0xff]  ;;  %v2015_v43 = vsub.f32 %v3673_v1, %v990_v38 }
 0x354   : > { %3007 = vst [vmem:[%s3685_s20 + $0x1838] sm:$0xff] %v1983_v42  ;;  %v992_v42 = vld [vmem:[%s3666_s4 + $0x1948] sm:$0xff]  ;;  %v2016_v45 = vsub.f32 %v3673_v1, %v991_v40 }
 0x355   : > { %3008 = vst [vmem:[%s3685_s20 + $0x1840] sm:$0xff] %v1984_v44  ;;  %v993_v44 = vld [vmem:[%s3666_s4 + $0x1950] sm:$0xff]  ;;  %v2017_v47 = vsub.f32 %v3673_v1, %v992_v42 }
 0x356   : > { %3009 = vst [vmem:[%s3685_s20 + $0x1848] sm:$0xff] %v1985_v46  ;;  %v994_v46 = vld [vmem:[%s3666_s4 + $0x1958] sm:$0xff]  ;;  %v2018_v49 = vsub.f32 %v3673_v1, %v993_v44 }
 0x357   : > { %3010 = vst [vmem:[%s3685_s20 + $0x1850] sm:$0xff] %v1986_v48  ;;  %v995_v48 = vld [vmem:[%s3666_s4 + $0x1960] sm:$0xff]  ;;  %v2019_v51 = vsub.f32 %v3673_v1, %v994_v46 }
 0x358   : > { %3011 = vst [vmem:[%s3685_s20 + $0x1858] sm:$0xff] %v1987_v50  ;;  %v996_v50 = vld [vmem:[%s3666_s4 + $0x1968] sm:$0xff]  ;;  %v2020_v53 = vsub.f32 %v3673_v1, %v995_v48 }
 0x359   : > { %3012 = vst [vmem:[%s3685_s20 + $0x1860] sm:$0xff] %v1988_v52  ;;  %v997_v52 = vld [vmem:[%s3666_s4 + $0x1970] sm:$0xff]  ;;  %v2021_v55 = vsub.f32 %v3673_v1, %v996_v50 }
 0x35a   : > { %3013 = vst [vmem:[%s3685_s20 + $0x1868] sm:$0xff] %v1989_v54  ;;  %v998_v54 = vld [vmem:[%s3666_s4 + $0x1978] sm:$0xff]  ;;  %v2022_v57 = vsub.f32 %v3673_v1, %v997_v52 }
 0x35b   : > { %3014 = vst [vmem:[%s3685_s20 + $0x1870] sm:$0xff] %v1990_v56  ;;  %v999_v56 = vld [vmem:[%s3666_s4 + $0x1980] sm:$0xff]  ;;  %v2023_v59 = vsub.f32 %v3673_v1, %v998_v54 }
 0x35c   : > { %3015 = vst [vmem:[%s3685_s20 + $0x1878] sm:$0xff] %v1991_v58  ;;  %v1000_v58 = vld [vmem:[%s3666_s4 + $0x1988] sm:$0xff]  ;;  %v2024_v61 = vsub.f32 %v3673_v1, %v999_v56 }
 0x35d   : > { %3016 = vst [vmem:[%s3685_s20 + $0x1880] sm:$0xff] %v1992_v60  ;;  %v1001_v60 = vld [vmem:[%s3666_s4 + $0x1990] sm:$0xff]  ;;  %v2025_v63 = vsub.f32 %v3673_v1, %v1000_v58 }
 0x35e   : > { %3017 = vst [vmem:[%s3685_s20 + $0x1888] sm:$0xff] %v1993_v62  ;;  %v1002_v62 = vld [vmem:[%s3666_s4 + $0x1998] sm:$0xff]  ;;  %v2026_v2 = vsub.f32 %v3673_v1, %v1001_v60 }
 0x35f   : > { %3018 = vst [vmem:[%s3685_s20 + $0x1890] sm:$0xff] %v1994_v0  ;;  %v1003_v0 = vld [vmem:[%s3666_s4 + $0x19a0] sm:$0xff]  ;;  %v2027_v4 = vsub.f32 %v3673_v1, %v1002_v62 }
 0x360   : > { %3019 = vst [vmem:[%s3685_s20 + $0x1898] sm:$0xff] %v1995_v3  ;;  %v1004_v3 = vld [vmem:[%s3666_s4 + $0x19a8] sm:$0xff]  ;;  %v2028_v6 = vsub.f32 %v3673_v1, %v1003_v0 }
 0x361   : > { %3020 = vst [vmem:[%s3685_s20 + $0x18a0] sm:$0xff] %v1996_v5  ;;  %v1005_v5 = vld [vmem:[%s3666_s4 + $0x19b0] sm:$0xff]  ;;  %v2029_v8 = vsub.f32 %v3673_v1, %v1004_v3 }
 0x362   : > { %3021 = vst [vmem:[%s3685_s20 + $0x18a8] sm:$0xff] %v1997_v7  ;;  %v1006_v7 = vld [vmem:[%s3666_s4 + $0x19b8] sm:$0xff]  ;;  %v2030_v10 = vsub.f32 %v3673_v1, %v1005_v5 }
 0x363   : > { %3022 = vst [vmem:[%s3685_s20 + $0x18b0] sm:$0xff] %v1998_v9  ;;  %v1007_v9 = vld [vmem:[%s3666_s4 + $0x19c0] sm:$0xff]  ;;  %v2031_v12 = vsub.f32 %v3673_v1, %v1006_v7 }
 0x364   : > { %3023 = vst [vmem:[%s3685_s20 + $0x18b8] sm:$0xff] %v1999_v11  ;;  %v1008_v11 = vld [vmem:[%s3666_s4 + $0x19c8] sm:$0xff]  ;;  %v2032_v14 = vsub.f32 %v3673_v1, %v1007_v9 }
 0x365   : > { %3024 = vst [vmem:[%s3685_s20 + $0x18c0] sm:$0xff] %v2000_v13  ;;  %v1009_v13 = vld [vmem:[%s3666_s4 + $0x19d0] sm:$0xff]  ;;  %v2033_v16 = vsub.f32 %v3673_v1, %v1008_v11 }
 0x366   : > { %3025 = vst [vmem:[%s3685_s20 + $0x18c8] sm:$0xff] %v2001_v15  ;;  %v1010_v15 = vld [vmem:[%s3666_s4 + $0x19d8] sm:$0xff]  ;;  %v2034_v18 = vsub.f32 %v3673_v1, %v1009_v13 }
 0x367   : > { %3026 = vst [vmem:[%s3685_s20 + $0x18d0] sm:$0xff] %v2002_v17  ;;  %v1011_v17 = vld [vmem:[%s3666_s4 + $0x19e0] sm:$0xff]  ;;  %v2035_v20 = vsub.f32 %v3673_v1, %v1010_v15 }
 0x368   : > { %3027 = vst [vmem:[%s3685_s20 + $0x18d8] sm:$0xff] %v2003_v19  ;;  %v1012_v19 = vld [vmem:[%s3666_s4 + $0x19e8] sm:$0xff]  ;;  %v2036_v22 = vsub.f32 %v3673_v1, %v1011_v17 }
 0x369   : > { %3028 = vst [vmem:[%s3685_s20 + $0x18e0] sm:$0xff] %v2004_v21  ;;  %v1013_v21 = vld [vmem:[%s3666_s4 + $0x19f0] sm:$0xff]  ;;  %v2037_v24 = vsub.f32 %v3673_v1, %v1012_v19 }
 0x36a   : > { %3029 = vst [vmem:[%s3685_s20 + $0x18e8] sm:$0xff] %v2005_v23  ;;  %v1014_v23 = vld [vmem:[%s3666_s4 + $0x19f8] sm:$0xff]  ;;  %v2038_v26 = vsub.f32 %v3673_v1, %v1013_v21 }
 0x36b   : > { %3030 = vst [vmem:[%s3685_s20 + $0x18f0] sm:$0xff] %v2006_v25  ;;  %v1015_v25 = vld [vmem:[%s3666_s4 + $0x1a00] sm:$0xff]  ;;  %v2039_v28 = vsub.f32 %v3673_v1, %v1014_v23 }
 0x36c   : > { %3031 = vst [vmem:[%s3685_s20 + $0x18f8] sm:$0xff] %v2007_v27  ;;  %v1016_v27 = vld [vmem:[%s3666_s4 + $0x1a08] sm:$0xff]  ;;  %v2040_v30 = vsub.f32 %v3673_v1, %v1015_v25 }
 0x36d   : > { %3032 = vst [vmem:[%s3685_s20 + $0x1900] sm:$0xff] %v2008_v29  ;;  %v1017_v29 = vld [vmem:[%s3666_s4 + $0x1a10] sm:$0xff]  ;;  %v2041_v32 = vsub.f32 %v3673_v1, %v1016_v27 }
 0x36e   : > { %3033 = vst [vmem:[%s3685_s20 + $0x1908] sm:$0xff] %v2009_v31  ;;  %v1018_v31 = vld [vmem:[%s3666_s4 + $0x1a18] sm:$0xff]  ;;  %v2042_v34 = vsub.f32 %v3673_v1, %v1017_v29 }
 0x36f   : > { %3034 = vst [vmem:[%s3685_s20 + $0x1910] sm:$0xff] %v2010_v33  ;;  %v1019_v33 = vld [vmem:[%s3666_s4 + $0x1a20] sm:$0xff]  ;;  %v2043_v36 = vsub.f32 %v3673_v1, %v1018_v31 }
 0x370   : > { %3035 = vst [vmem:[%s3685_s20 + $0x1918] sm:$0xff] %v2011_v35  ;;  %v1020_v35 = vld [vmem:[%s3666_s4 + $0x1a28] sm:$0xff]  ;;  %v2044_v38 = vsub.f32 %v3673_v1, %v1019_v33 }
 0x371   : > { %3036 = vst [vmem:[%s3685_s20 + $0x1920] sm:$0xff] %v2012_v37  ;;  %v1021_v37 = vld [vmem:[%s3666_s4 + $0x1a30] sm:$0xff]  ;;  %v2045_v40 = vsub.f32 %v3673_v1, %v1020_v35 }
 0x372   : > { %3037 = vst [vmem:[%s3685_s20 + $0x1928] sm:$0xff] %v2013_v39  ;;  %v1022_v39 = vld [vmem:[%s3666_s4 + $0x1a38] sm:$0xff]  ;;  %v2046_v42 = vsub.f32 %v3673_v1, %v1021_v37 }
 0x373   : > { %3038 = vst [vmem:[%s3685_s20 + $0x1930] sm:$0xff] %v2014_v41  ;;  %v1023_v41 = vld [vmem:[%s3666_s4 + $0x1a40] sm:$0xff]  ;;  %v2047_v44 = vsub.f32 %v3673_v1, %v1022_v39 }
 0x374   : > { %3039 = vst [vmem:[%s3685_s20 + $0x1938] sm:$0xff] %v2015_v43  ;;  %v1024_v43 = vld [vmem:[%s3666_s4 + $0x1a48] sm:$0xff]  ;;  %v2048_v46 = vsub.f32 %v3673_v1, %v1023_v41 }
 0x375   : > { %3040 = vst [vmem:[%s3685_s20 + $0x1940] sm:$0xff] %v2016_v45  ;;  %v1025_v45 = vld [vmem:[%s3666_s4 + $0x1a50] sm:$0xff]  ;;  %v2049_v48 = vsub.f32 %v3673_v1, %v1024_v43 }
 0x376   : > { %3041 = vst [vmem:[%s3685_s20 + $0x1948] sm:$0xff] %v2017_v47  ;;  %v1026_v47 = vld [vmem:[%s3666_s4 + $0x1a58] sm:$0xff]  ;;  %v2050_v50 = vsub.f32 %v3673_v1, %v1025_v45 }
 0x377   : > { %3042 = vst [vmem:[%s3685_s20 + $0x1950] sm:$0xff] %v2018_v49  ;;  %v1027_v49 = vld [vmem:[%s3666_s4 + $0x1a60] sm:$0xff]  ;;  %v2051_v52 = vsub.f32 %v3673_v1, %v1026_v47 }
 0x378   : > { %3043 = vst [vmem:[%s3685_s20 + $0x1958] sm:$0xff] %v2019_v51  ;;  %v1028_v51 = vld [vmem:[%s3666_s4 + $0x1a68] sm:$0xff]  ;;  %v2052_v54 = vsub.f32 %v3673_v1, %v1027_v49 }
 0x379   : > { %3044 = vst [vmem:[%s3685_s20 + $0x1960] sm:$0xff] %v2020_v53  ;;  %v1029_v53 = vld [vmem:[%s3666_s4 + $0x1a70] sm:$0xff]  ;;  %v2053_v56 = vsub.f32 %v3673_v1, %v1028_v51 }
 0x37a   : > { %3045 = vst [vmem:[%s3685_s20 + $0x1968] sm:$0xff] %v2021_v55  ;;  %v1030_v55 = vld [vmem:[%s3666_s4 + $0x1a78] sm:$0xff]  ;;  %v2054_v58 = vsub.f32 %v3673_v1, %v1029_v53 }
 0x37b   : > { %3046 = vst [vmem:[%s3685_s20 + $0x1970] sm:$0xff] %v2022_v57  ;;  %v1031_v57 = vld [vmem:[%s3666_s4 + $0x1a80] sm:$0xff]  ;;  %v2055_v60 = vsub.f32 %v3673_v1, %v1030_v55 }
 0x37c   : > { %3047 = vst [vmem:[%s3685_s20 + $0x1978] sm:$0xff] %v2023_v59  ;;  %v1032_v59 = vld [vmem:[%s3666_s4 + $0x1a88] sm:$0xff]  ;;  %v2056_v62 = vsub.f32 %v3673_v1, %v1031_v57 }
 0x37d   : > { %3048 = vst [vmem:[%s3685_s20 + $0x1980] sm:$0xff] %v2024_v61  ;;  %v1033_v61 = vld [vmem:[%s3666_s4 + $0x1a90] sm:$0xff]  ;;  %v2057_v0 = vsub.f32 %v3673_v1, %v1032_v59 }
 0x37e   : > { %3049 = vst [vmem:[%s3685_s20 + $0x1988] sm:$0xff] %v2025_v63  ;;  %v1034_v63 = vld [vmem:[%s3666_s4 + $0x1a98] sm:$0xff]  ;;  %v2058_v3 = vsub.f32 %v3673_v1, %v1033_v61 }
 0x37f   : > { %3050 = vst [vmem:[%s3685_s20 + $0x1990] sm:$0xff] %v2026_v2  ;;  %v1035_v2 = vld [vmem:[%s3666_s4 + $0x1aa0] sm:$0xff]  ;;  %v2059_v5 = vsub.f32 %v3673_v1, %v1034_v63 }
 0x380   : > { %3051 = vst [vmem:[%s3685_s20 + $0x1998] sm:$0xff] %v2027_v4  ;;  %v1036_v4 = vld [vmem:[%s3666_s4 + $0x1aa8] sm:$0xff]  ;;  %v2060_v7 = vsub.f32 %v3673_v1, %v1035_v2 }
 0x381   : > { %3052 = vst [vmem:[%s3685_s20 + $0x19a0] sm:$0xff] %v2028_v6  ;;  %v1037_v6 = vld [vmem:[%s3666_s4 + $0x1ab0] sm:$0xff]  ;;  %v2061_v9 = vsub.f32 %v3673_v1, %v1036_v4 }
 0x382   : > { %3053 = vst [vmem:[%s3685_s20 + $0x19a8] sm:$0xff] %v2029_v8  ;;  %v1038_v8 = vld [vmem:[%s3666_s4 + $0x1ab8] sm:$0xff]  ;;  %v2062_v11 = vsub.f32 %v3673_v1, %v1037_v6 }
 0x383   : > { %3054 = vst [vmem:[%s3685_s20 + $0x19b0] sm:$0xff] %v2030_v10  ;;  %v1039_v10 = vld [vmem:[%s3666_s4 + $0x1ac0] sm:$0xff]  ;;  %v2063_v13 = vsub.f32 %v3673_v1, %v1038_v8 }
 0x384   : > { %3055 = vst [vmem:[%s3685_s20 + $0x19b8] sm:$0xff] %v2031_v12  ;;  %v1040_v12 = vld [vmem:[%s3666_s4 + $0x1ac8] sm:$0xff]  ;;  %v2064_v15 = vsub.f32 %v3673_v1, %v1039_v10 }
 0x385   : > { %3056 = vst [vmem:[%s3685_s20 + $0x19c0] sm:$0xff] %v2032_v14  ;;  %v1041_v14 = vld [vmem:[%s3666_s4 + $0x1ad0] sm:$0xff]  ;;  %v2065_v17 = vsub.f32 %v3673_v1, %v1040_v12 }
 0x386   : > { %3057 = vst [vmem:[%s3685_s20 + $0x19c8] sm:$0xff] %v2033_v16  ;;  %v1042_v16 = vld [vmem:[%s3666_s4 + $0x1ad8] sm:$0xff]  ;;  %v2066_v19 = vsub.f32 %v3673_v1, %v1041_v14 }
 0x387   : > { %3058 = vst [vmem:[%s3685_s20 + $0x19d0] sm:$0xff] %v2034_v18  ;;  %v1043_v18 = vld [vmem:[%s3666_s4 + $0x1ae0] sm:$0xff]  ;;  %v2067_v21 = vsub.f32 %v3673_v1, %v1042_v16 }
 0x388   : > { %3059 = vst [vmem:[%s3685_s20 + $0x19d8] sm:$0xff] %v2035_v20  ;;  %v1044_v20 = vld [vmem:[%s3666_s4 + $0x1ae8] sm:$0xff]  ;;  %v2068_v23 = vsub.f32 %v3673_v1, %v1043_v18 }
 0x389   : > { %3060 = vst [vmem:[%s3685_s20 + $0x19e0] sm:$0xff] %v2036_v22  ;;  %v1045_v22 = vld [vmem:[%s3666_s4 + $0x1af0] sm:$0xff]  ;;  %v2069_v25 = vsub.f32 %v3673_v1, %v1044_v20 }
 0x38a   : > { %3061 = vst [vmem:[%s3685_s20 + $0x19e8] sm:$0xff] %v2037_v24  ;;  %v1046_v24 = vld [vmem:[%s3666_s4 + $0x1af8] sm:$0xff]  ;;  %v2070_v27 = vsub.f32 %v3673_v1, %v1045_v22 }
 0x38b   : > { %3062 = vst [vmem:[%s3685_s20 + $0x19f0] sm:$0xff] %v2038_v26  ;;  %v1047_v26 = vld [vmem:[%s3666_s4 + $0x1b00] sm:$0xff]  ;;  %v2071_v29 = vsub.f32 %v3673_v1, %v1046_v24 }
 0x38c   : > { %3063 = vst [vmem:[%s3685_s20 + $0x19f8] sm:$0xff] %v2039_v28  ;;  %v1048_v28 = vld [vmem:[%s3666_s4 + $0x1b08] sm:$0xff]  ;;  %v2072_v31 = vsub.f32 %v3673_v1, %v1047_v26 }
 0x38d   : > { %3064 = vst [vmem:[%s3685_s20 + $0x1a00] sm:$0xff] %v2040_v30  ;;  %v1049_v30 = vld [vmem:[%s3666_s4 + $0x1b10] sm:$0xff]  ;;  %v2073_v33 = vsub.f32 %v3673_v1, %v1048_v28 }
 0x38e   : > { %3065 = vst [vmem:[%s3685_s20 + $0x1a08] sm:$0xff] %v2041_v32  ;;  %v1050_v32 = vld [vmem:[%s3666_s4 + $0x1b18] sm:$0xff]  ;;  %v2074_v35 = vsub.f32 %v3673_v1, %v1049_v30 }
 0x38f   : > { %3066 = vst [vmem:[%s3685_s20 + $0x1a10] sm:$0xff] %v2042_v34  ;;  %v1051_v34 = vld [vmem:[%s3666_s4 + $0x1b20] sm:$0xff]  ;;  %v2075_v37 = vsub.f32 %v3673_v1, %v1050_v32 }
 0x390   : > { %3067 = vst [vmem:[%s3685_s20 + $0x1a18] sm:$0xff] %v2043_v36  ;;  %v1052_v36 = vld [vmem:[%s3666_s4 + $0x1b28] sm:$0xff]  ;;  %v2076_v39 = vsub.f32 %v3673_v1, %v1051_v34 }
 0x391   : > { %3068 = vst [vmem:[%s3685_s20 + $0x1a20] sm:$0xff] %v2044_v38  ;;  %v1053_v38 = vld [vmem:[%s3666_s4 + $0x1b30] sm:$0xff]  ;;  %v2077_v41 = vsub.f32 %v3673_v1, %v1052_v36 }
 0x392   : > { %3069 = vst [vmem:[%s3685_s20 + $0x1a28] sm:$0xff] %v2045_v40  ;;  %v1054_v40 = vld [vmem:[%s3666_s4 + $0x1b38] sm:$0xff]  ;;  %v2078_v43 = vsub.f32 %v3673_v1, %v1053_v38 }
 0x393   : > { %3070 = vst [vmem:[%s3685_s20 + $0x1a30] sm:$0xff] %v2046_v42  ;;  %v1055_v42 = vld [vmem:[%s3666_s4 + $0x1b40] sm:$0xff]  ;;  %v2079_v45 = vsub.f32 %v3673_v1, %v1054_v40 }
 0x394   : > { %3071 = vst [vmem:[%s3685_s20 + $0x1a38] sm:$0xff] %v2047_v44  ;;  %v1056_v44 = vld [vmem:[%s3666_s4 + $0x1b48] sm:$0xff]  ;;  %v2080_v47 = vsub.f32 %v3673_v1, %v1055_v42 }
 0x395   : > { %3072 = vst [vmem:[%s3685_s20 + $0x1a40] sm:$0xff] %v2048_v46  ;;  %v1057_v46 = vld [vmem:[%s3666_s4 + $0x1b50] sm:$0xff]  ;;  %v2081_v49 = vsub.f32 %v3673_v1, %v1056_v44 }
 0x396   : > { %3073 = vst [vmem:[%s3685_s20 + $0x1a48] sm:$0xff] %v2049_v48  ;;  %v1058_v48 = vld [vmem:[%s3666_s4 + $0x1b58] sm:$0xff]  ;;  %v2082_v51 = vsub.f32 %v3673_v1, %v1057_v46 }
 0x397   : > { %3074 = vst [vmem:[%s3685_s20 + $0x1a50] sm:$0xff] %v2050_v50  ;;  %v1059_v50 = vld [vmem:[%s3666_s4 + $0x1b60] sm:$0xff]  ;;  %v2083_v53 = vsub.f32 %v3673_v1, %v1058_v48 }
 0x398   : > { %3075 = vst [vmem:[%s3685_s20 + $0x1a58] sm:$0xff] %v2051_v52  ;;  %v1060_v52 = vld [vmem:[%s3666_s4 + $0x1b68] sm:$0xff]  ;;  %v2084_v55 = vsub.f32 %v3673_v1, %v1059_v50 }
 0x399   : > { %3076 = vst [vmem:[%s3685_s20 + $0x1a60] sm:$0xff] %v2052_v54  ;;  %v1061_v54 = vld [vmem:[%s3666_s4 + $0x1b70] sm:$0xff]  ;;  %v2085_v57 = vsub.f32 %v3673_v1, %v1060_v52 }
 0x39a   : > { %3077 = vst [vmem:[%s3685_s20 + $0x1a68] sm:$0xff] %v2053_v56  ;;  %v1062_v56 = vld [vmem:[%s3666_s4 + $0x1b78] sm:$0xff]  ;;  %v2086_v59 = vsub.f32 %v3673_v1, %v1061_v54 }
 0x39b   : > { %3078 = vst [vmem:[%s3685_s20 + $0x1a70] sm:$0xff] %v2054_v58  ;;  %v1063_v58 = vld [vmem:[%s3666_s4 + $0x1b80] sm:$0xff]  ;;  %v2087_v61 = vsub.f32 %v3673_v1, %v1062_v56 }
 0x39c   : > { %3079 = vst [vmem:[%s3685_s20 + $0x1a78] sm:$0xff] %v2055_v60  ;;  %v1064_v60 = vld [vmem:[%s3666_s4 + $0x1b88] sm:$0xff]  ;;  %v2088_v63 = vsub.f32 %v3673_v1, %v1063_v58 }
 0x39d   : > { %3080 = vst [vmem:[%s3685_s20 + $0x1a80] sm:$0xff] %v2056_v62  ;;  %v1065_v62 = vld [vmem:[%s3666_s4 + $0x1b90] sm:$0xff]  ;;  %v2089_v2 = vsub.f32 %v3673_v1, %v1064_v60 }
 0x39e   : > { %3081 = vst [vmem:[%s3685_s20 + $0x1a88] sm:$0xff] %v2057_v0  ;;  %v1066_v0 = vld [vmem:[%s3666_s4 + $0x1b98] sm:$0xff]  ;;  %v2090_v4 = vsub.f32 %v3673_v1, %v1065_v62 }
 0x39f   : > { %3082 = vst [vmem:[%s3685_s20 + $0x1a90] sm:$0xff] %v2058_v3  ;;  %v1067_v3 = vld [vmem:[%s3666_s4 + $0x1ba0] sm:$0xff]  ;;  %v2091_v6 = vsub.f32 %v3673_v1, %v1066_v0 }
 0x3a0   : > { %3083 = vst [vmem:[%s3685_s20 + $0x1a98] sm:$0xff] %v2059_v5  ;;  %v1068_v5 = vld [vmem:[%s3666_s4 + $0x1ba8] sm:$0xff]  ;;  %v2092_v8 = vsub.f32 %v3673_v1, %v1067_v3 }
 0x3a1   : > { %3084 = vst [vmem:[%s3685_s20 + $0x1aa0] sm:$0xff] %v2060_v7  ;;  %v1069_v7 = vld [vmem:[%s3666_s4 + $0x1bb0] sm:$0xff]  ;;  %v2093_v10 = vsub.f32 %v3673_v1, %v1068_v5 }
 0x3a2   : > { %3085 = vst [vmem:[%s3685_s20 + $0x1aa8] sm:$0xff] %v2061_v9  ;;  %v1070_v9 = vld [vmem:[%s3666_s4 + $0x1bb8] sm:$0xff]  ;;  %v2094_v12 = vsub.f32 %v3673_v1, %v1069_v7 }
 0x3a3   : > { %3086 = vst [vmem:[%s3685_s20 + $0x1ab0] sm:$0xff] %v2062_v11  ;;  %v1071_v11 = vld [vmem:[%s3666_s4 + $0x1bc0] sm:$0xff]  ;;  %v2095_v14 = vsub.f32 %v3673_v1, %v1070_v9 }
 0x3a4   : > { %3087 = vst [vmem:[%s3685_s20 + $0x1ab8] sm:$0xff] %v2063_v13  ;;  %v1072_v13 = vld [vmem:[%s3666_s4 + $0x1bc8] sm:$0xff]  ;;  %v2096_v16 = vsub.f32 %v3673_v1, %v1071_v11 }
 0x3a5   : > { %3088 = vst [vmem:[%s3685_s20 + $0x1ac0] sm:$0xff] %v2064_v15  ;;  %v1073_v15 = vld [vmem:[%s3666_s4 + $0x1bd0] sm:$0xff]  ;;  %v2097_v18 = vsub.f32 %v3673_v1, %v1072_v13 }
 0x3a6   : > { %3089 = vst [vmem:[%s3685_s20 + $0x1ac8] sm:$0xff] %v2065_v17  ;;  %v1074_v17 = vld [vmem:[%s3666_s4 + $0x1bd8] sm:$0xff]  ;;  %v2098_v20 = vsub.f32 %v3673_v1, %v1073_v15 }
 0x3a7   : > { %3090 = vst [vmem:[%s3685_s20 + $0x1ad0] sm:$0xff] %v2066_v19  ;;  %v1075_v19 = vld [vmem:[%s3666_s4 + $0x1be0] sm:$0xff]  ;;  %v2099_v22 = vsub.f32 %v3673_v1, %v1074_v17 }
 0x3a8   : > { %3091 = vst [vmem:[%s3685_s20 + $0x1ad8] sm:$0xff] %v2067_v21  ;;  %v1076_v21 = vld [vmem:[%s3666_s4 + $0x1be8] sm:$0xff]  ;;  %v2100_v24 = vsub.f32 %v3673_v1, %v1075_v19 }
 0x3a9   : > { %3092 = vst [vmem:[%s3685_s20 + $0x1ae0] sm:$0xff] %v2068_v23  ;;  %v1077_v23 = vld [vmem:[%s3666_s4 + $0x1bf0] sm:$0xff]  ;;  %v2101_v26 = vsub.f32 %v3673_v1, %v1076_v21 }
 0x3aa   : > { %3093 = vst [vmem:[%s3685_s20 + $0x1ae8] sm:$0xff] %v2069_v25  ;;  %v1078_v25 = vld [vmem:[%s3666_s4 + $0x1bf8] sm:$0xff]  ;;  %v2102_v28 = vsub.f32 %v3673_v1, %v1077_v23 }
 0x3ab   : > { %3094 = vst [vmem:[%s3685_s20 + $0x1af0] sm:$0xff] %v2070_v27  ;;  %v1079_v27 = vld [vmem:[%s3666_s4 + $0x1c00] sm:$0xff]  ;;  %v2103_v30 = vsub.f32 %v3673_v1, %v1078_v25 }
 0x3ac   : > { %3095 = vst [vmem:[%s3685_s20 + $0x1af8] sm:$0xff] %v2071_v29  ;;  %v1080_v29 = vld [vmem:[%s3666_s4 + $0x1c08] sm:$0xff]  ;;  %v2104_v32 = vsub.f32 %v3673_v1, %v1079_v27 }
 0x3ad   : > { %3096 = vst [vmem:[%s3685_s20 + $0x1b00] sm:$0xff] %v2072_v31  ;;  %v1081_v31 = vld [vmem:[%s3666_s4 + $0x1c10] sm:$0xff]  ;;  %v2105_v34 = vsub.f32 %v3673_v1, %v1080_v29 }
 0x3ae   : > { %3097 = vst [vmem:[%s3685_s20 + $0x1b08] sm:$0xff] %v2073_v33  ;;  %v1082_v33 = vld [vmem:[%s3666_s4 + $0x1c18] sm:$0xff]  ;;  %v2106_v36 = vsub.f32 %v3673_v1, %v1081_v31 }
 0x3af   : > { %3098 = vst [vmem:[%s3685_s20 + $0x1b10] sm:$0xff] %v2074_v35  ;;  %v1083_v35 = vld [vmem:[%s3666_s4 + $0x1c20] sm:$0xff]  ;;  %v2107_v38 = vsub.f32 %v3673_v1, %v1082_v33 }
 0x3b0   : > { %3099 = vst [vmem:[%s3685_s20 + $0x1b18] sm:$0xff] %v2075_v37  ;;  %v1084_v37 = vld [vmem:[%s3666_s4 + $0x1c28] sm:$0xff]  ;;  %v2108_v40 = vsub.f32 %v3673_v1, %v1083_v35 }
 0x3b1   : > { %3100 = vst [vmem:[%s3685_s20 + $0x1b20] sm:$0xff] %v2076_v39  ;;  %v1085_v39 = vld [vmem:[%s3666_s4 + $0x1c30] sm:$0xff]  ;;  %v2109_v42 = vsub.f32 %v3673_v1, %v1084_v37 }
 0x3b2   : > { %3101 = vst [vmem:[%s3685_s20 + $0x1b28] sm:$0xff] %v2077_v41  ;;  %v1086_v41 = vld [vmem:[%s3666_s4 + $0x1c38] sm:$0xff]  ;;  %v2110_v44 = vsub.f32 %v3673_v1, %v1085_v39 }
 0x3b3   : > { %3102 = vst [vmem:[%s3685_s20 + $0x1b30] sm:$0xff] %v2078_v43  ;;  %v1087_v43 = vld [vmem:[%s3666_s4 + $0x1c40] sm:$0xff]  ;;  %v2111_v46 = vsub.f32 %v3673_v1, %v1086_v41 }
 0x3b4   : > { %3103 = vst [vmem:[%s3685_s20 + $0x1b38] sm:$0xff] %v2079_v45  ;;  %v1088_v45 = vld [vmem:[%s3666_s4 + $0x1c48] sm:$0xff]  ;;  %v2112_v48 = vsub.f32 %v3673_v1, %v1087_v43 }
 0x3b5   : > { %3104 = vst [vmem:[%s3685_s20 + $0x1b40] sm:$0xff] %v2080_v47  ;;  %v1089_v47 = vld [vmem:[%s3666_s4 + $0x1c50] sm:$0xff]  ;;  %v2113_v50 = vsub.f32 %v3673_v1, %v1088_v45 }
 0x3b6   : > { %3105 = vst [vmem:[%s3685_s20 + $0x1b48] sm:$0xff] %v2081_v49  ;;  %v1090_v49 = vld [vmem:[%s3666_s4 + $0x1c58] sm:$0xff]  ;;  %v2114_v52 = vsub.f32 %v3673_v1, %v1089_v47 }
 0x3b7   : > { %3106 = vst [vmem:[%s3685_s20 + $0x1b50] sm:$0xff] %v2082_v51  ;;  %v1091_v51 = vld [vmem:[%s3666_s4 + $0x1c60] sm:$0xff]  ;;  %v2115_v54 = vsub.f32 %v3673_v1, %v1090_v49 }
 0x3b8   : > { %3107 = vst [vmem:[%s3685_s20 + $0x1b58] sm:$0xff] %v2083_v53  ;;  %v1092_v53 = vld [vmem:[%s3666_s4 + $0x1c68] sm:$0xff]  ;;  %v2116_v56 = vsub.f32 %v3673_v1, %v1091_v51 }
 0x3b9   : > { %3108 = vst [vmem:[%s3685_s20 + $0x1b60] sm:$0xff] %v2084_v55  ;;  %v1093_v55 = vld [vmem:[%s3666_s4 + $0x1c70] sm:$0xff]  ;;  %v2117_v58 = vsub.f32 %v3673_v1, %v1092_v53 }
 0x3ba   : > { %3109 = vst [vmem:[%s3685_s20 + $0x1b68] sm:$0xff] %v2085_v57  ;;  %v1094_v57 = vld [vmem:[%s3666_s4 + $0x1c78] sm:$0xff]  ;;  %v2118_v60 = vsub.f32 %v3673_v1, %v1093_v55 }
 0x3bb   : > { %3110 = vst [vmem:[%s3685_s20 + $0x1b70] sm:$0xff] %v2086_v59  ;;  %v1095_v59 = vld [vmem:[%s3666_s4 + $0x1c80] sm:$0xff]  ;;  %v2119_v62 = vsub.f32 %v3673_v1, %v1094_v57 }
 0x3bc   : > { %3111 = vst [vmem:[%s3685_s20 + $0x1b78] sm:$0xff] %v2087_v61  ;;  %v1096_v61 = vld [vmem:[%s3666_s4 + $0x1c88] sm:$0xff]  ;;  %v2120_v0 = vsub.f32 %v3673_v1, %v1095_v59 }
 0x3bd   : > { %3112 = vst [vmem:[%s3685_s20 + $0x1b80] sm:$0xff] %v2088_v63  ;;  %v1097_v63 = vld [vmem:[%s3666_s4 + $0x1c90] sm:$0xff]  ;;  %v2121_v3 = vsub.f32 %v3673_v1, %v1096_v61 }
 0x3be   : > { %3113 = vst [vmem:[%s3685_s20 + $0x1b88] sm:$0xff] %v2089_v2  ;;  %v1098_v2 = vld [vmem:[%s3666_s4 + $0x1c98] sm:$0xff]  ;;  %v2122_v5 = vsub.f32 %v3673_v1, %v1097_v63 }
 0x3bf   : > { %3114 = vst [vmem:[%s3685_s20 + $0x1b90] sm:$0xff] %v2090_v4  ;;  %v1099_v4 = vld [vmem:[%s3666_s4 + $0x1ca0] sm:$0xff]  ;;  %v2123_v7 = vsub.f32 %v3673_v1, %v1098_v2 }
 0x3c0   : > { %3115 = vst [vmem:[%s3685_s20 + $0x1b98] sm:$0xff] %v2091_v6  ;;  %v1100_v6 = vld [vmem:[%s3666_s4 + $0x1ca8] sm:$0xff]  ;;  %v2124_v9 = vsub.f32 %v3673_v1, %v1099_v4 }
 0x3c1   : > { %3116 = vst [vmem:[%s3685_s20 + $0x1ba0] sm:$0xff] %v2092_v8  ;;  %v1101_v8 = vld [vmem:[%s3666_s4 + $0x1cb0] sm:$0xff]  ;;  %v2125_v11 = vsub.f32 %v3673_v1, %v1100_v6 }
 0x3c2   : > { %3117 = vst [vmem:[%s3685_s20 + $0x1ba8] sm:$0xff] %v2093_v10  ;;  %v1102_v10 = vld [vmem:[%s3666_s4 + $0x1cb8] sm:$0xff]  ;;  %v2126_v13 = vsub.f32 %v3673_v1, %v1101_v8 }
 0x3c3   : > { %3118 = vst [vmem:[%s3685_s20 + $0x1bb0] sm:$0xff] %v2094_v12  ;;  %v1103_v12 = vld [vmem:[%s3666_s4 + $0x1cc0] sm:$0xff]  ;;  %v2127_v15 = vsub.f32 %v3673_v1, %v1102_v10 }
 0x3c4   : > { %3119 = vst [vmem:[%s3685_s20 + $0x1bb8] sm:$0xff] %v2095_v14  ;;  %v1104_v14 = vld [vmem:[%s3666_s4 + $0x1cc8] sm:$0xff]  ;;  %v2128_v17 = vsub.f32 %v3673_v1, %v1103_v12 }
 0x3c5   : > { %3120 = vst [vmem:[%s3685_s20 + $0x1bc0] sm:$0xff] %v2096_v16  ;;  %v1105_v16 = vld [vmem:[%s3666_s4 + $0x1cd0] sm:$0xff]  ;;  %v2129_v19 = vsub.f32 %v3673_v1, %v1104_v14 }
 0x3c6   : > { %3121 = vst [vmem:[%s3685_s20 + $0x1bc8] sm:$0xff] %v2097_v18  ;;  %v1106_v18 = vld [vmem:[%s3666_s4 + $0x1cd8] sm:$0xff]  ;;  %v2130_v21 = vsub.f32 %v3673_v1, %v1105_v16 }
 0x3c7   : > { %3122 = vst [vmem:[%s3685_s20 + $0x1bd0] sm:$0xff] %v2098_v20  ;;  %v1107_v20 = vld [vmem:[%s3666_s4 + $0x1ce0] sm:$0xff]  ;;  %v2131_v23 = vsub.f32 %v3673_v1, %v1106_v18 }
 0x3c8   : > { %3123 = vst [vmem:[%s3685_s20 + $0x1bd8] sm:$0xff] %v2099_v22  ;;  %v1108_v22 = vld [vmem:[%s3666_s4 + $0x1ce8] sm:$0xff]  ;;  %v2132_v25 = vsub.f32 %v3673_v1, %v1107_v20 }
 0x3c9   : > { %3124 = vst [vmem:[%s3685_s20 + $0x1be0] sm:$0xff] %v2100_v24  ;;  %v1109_v24 = vld [vmem:[%s3666_s4 + $0x1cf0] sm:$0xff]  ;;  %v2133_v27 = vsub.f32 %v3673_v1, %v1108_v22 }
 0x3ca   : > { %3125 = vst [vmem:[%s3685_s20 + $0x1be8] sm:$0xff] %v2101_v26  ;;  %v1110_v26 = vld [vmem:[%s3666_s4 + $0x1cf8] sm:$0xff]  ;;  %v2134_v29 = vsub.f32 %v3673_v1, %v1109_v24 }
 0x3cb   : > { %3126 = vst [vmem:[%s3685_s20 + $0x1bf0] sm:$0xff] %v2102_v28  ;;  %v1111_v28 = vld [vmem:[%s3666_s4 + $0x1d00] sm:$0xff]  ;;  %v2135_v31 = vsub.f32 %v3673_v1, %v1110_v26 }
 0x3cc   : > { %3127 = vst [vmem:[%s3685_s20 + $0x1bf8] sm:$0xff] %v2103_v30  ;;  %v1112_v30 = vld [vmem:[%s3666_s4 + $0x1d08] sm:$0xff]  ;;  %v2136_v33 = vsub.f32 %v3673_v1, %v1111_v28 }
 0x3cd   : > { %3128 = vst [vmem:[%s3685_s20 + $0x1c00] sm:$0xff] %v2104_v32  ;;  %v1113_v32 = vld [vmem:[%s3666_s4 + $0x1d10] sm:$0xff]  ;;  %v2137_v35 = vsub.f32 %v3673_v1, %v1112_v30 }
 0x3ce   : > { %3129 = vst [vmem:[%s3685_s20 + $0x1c08] sm:$0xff] %v2105_v34  ;;  %v1114_v34 = vld [vmem:[%s3666_s4 + $0x1d18] sm:$0xff]  ;;  %v2138_v37 = vsub.f32 %v3673_v1, %v1113_v32 }
 0x3cf   : > { %3130 = vst [vmem:[%s3685_s20 + $0x1c10] sm:$0xff] %v2106_v36  ;;  %v1115_v36 = vld [vmem:[%s3666_s4 + $0x1d20] sm:$0xff]  ;;  %v2139_v39 = vsub.f32 %v3673_v1, %v1114_v34 }
 0x3d0   : > { %3131 = vst [vmem:[%s3685_s20 + $0x1c18] sm:$0xff] %v2107_v38  ;;  %v1116_v38 = vld [vmem:[%s3666_s4 + $0x1d28] sm:$0xff]  ;;  %v2140_v41 = vsub.f32 %v3673_v1, %v1115_v36 }
 0x3d1   : > { %3132 = vst [vmem:[%s3685_s20 + $0x1c20] sm:$0xff] %v2108_v40  ;;  %v1117_v40 = vld [vmem:[%s3666_s4 + $0x1d30] sm:$0xff]  ;;  %v2141_v43 = vsub.f32 %v3673_v1, %v1116_v38 }
 0x3d2   : > { %3133 = vst [vmem:[%s3685_s20 + $0x1c28] sm:$0xff] %v2109_v42  ;;  %v1118_v42 = vld [vmem:[%s3666_s4 + $0x1d38] sm:$0xff]  ;;  %v2142_v45 = vsub.f32 %v3673_v1, %v1117_v40 }
 0x3d3   : > { %3134 = vst [vmem:[%s3685_s20 + $0x1c30] sm:$0xff] %v2110_v44  ;;  %v1119_v44 = vld [vmem:[%s3666_s4 + $0x1d40] sm:$0xff]  ;;  %v2143_v47 = vsub.f32 %v3673_v1, %v1118_v42 }
 0x3d4   : > { %3135 = vst [vmem:[%s3685_s20 + $0x1c38] sm:$0xff] %v2111_v46  ;;  %v1120_v46 = vld [vmem:[%s3666_s4 + $0x1d48] sm:$0xff]  ;;  %v2144_v49 = vsub.f32 %v3673_v1, %v1119_v44 }
 0x3d5   : > { %3136 = vst [vmem:[%s3685_s20 + $0x1c40] sm:$0xff] %v2112_v48  ;;  %v1121_v48 = vld [vmem:[%s3666_s4 + $0x1d50] sm:$0xff]  ;;  %v2145_v51 = vsub.f32 %v3673_v1, %v1120_v46 }
 0x3d6   : > { %3137 = vst [vmem:[%s3685_s20 + $0x1c48] sm:$0xff] %v2113_v50  ;;  %v1122_v50 = vld [vmem:[%s3666_s4 + $0x1d58] sm:$0xff]  ;;  %v2146_v53 = vsub.f32 %v3673_v1, %v1121_v48 }
 0x3d7   : > { %3138 = vst [vmem:[%s3685_s20 + $0x1c50] sm:$0xff] %v2114_v52  ;;  %v1123_v52 = vld [vmem:[%s3666_s4 + $0x1d60] sm:$0xff]  ;;  %v2147_v55 = vsub.f32 %v3673_v1, %v1122_v50 }
 0x3d8   : > { %3139 = vst [vmem:[%s3685_s20 + $0x1c58] sm:$0xff] %v2115_v54  ;;  %v1124_v54 = vld [vmem:[%s3666_s4 + $0x1d68] sm:$0xff]  ;;  %v2148_v57 = vsub.f32 %v3673_v1, %v1123_v52 }
 0x3d9   : > { %3140 = vst [vmem:[%s3685_s20 + $0x1c60] sm:$0xff] %v2116_v56  ;;  %v1125_v56 = vld [vmem:[%s3666_s4 + $0x1d70] sm:$0xff]  ;;  %v2149_v59 = vsub.f32 %v3673_v1, %v1124_v54 }
 0x3da   : > { %3141 = vst [vmem:[%s3685_s20 + $0x1c68] sm:$0xff] %v2117_v58  ;;  %v1126_v58 = vld [vmem:[%s3666_s4 + $0x1d78] sm:$0xff]  ;;  %v2150_v61 = vsub.f32 %v3673_v1, %v1125_v56 }
 0x3db   : > { %3142 = vst [vmem:[%s3685_s20 + $0x1c70] sm:$0xff] %v2118_v60  ;;  %v1127_v60 = vld [vmem:[%s3666_s4 + $0x1d80] sm:$0xff]  ;;  %v2151_v63 = vsub.f32 %v3673_v1, %v1126_v58 }
 0x3dc   : > { %3143 = vst [vmem:[%s3685_s20 + $0x1c78] sm:$0xff] %v2119_v62  ;;  %v1128_v62 = vld [vmem:[%s3666_s4 + $0x1d88] sm:$0xff]  ;;  %v2152_v2 = vsub.f32 %v3673_v1, %v1127_v60 }
 0x3dd   : > { %3144 = vst [vmem:[%s3685_s20 + $0x1c80] sm:$0xff] %v2120_v0  ;;  %v1129_v0 = vld [vmem:[%s3666_s4 + $0x1d90] sm:$0xff]  ;;  %v2153_v4 = vsub.f32 %v3673_v1, %v1128_v62 }
 0x3de   : > { %3145 = vst [vmem:[%s3685_s20 + $0x1c88] sm:$0xff] %v2121_v3  ;;  %v1130_v3 = vld [vmem:[%s3666_s4 + $0x1d98] sm:$0xff]  ;;  %v2154_v6 = vsub.f32 %v3673_v1, %v1129_v0 }
 0x3df   : > { %3146 = vst [vmem:[%s3685_s20 + $0x1c90] sm:$0xff] %v2122_v5  ;;  %v1131_v5 = vld [vmem:[%s3666_s4 + $0x1da0] sm:$0xff]  ;;  %v2155_v8 = vsub.f32 %v3673_v1, %v1130_v3 }
 0x3e0   : > { %3147 = vst [vmem:[%s3685_s20 + $0x1c98] sm:$0xff] %v2123_v7  ;;  %v1132_v7 = vld [vmem:[%s3666_s4 + $0x1da8] sm:$0xff]  ;;  %v2156_v10 = vsub.f32 %v3673_v1, %v1131_v5 }
 0x3e1   : > { %3148 = vst [vmem:[%s3685_s20 + $0x1ca0] sm:$0xff] %v2124_v9  ;;  %v1133_v9 = vld [vmem:[%s3666_s4 + $0x1db0] sm:$0xff]  ;;  %v2157_v12 = vsub.f32 %v3673_v1, %v1132_v7 }
 0x3e2   : > { %3149 = vst [vmem:[%s3685_s20 + $0x1ca8] sm:$0xff] %v2125_v11  ;;  %v1134_v11 = vld [vmem:[%s3666_s4 + $0x1db8] sm:$0xff]  ;;  %v2158_v14 = vsub.f32 %v3673_v1, %v1133_v9 }
 0x3e3   : > { %3150 = vst [vmem:[%s3685_s20 + $0x1cb0] sm:$0xff] %v2126_v13  ;;  %v1135_v13 = vld [vmem:[%s3666_s4 + $0x1dc0] sm:$0xff]  ;;  %v2159_v16 = vsub.f32 %v3673_v1, %v1134_v11 }
 0x3e4   : > { %3151 = vst [vmem:[%s3685_s20 + $0x1cb8] sm:$0xff] %v2127_v15  ;;  %v1136_v15 = vld [vmem:[%s3666_s4 + $0x1dc8] sm:$0xff]  ;;  %v2160_v18 = vsub.f32 %v3673_v1, %v1135_v13 }
 0x3e5   : > { %3152 = vst [vmem:[%s3685_s20 + $0x1cc0] sm:$0xff] %v2128_v17  ;;  %v1137_v17 = vld [vmem:[%s3666_s4 + $0x1dd0] sm:$0xff]  ;;  %v2161_v20 = vsub.f32 %v3673_v1, %v1136_v15 }
 0x3e6   : > { %3153 = vst [vmem:[%s3685_s20 + $0x1cc8] sm:$0xff] %v2129_v19  ;;  %v1138_v19 = vld [vmem:[%s3666_s4 + $0x1dd8] sm:$0xff]  ;;  %v2162_v22 = vsub.f32 %v3673_v1, %v1137_v17 }
 0x3e7   : > { %3154 = vst [vmem:[%s3685_s20 + $0x1cd0] sm:$0xff] %v2130_v21  ;;  %v1139_v21 = vld [vmem:[%s3666_s4 + $0x1de0] sm:$0xff]  ;;  %v2163_v24 = vsub.f32 %v3673_v1, %v1138_v19 }
 0x3e8   : > { %3155 = vst [vmem:[%s3685_s20 + $0x1cd8] sm:$0xff] %v2131_v23  ;;  %v1140_v23 = vld [vmem:[%s3666_s4 + $0x1de8] sm:$0xff]  ;;  %v2164_v26 = vsub.f32 %v3673_v1, %v1139_v21 }
 0x3e9   : > { %3156 = vst [vmem:[%s3685_s20 + $0x1ce0] sm:$0xff] %v2132_v25  ;;  %v1141_v25 = vld [vmem:[%s3666_s4 + $0x1df0] sm:$0xff]  ;;  %v2165_v28 = vsub.f32 %v3673_v1, %v1140_v23 }
 0x3ea   : > { %3157 = vst [vmem:[%s3685_s20 + $0x1ce8] sm:$0xff] %v2133_v27  ;;  %v1142_v27 = vld [vmem:[%s3666_s4 + $0x1df8] sm:$0xff]  ;;  %v2166_v30 = vsub.f32 %v3673_v1, %v1141_v25 }
 0x3eb   : > { %3158 = vst [vmem:[%s3685_s20 + $0x1cf0] sm:$0xff] %v2134_v29  ;;  %v1143_v29 = vld [vmem:[%s3666_s4 + $0x1e00] sm:$0xff]  ;;  %v2167_v32 = vsub.f32 %v3673_v1, %v1142_v27 }
 0x3ec   : > { %3159 = vst [vmem:[%s3685_s20 + $0x1cf8] sm:$0xff] %v2135_v31  ;;  %v1144_v31 = vld [vmem:[%s3666_s4 + $0x1e08] sm:$0xff]  ;;  %v2168_v34 = vsub.f32 %v3673_v1, %v1143_v29 }
 0x3ed   : > { %3160 = vst [vmem:[%s3685_s20 + $0x1d00] sm:$0xff] %v2136_v33  ;;  %v1145_v33 = vld [vmem:[%s3666_s4 + $0x1e10] sm:$0xff]  ;;  %v2169_v36 = vsub.f32 %v3673_v1, %v1144_v31 }
 0x3ee   : > { %3161 = vst [vmem:[%s3685_s20 + $0x1d08] sm:$0xff] %v2137_v35  ;;  %v1146_v35 = vld [vmem:[%s3666_s4 + $0x1e18] sm:$0xff]  ;;  %v2170_v38 = vsub.f32 %v3673_v1, %v1145_v33 }
 0x3ef   : > { %3162 = vst [vmem:[%s3685_s20 + $0x1d10] sm:$0xff] %v2138_v37  ;;  %v1147_v37 = vld [vmem:[%s3666_s4 + $0x1e20] sm:$0xff]  ;;  %v2171_v40 = vsub.f32 %v3673_v1, %v1146_v35 }
 0x3f0   : > { %3163 = vst [vmem:[%s3685_s20 + $0x1d18] sm:$0xff] %v2139_v39  ;;  %v1148_v39 = vld [vmem:[%s3666_s4 + $0x1e28] sm:$0xff]  ;;  %v2172_v42 = vsub.f32 %v3673_v1, %v1147_v37 }
 0x3f1   : > { %3164 = vst [vmem:[%s3685_s20 + $0x1d20] sm:$0xff] %v2140_v41  ;;  %v1149_v41 = vld [vmem:[%s3666_s4 + $0x1e30] sm:$0xff]  ;;  %v2173_v44 = vsub.f32 %v3673_v1, %v1148_v39 }
 0x3f2   : > { %3165 = vst [vmem:[%s3685_s20 + $0x1d28] sm:$0xff] %v2141_v43  ;;  %v1150_v43 = vld [vmem:[%s3666_s4 + $0x1e38] sm:$0xff]  ;;  %v2174_v46 = vsub.f32 %v3673_v1, %v1149_v41 }
 0x3f3   : > { %3166 = vst [vmem:[%s3685_s20 + $0x1d30] sm:$0xff] %v2142_v45  ;;  %v1151_v45 = vld [vmem:[%s3666_s4 + $0x1e40] sm:$0xff]  ;;  %v2175_v48 = vsub.f32 %v3673_v1, %v1150_v43 }
 0x3f4   : > { %3167 = vst [vmem:[%s3685_s20 + $0x1d38] sm:$0xff] %v2143_v47  ;;  %v1152_v47 = vld [vmem:[%s3666_s4 + $0x1e48] sm:$0xff]  ;;  %v2176_v50 = vsub.f32 %v3673_v1, %v1151_v45 }
 0x3f5   : > { %3168 = vst [vmem:[%s3685_s20 + $0x1d40] sm:$0xff] %v2144_v49  ;;  %v1153_v49 = vld [vmem:[%s3666_s4 + $0x1e50] sm:$0xff]  ;;  %v2177_v52 = vsub.f32 %v3673_v1, %v1152_v47 }
 0x3f6   : > { %3169 = vst [vmem:[%s3685_s20 + $0x1d48] sm:$0xff] %v2145_v51  ;;  %v1154_v51 = vld [vmem:[%s3666_s4 + $0x1e58] sm:$0xff]  ;;  %v2178_v54 = vsub.f32 %v3673_v1, %v1153_v49 }
 0x3f7   : > { %3170 = vst [vmem:[%s3685_s20 + $0x1d50] sm:$0xff] %v2146_v53  ;;  %v1155_v53 = vld [vmem:[%s3666_s4 + $0x1e60] sm:$0xff]  ;;  %v2179_v56 = vsub.f32 %v3673_v1, %v1154_v51 }
 0x3f8   : > { %3171 = vst [vmem:[%s3685_s20 + $0x1d58] sm:$0xff] %v2147_v55  ;;  %v1156_v55 = vld [vmem:[%s3666_s4 + $0x1e68] sm:$0xff]  ;;  %v2180_v58 = vsub.f32 %v3673_v1, %v1155_v53 }
 0x3f9   : > { %3172 = vst [vmem:[%s3685_s20 + $0x1d60] sm:$0xff] %v2148_v57  ;;  %v1157_v57 = vld [vmem:[%s3666_s4 + $0x1e70] sm:$0xff]  ;;  %v2181_v60 = vsub.f32 %v3673_v1, %v1156_v55 }
 0x3fa   : > { %3173 = vst [vmem:[%s3685_s20 + $0x1d68] sm:$0xff] %v2149_v59  ;;  %v1158_v59 = vld [vmem:[%s3666_s4 + $0x1e78] sm:$0xff]  ;;  %v2182_v62 = vsub.f32 %v3673_v1, %v1157_v57 }
 0x3fb   : > { %3174 = vst [vmem:[%s3685_s20 + $0x1d70] sm:$0xff] %v2150_v61  ;;  %v1159_v61 = vld [vmem:[%s3666_s4 + $0x1e80] sm:$0xff]  ;;  %v2183_v0 = vsub.f32 %v3673_v1, %v1158_v59 }
 0x3fc   : > { %3175 = vst [vmem:[%s3685_s20 + $0x1d78] sm:$0xff] %v2151_v63  ;;  %v1160_v63 = vld [vmem:[%s3666_s4 + $0x1e88] sm:$0xff]  ;;  %v2184_v3 = vsub.f32 %v3673_v1, %v1159_v61 }
 0x3fd   : > { %3176 = vst [vmem:[%s3685_s20 + $0x1d80] sm:$0xff] %v2152_v2  ;;  %v1161_v2 = vld [vmem:[%s3666_s4 + $0x1e90] sm:$0xff]  ;;  %v2185_v5 = vsub.f32 %v3673_v1, %v1160_v63 }
 0x3fe   : > { %3177 = vst [vmem:[%s3685_s20 + $0x1d88] sm:$0xff] %v2153_v4  ;;  %v1162_v4 = vld [vmem:[%s3666_s4 + $0x1e98] sm:$0xff]  ;;  %v2186_v7 = vsub.f32 %v3673_v1, %v1161_v2 }
 0x3ff   : > { %3178 = vst [vmem:[%s3685_s20 + $0x1d90] sm:$0xff] %v2154_v6  ;;  %v1163_v6 = vld [vmem:[%s3666_s4 + $0x1ea0] sm:$0xff]  ;;  %v2187_v9 = vsub.f32 %v3673_v1, %v1162_v4 }
 0x400   : > { %3179 = vst [vmem:[%s3685_s20 + $0x1d98] sm:$0xff] %v2155_v8  ;;  %v1164_v8 = vld [vmem:[%s3666_s4 + $0x1ea8] sm:$0xff]  ;;  %v2188_v11 = vsub.f32 %v3673_v1, %v1163_v6 }
 0x401   : > { %3180 = vst [vmem:[%s3685_s20 + $0x1da0] sm:$0xff] %v2156_v10  ;;  %v1165_v10 = vld [vmem:[%s3666_s4 + $0x1eb0] sm:$0xff]  ;;  %v2189_v13 = vsub.f32 %v3673_v1, %v1164_v8 }
 0x402   : > { %3181 = vst [vmem:[%s3685_s20 + $0x1da8] sm:$0xff] %v2157_v12  ;;  %v1166_v12 = vld [vmem:[%s3666_s4 + $0x1eb8] sm:$0xff]  ;;  %v2190_v15 = vsub.f32 %v3673_v1, %v1165_v10 }
 0x403   : > { %3182 = vst [vmem:[%s3685_s20 + $0x1db0] sm:$0xff] %v2158_v14  ;;  %v1167_v14 = vld [vmem:[%s3666_s4 + $0x1ec0] sm:$0xff]  ;;  %v2191_v17 = vsub.f32 %v3673_v1, %v1166_v12 }
 0x404   : > { %3183 = vst [vmem:[%s3685_s20 + $0x1db8] sm:$0xff] %v2159_v16  ;;  %v1168_v16 = vld [vmem:[%s3666_s4 + $0x1ec8] sm:$0xff]  ;;  %v2192_v19 = vsub.f32 %v3673_v1, %v1167_v14 }
 0x405   : > { %3184 = vst [vmem:[%s3685_s20 + $0x1dc0] sm:$0xff] %v2160_v18  ;;  %v1169_v18 = vld [vmem:[%s3666_s4 + $0x1ed0] sm:$0xff]  ;;  %v2193_v21 = vsub.f32 %v3673_v1, %v1168_v16 }
 0x406   : > { %3185 = vst [vmem:[%s3685_s20 + $0x1dc8] sm:$0xff] %v2161_v20  ;;  %v1170_v20 = vld [vmem:[%s3666_s4 + $0x1ed8] sm:$0xff]  ;;  %v2194_v23 = vsub.f32 %v3673_v1, %v1169_v18 }
 0x407   : > { %3186 = vst [vmem:[%s3685_s20 + $0x1dd0] sm:$0xff] %v2162_v22  ;;  %v1171_v22 = vld [vmem:[%s3666_s4 + $0x1ee0] sm:$0xff]  ;;  %v2195_v25 = vsub.f32 %v3673_v1, %v1170_v20 }
 0x408   : > { %3187 = vst [vmem:[%s3685_s20 + $0x1dd8] sm:$0xff] %v2163_v24  ;;  %v1172_v24 = vld [vmem:[%s3666_s4 + $0x1ee8] sm:$0xff]  ;;  %v2196_v27 = vsub.f32 %v3673_v1, %v1171_v22 }
 0x409   : > { %3188 = vst [vmem:[%s3685_s20 + $0x1de0] sm:$0xff] %v2164_v26  ;;  %v1173_v26 = vld [vmem:[%s3666_s4 + $0x1ef0] sm:$0xff]  ;;  %v2197_v29 = vsub.f32 %v3673_v1, %v1172_v24 }
 0x40a   : > { %3189 = vst [vmem:[%s3685_s20 + $0x1de8] sm:$0xff] %v2165_v28  ;;  %v1174_v28 = vld [vmem:[%s3666_s4 + $0x1ef8] sm:$0xff]  ;;  %v2198_v31 = vsub.f32 %v3673_v1, %v1173_v26 }
 0x40b   : > { %3190 = vst [vmem:[%s3685_s20 + $0x1df0] sm:$0xff] %v2166_v30  ;;  %v1175_v30 = vld [vmem:[%s3666_s4 + $0x1f00] sm:$0xff]  ;;  %v2199_v33 = vsub.f32 %v3673_v1, %v1174_v28 }
 0x40c   : > { %3191 = vst [vmem:[%s3685_s20 + $0x1df8] sm:$0xff] %v2167_v32  ;;  %v1176_v32 = vld [vmem:[%s3666_s4 + $0x1f08] sm:$0xff]  ;;  %v2200_v35 = vsub.f32 %v3673_v1, %v1175_v30 }
 0x40d   : > { %3192 = vst [vmem:[%s3685_s20 + $0x1e00] sm:$0xff] %v2168_v34  ;;  %v1177_v34 = vld [vmem:[%s3666_s4 + $0x1f10] sm:$0xff]  ;;  %v2201_v37 = vsub.f32 %v3673_v1, %v1176_v32 }
 0x40e   : > { %3193 = vst [vmem:[%s3685_s20 + $0x1e08] sm:$0xff] %v2169_v36  ;;  %v1178_v36 = vld [vmem:[%s3666_s4 + $0x1f18] sm:$0xff]  ;;  %v2202_v39 = vsub.f32 %v3673_v1, %v1177_v34 }
 0x40f   : > { %3194 = vst [vmem:[%s3685_s20 + $0x1e10] sm:$0xff] %v2170_v38  ;;  %v1179_v38 = vld [vmem:[%s3666_s4 + $0x1f20] sm:$0xff]  ;;  %v2203_v41 = vsub.f32 %v3673_v1, %v1178_v36 }
 0x410   : > { %3195 = vst [vmem:[%s3685_s20 + $0x1e18] sm:$0xff] %v2171_v40  ;;  %v1180_v40 = vld [vmem:[%s3666_s4 + $0x1f28] sm:$0xff]  ;;  %v2204_v43 = vsub.f32 %v3673_v1, %v1179_v38 }
 0x411   : > { %3196 = vst [vmem:[%s3685_s20 + $0x1e20] sm:$0xff] %v2172_v42  ;;  %v1181_v42 = vld [vmem:[%s3666_s4 + $0x1f30] sm:$0xff]  ;;  %v2205_v45 = vsub.f32 %v3673_v1, %v1180_v40 }
 0x412   : > { %3197 = vst [vmem:[%s3685_s20 + $0x1e28] sm:$0xff] %v2173_v44  ;;  %v1182_v44 = vld [vmem:[%s3666_s4 + $0x1f38] sm:$0xff]  ;;  %v2206_v47 = vsub.f32 %v3673_v1, %v1181_v42 }
 0x413   : > { %3198 = vst [vmem:[%s3685_s20 + $0x1e30] sm:$0xff] %v2174_v46  ;;  %v1183_v46 = vld [vmem:[%s3666_s4 + $0x1f40] sm:$0xff]  ;;  %v2207_v49 = vsub.f32 %v3673_v1, %v1182_v44 }
 0x414   : > { %3199 = vst [vmem:[%s3685_s20 + $0x1e38] sm:$0xff] %v2175_v48  ;;  %v1184_v48 = vld [vmem:[%s3666_s4 + $0x1f48] sm:$0xff]  ;;  %v2208_v51 = vsub.f32 %v3673_v1, %v1183_v46 }
 0x415   : > { %3200 = vst [vmem:[%s3685_s20 + $0x1e40] sm:$0xff] %v2176_v50  ;;  %v1185_v50 = vld [vmem:[%s3666_s4 + $0x1f50] sm:$0xff]  ;;  %v2209_v53 = vsub.f32 %v3673_v1, %v1184_v48 }
 0x416   : > { %3201 = vst [vmem:[%s3685_s20 + $0x1e48] sm:$0xff] %v2177_v52  ;;  %v1186_v52 = vld [vmem:[%s3666_s4 + $0x1f58] sm:$0xff]  ;;  %v2210_v55 = vsub.f32 %v3673_v1, %v1185_v50 }
 0x417   : > { %3202 = vst [vmem:[%s3685_s20 + $0x1e50] sm:$0xff] %v2178_v54  ;;  %v1187_v54 = vld [vmem:[%s3666_s4 + $0x1f60] sm:$0xff]  ;;  %v2211_v57 = vsub.f32 %v3673_v1, %v1186_v52 }
 0x418   : > { %3203 = vst [vmem:[%s3685_s20 + $0x1e58] sm:$0xff] %v2179_v56  ;;  %v1188_v56 = vld [vmem:[%s3666_s4 + $0x1f68] sm:$0xff]  ;;  %v2212_v59 = vsub.f32 %v3673_v1, %v1187_v54 }
 0x419   : > { %3204 = vst [vmem:[%s3685_s20 + $0x1e60] sm:$0xff] %v2180_v58  ;;  %v1189_v58 = vld [vmem:[%s3666_s4 + $0x1f70] sm:$0xff]  ;;  %v2213_v61 = vsub.f32 %v3673_v1, %v1188_v56 }
 0x41a   : > { %3205 = vst [vmem:[%s3685_s20 + $0x1e68] sm:$0xff] %v2181_v60  ;;  %v1190_v60 = vld [vmem:[%s3666_s4 + $0x1f78] sm:$0xff]  ;;  %v2214_v63 = vsub.f32 %v3673_v1, %v1189_v58 }
 0x41b   : > { %3206 = vst [vmem:[%s3685_s20 + $0x1e70] sm:$0xff] %v2182_v62  ;;  %v1191_v62 = vld [vmem:[%s3666_s4 + $0x1f80] sm:$0xff]  ;;  %v2215_v2 = vsub.f32 %v3673_v1, %v1190_v60 }
 0x41c   : > { %3207 = vst [vmem:[%s3685_s20 + $0x1e78] sm:$0xff] %v2183_v0  ;;  %v1192_v0 = vld [vmem:[%s3666_s4 + $0x1f88] sm:$0xff]  ;;  %v2216_v4 = vsub.f32 %v3673_v1, %v1191_v62 }
 0x41d   : > { %3208 = vst [vmem:[%s3685_s20 + $0x1e80] sm:$0xff] %v2184_v3  ;;  %v1193_v3 = vld [vmem:[%s3666_s4 + $0x1f90] sm:$0xff]  ;;  %v2217_v6 = vsub.f32 %v3673_v1, %v1192_v0 }
 0x41e   : > { %3209 = vst [vmem:[%s3685_s20 + $0x1e88] sm:$0xff] %v2185_v5  ;;  %v1194_v5 = vld [vmem:[%s3666_s4 + $0x1f98] sm:$0xff]  ;;  %v2218_v8 = vsub.f32 %v3673_v1, %v1193_v3 }
 0x41f   : > { %3210 = vst [vmem:[%s3685_s20 + $0x1e90] sm:$0xff] %v2186_v7  ;;  %v1195_v7 = vld [vmem:[%s3666_s4 + $0x1fa0] sm:$0xff]  ;;  %v2219_v10 = vsub.f32 %v3673_v1, %v1194_v5 }
 0x420   : > { %3211 = vst [vmem:[%s3685_s20 + $0x1e98] sm:$0xff] %v2187_v9  ;;  %v1196_v9 = vld [vmem:[%s3666_s4 + $0x1fa8] sm:$0xff]  ;;  %v2220_v12 = vsub.f32 %v3673_v1, %v1195_v7 }
 0x421   : > { %3212 = vst [vmem:[%s3685_s20 + $0x1ea0] sm:$0xff] %v2188_v11  ;;  %v1197_v11 = vld [vmem:[%s3666_s4 + $0x1fb0] sm:$0xff]  ;;  %v2221_v14 = vsub.f32 %v3673_v1, %v1196_v9 }
 0x422   : > { %3213 = vst [vmem:[%s3685_s20 + $0x1ea8] sm:$0xff] %v2189_v13  ;;  %v1198_v13 = vld [vmem:[%s3666_s4 + $0x1fb8] sm:$0xff]  ;;  %v2222_v16 = vsub.f32 %v3673_v1, %v1197_v11 }
 0x423   : > { %3214 = vst [vmem:[%s3685_s20 + $0x1eb0] sm:$0xff] %v2190_v15  ;;  %v1199_v15 = vld [vmem:[%s3666_s4 + $0x1fc0] sm:$0xff]  ;;  %v2223_v18 = vsub.f32 %v3673_v1, %v1198_v13 }
 0x424   : > { %3215 = vst [vmem:[%s3685_s20 + $0x1eb8] sm:$0xff] %v2191_v17  ;;  %v1200_v17 = vld [vmem:[%s3666_s4 + $0x1fc8] sm:$0xff]  ;;  %v2224_v20 = vsub.f32 %v3673_v1, %v1199_v15 }
 0x425   : > { %3216 = vst [vmem:[%s3685_s20 + $0x1ec0] sm:$0xff] %v2192_v19  ;;  %v1201_v19 = vld [vmem:[%s3666_s4 + $0x1fd0] sm:$0xff]  ;;  %v2225_v22 = vsub.f32 %v3673_v1, %v1200_v17 }
 0x426   : > { %3217 = vst [vmem:[%s3685_s20 + $0x1ec8] sm:$0xff] %v2193_v21  ;;  %v1202_v21 = vld [vmem:[%s3666_s4 + $0x1fd8] sm:$0xff]  ;;  %v2226_v24 = vsub.f32 %v3673_v1, %v1201_v19 }
 0x427   : > { %3218 = vst [vmem:[%s3685_s20 + $0x1ed0] sm:$0xff] %v2194_v23  ;;  %v1203_v23 = vld [vmem:[%s3666_s4 + $0x1fe0] sm:$0xff]  ;;  %v2227_v26 = vsub.f32 %v3673_v1, %v1202_v21 }
 0x428   : > { %3219 = vst [vmem:[%s3685_s20 + $0x1ed8] sm:$0xff] %v2195_v25  ;;  %v1204_v25 = vld [vmem:[%s3666_s4 + $0x1fe8] sm:$0xff]  ;;  %v2228_v28 = vsub.f32 %v3673_v1, %v1203_v23 }
 0x429   : > { %3220 = vst [vmem:[%s3685_s20 + $0x1ee0] sm:$0xff] %v2196_v27  ;;  %v1205_v27 = vld [vmem:[%s3666_s4 + $0x1ff0] sm:$0xff]  ;;  %v2229_v30 = vsub.f32 %v3673_v1, %v1204_v25 }
 0x42a   : > { %3221 = vst [vmem:[%s3685_s20 + $0x1ee8] sm:$0xff] %v2197_v29  ;;  %v1206_v29 = vld [vmem:[%s3666_s4 + $0x1ff8] sm:$0xff] }
 0x42b   : > { %3222 = vst [vmem:[%s3685_s20 + $0x1ef0] sm:$0xff] %v2198_v31  ;;  %v2230_v31 = vsub.f32 %v3673_v1, %v1205_v27  ;;  %v2231_v32 = vsub.f32 %v3673_v1, %v1206_v29 }
 0x42c   : > { %3223 = vst [vmem:[%s3685_s20 + $0x1ef8] sm:$0xff] %v2199_v33 }
 0x42d   : > { %3224 = vst [vmem:[%s3685_s20 + $0x1f00] sm:$0xff] %v2200_v35 }
 0x42e   : > { %3225 = vst [vmem:[%s3685_s20 + $0x1f08] sm:$0xff] %v2201_v37 }
 0x42f   : > { %3226 = vst [vmem:[%s3685_s20 + $0x1f10] sm:$0xff] %v2202_v39 }
 0x430   : > { %3227 = vst [vmem:[%s3685_s20 + $0x1f18] sm:$0xff] %v2203_v41 }
 0x431   : > { %3228 = vst [vmem:[%s3685_s20 + $0x1f20] sm:$0xff] %v2204_v43 }
 0x432   : > { %3229 = vst [vmem:[%s3685_s20 + $0x1f28] sm:$0xff] %v2205_v45 }
 0x433   : > { %3230 = vst [vmem:[%s3685_s20 + $0x1f30] sm:$0xff] %v2206_v47 }
 0x434   : > { %3231 = vst [vmem:[%s3685_s20 + $0x1f38] sm:$0xff] %v2207_v49 }
 0x435   : > { %3232 = vst [vmem:[%s3685_s20 + $0x1f40] sm:$0xff] %v2208_v51 }
 0x436   : > { %3233 = vst [vmem:[%s3685_s20 + $0x1f48] sm:$0xff] %v2209_v53 }
 0x437   : > { %3234 = vst [vmem:[%s3685_s20 + $0x1f50] sm:$0xff] %v2210_v55 }
 0x438   : > { %3235 = vst [vmem:[%s3685_s20 + $0x1f58] sm:$0xff] %v2211_v57 }
 0x439   : > { %3236 = vst [vmem:[%s3685_s20 + $0x1f60] sm:$0xff] %v2212_v59 }
 0x43a   : > { %3237 = vst [vmem:[%s3685_s20 + $0x1f68] sm:$0xff] %v2213_v61 }
 0x43b   : > { %3238 = vst [vmem:[%s3685_s20 + $0x1f70] sm:$0xff] %v2214_v63 }
 0x43c   : > { %3239 = vst [vmem:[%s3685_s20 + $0x1f78] sm:$0xff] %v2215_v2 }
 0x43d   : > { %3240 = vst [vmem:[%s3685_s20 + $0x1f80] sm:$0xff] %v2216_v4 }
 0x43e   : > { %3241 = vst [vmem:[%s3685_s20 + $0x1f88] sm:$0xff] %v2217_v6 }
 0x43f   : > { %3242 = vst [vmem:[%s3685_s20 + $0x1f90] sm:$0xff] %v2218_v8 }
 0x440   : > { %3243 = vst [vmem:[%s3685_s20 + $0x1f98] sm:$0xff] %v2219_v10 }
 0x441   : > { %3244 = vst [vmem:[%s3685_s20 + $0x1fa0] sm:$0xff] %v2220_v12 }
 0x442   : > { %3245 = vst [vmem:[%s3685_s20 + $0x1fa8] sm:$0xff] %v2221_v14 }
 0x443   : > { %3246 = vst [vmem:[%s3685_s20 + $0x1fb0] sm:$0xff] %v2222_v16 }
 0x444   : > { %3247 = vst [vmem:[%s3685_s20 + $0x1fb8] sm:$0xff] %v2223_v18 }
 0x445   : > { %3248 = vst [vmem:[%s3685_s20 + $0x1fc0] sm:$0xff] %v2224_v20 }
 0x446   : > { %3249 = vst [vmem:[%s3685_s20 + $0x1fc8] sm:$0xff] %v2225_v22 }
 0x447   : > { %3250 = vst [vmem:[%s3685_s20 + $0x1fd0] sm:$0xff] %v2226_v24 }
 0x448   : > { %3251 = vst [vmem:[%s3685_s20 + $0x1fd8] sm:$0xff] %v2227_v26  ;;  %3263 = sbr.rel (!%p3605_p9) target bundleno = 1132 (0x46c), region = 36 }
 0x449   : > { %3252 = vst [vmem:[%s3685_s20 + $0x1fe0] sm:$0xff] %v2228_v28 }
 0x44a   : > { %3253 = vst [vmem:[%s3685_s20 + $0x1fe8] sm:$0xff] %v2229_v30 }
 0x44b   : > { %3254 = vst [vmem:[%s3685_s20 + $0x1ff0] sm:$0xff] %v2230_v31 }
 0x44c   : > { %3255 = vst [vmem:[%s3685_s20 + $0x1ff8] sm:$0xff] %v2231_v32 }
 0x44d   : > { %s6825_s10 = smov (!%p3266_p6, %s3265_s10), 1024 }
 0x44e   : > { %s3367_s15 = sshll.u32 %s6825_s10, 3 }
 0x44f   : > { %s3269_s25 = ssub.s32 8192, %s3367_s15 }
 0x450   : > { %s3270_s27 = sshll.u32 %s3269_s25, 4 }
 0x451   : > { %3271 = vsyncadd %s3257_s30, %s3270_s27  ;;  %p6757_p13 = scmp.ne.s32.totalorder %s3367_s15, 0  ;;  %s3375_s28 = sshll.u32 %s3582_s0, 13 }
 0x452   : > { %s3274_s5 = scalar_lea.hbm %s6812_s2, %s3375_s28  ;;  %s3276_s6 = sshll.u32 %s3685_s20, 4  ;;  %s6766_s6 = int_to_ptr.vmem [resolvable:$true] %s3276_s6 }
 0x453   : > { %s3278_s7 = sshll.u32 %s3274_s5, 4  ;;  %s3371_s8 = sshll.u32 %s6825_s10, 7  ;;  %s6768_s7 = int_to_ptr.hbm [resolvable:$true] %s3278_s7 }
 0x454   : > { %s3458_s17 = sshra.s32 %s6766_s6, 4  ;;  %s3460_s23 = sshrl.u32 %s3371_s8, 4  ;;  %s3459_s17 = int_to_ptr.vmem [resolvable:$true] %s3458_s17 }
 0x455   : > { %s3465_s24 = scalar_lea.vmem %s3459_s17, %s3460_s23  ;;  %s3540_s0 = smov [#allocation6]  }
 0x456   : > { %p3466_p9 = scmp.ne.s32.totalorder %s3459_s17, %s3465_s24  ;;  %s3469_s4 = scalar_lea.vmem %s3540_s0, 16384 }
 0x457   : > { %p3471_p8 = scmp.lt.s32.totalorder %s3469_s4, %s3465_s24 }
 0x458   : > { %p3467_p5 = pnand %p3466_p9, %p6757_p13 }
 0x45a   : > { %p3468_p7 = pneg %p3467_p5 }
 0x45c   : > { %p3473_p11 = pnand %p3471_p8, %p3468_p7 }
 0x45e   : > { %3476 = shalt.err (!%p3473_p11)
}
 0x45f   : > { %s3477_s26 = sshra.s32 %s6768_s7, 4  ;;  %s3488_s25 = scalar_lea.hbm %s6812_s2, 20480  ;;  %s3478_s26 = int_to_ptr.hbm [resolvable:$true] %s3477_s26 }
 0x460   : > { %s3484_s20 = scalar_lea.hbm %s3478_s26, %s3460_s23  ;;  %p3489_p2 = scmp.lt.s32.totalorder %s3478_s26, %s6812_s2 }
 0x461   : > { %p3485_p12 = scmp.ne.s32.totalorder %s3478_s26, %s3484_s20  ;;  %p3490_p3 = scmp.lt.s32.totalorder %s3488_s25, %s3484_s20 }
 0x463   : > { %p3486_p0 = pnand %p3485_p12, %p6757_p13  ;;  %p3491_p4 = por %p3490_p3, %p3489_p2 }
 0x465   : > { %p3487_p1 = pneg %p3486_p0 }
 0x467   : > { %p3492_p6 = pnand %p3491_p4, %p3487_p1 }
 0x469   : > { %3495 = shalt.err (!%p3492_p6)
}
 0x46a   : > { %s3541_s29 = smov 128   ;;  %s3542_s3 = smov 8  }
 0x46b   : > { %3284 = dma.vmem_to_hbm [thread:$0]  (%p6757_p13), %s6766_s6, %s3371_s8, %s6768_s7, %s3257_s30, %s3541_s29, %s3541_s29, %s3542_s3  }
 0x46c PF: > { %p3382_p9 = scmp.ge.s32.totalorder %s3535_s14, 2  ;;  %s3293_s5 = sand.u32 1, %s3523_s11  }
 0x46d   : > { %s3294_s17 = scalar_lea.sflag [#allocation5], %s3293_s5 }
 0x46e   : > { %p3379_p5 = pnand %p3382_p9, %p3609_p10 }
 0x470   : > { %p3380_p7 = pneg %p3379_p5 }
 0x472   : > { %3518 = dma.done.wait (%p3380_p7), %s3294_s17, 131072  }
 0x473   : > { %3520 = vsyncadd (%p3380_p7), %s3294_s17, 4294836224  ;;  %p16_p8 = scmp.ge.s32.totalorder %s3586_s16, 5   ;;  %s6818_s11 = smov %s3527_s12 }
 0x474   : > { %s6819_s12 = smov %s3531_s13  ;;  %s6820_s13 = smov %s3598_s19 }
 0x475   : > { %s6821_s14 = smov %s3586_s16  ;;  %18 = sbr.rel (!%p16_p8) target bundleno = 7 (0x7), region = 73 }
 0x47a   :  { %3300 = vsyncpa [#allocation4], 1 }
 0x47b   :  { %3302 = vsyncpa [#allocation4 + $0x1], 1 }
 0x47c   :  { %3303 = vsyncpa [#allocation5], 1 }
 0x47d   :  { %3305 = vsyncpa [#allocation5 + $0x1], 1 }

</bundles_post_ra>
